<compile_context>
chip_gen: v7x
topology: tpu7x:2x2x1
jax: 0.10.0
libtpu: 0.0.40
codegen_flags: <defaults>
</compile_context>

<pallas_src>
import math

import jax
import jax.numpy as jnp
from jax.experimental import pallas as pl
from jax.experimental.pallas import tpu as pltpu

NEG_SLOPE = 0.01      # nn.LeakyReLU default
BN_EPS = 1e-5         # nn.BatchNorm1d default
LINEAR_SIZE = 256
NOISE_CH = 72         # RTGenerator noise width; BA noise (32) is zero-padded to 72
BA_NOISE_CH = 32
NUM_BA_JOINTS = 24
NUM_TRUNK_LAYERS = 5  # w1+bn1 followed by num_stage=2 blocks of (linear+bn)*2


# ------------------------------ fused kernel -------------------------------- #

def _pose_generator_kernel(
        noise_ref, eps_ref, x_ref,
        w0, g0, be0, w1, g1, be1, w2, g2, be2, w3, g3, be3, w4, g4, be4,
        wba, bba, wt, bt,
        ba_ref, r_ref, t_ref, rt_ref):
    # ---- three stacked trunks: 5 x (Linear(no bias) + BN(train) + LeakyReLU)
    y = noise_ref[...]                                            # (3, N, 72) f32
    for w_r, g_r, be_r in ((w0, g0, be0), (w1, g1, be1), (w2, g2, be2),
                           (w3, g3, be3), (w4, g4, be4)):
        z = jnp.einsum('bnk,bkc->bnc', y.astype(jnp.bfloat16), w_r[...],
                       preferred_element_type=jnp.float32)        # (3, N, 256)
        m1 = jnp.mean(z, axis=1, keepdims=True)
        m2 = jnp.mean(z * z, axis=1, keepdims=True)
        scale = g_r[...] * jax.lax.rsqrt(m2 - m1 * m1 + BN_EPS)   # gamma folded in
        z = (z - m1) * scale + be_r[...]
        y = jnp.where(z >= 0.0, z, NEG_SLOPE * z)                 # LeakyReLU

    # ---------------------------- BA head (lane-dense [x|y|z|theta]) ---------
    h_ba = y[0]                                                   # (N, 256)
    ba = jnp.dot(h_ba.astype(jnp.bfloat16), wba[...],
                 preferred_element_type=jnp.float32) + bba[...]   # (N, 96)
    ax = ba[:, 0:24]
    ay = ba[:, 24:48]
    az = ba[:, 48:72]
    th = ba[:, 72:96]
    s = th * jax.lax.rsqrt(ax * ax + ay * ay + az * az)           # theta / |axis|
    jidx = jax.lax.broadcasted_iota(jnp.int32, s.shape, 1)
    s = jnp.where(jidx == 0, s * (3.14 * 2.0), s)                 # joint 0 scale
    ba_ref[0] = ax * s
    ba_ref[1] = ay * s
    ba_ref[2] = az * s                                            # (3, N, 24)

    # ---------------------------- rotation head ------------------------------
    r = y[1]                                                      # (N, 256)
    r_mean = r[:, 0:3]
    r_std = r[:, 3:6] * r[:, 3:6]
    r_axis = r_mean + r_std * eps_ref[...]                        # torch.normal(mean, std)
    r_axis = r_axis * jax.lax.rsqrt(
        jnp.sum(r_axis * r_axis, axis=-1, keepdims=True))
    r_axis = r_axis * r[:, 6:7]                                   # (N, 3)

    # axis-angle -> quaternion -> rotation matrix (pytorch3d convention)
    sq = jnp.sum(r_axis * r_axis, axis=-1, keepdims=True)         # (N, 1)
    ang = jnp.sqrt(sq)
    half = ang * 0.5
    small = ang < 1e-6
    sin_half_over = jnp.where(small, 0.5 - sq / 48.0,
                              jnp.sin(half) / jnp.where(small, 1.0, ang))
    qr = jnp.cos(half)                                            # (N, 1)
    qv = r_axis * sin_half_over                                   # (N, 3)
    qi, qj, qk = qv[:, 0:1], qv[:, 1:2], qv[:, 2:3]
    two_s = 2.0 / (qr * qr + qi * qi + qj * qj + qk * qk)
    r00 = 1.0 - two_s * (qj * qj + qk * qk)
    r01 = two_s * (qi * qj - qk * qr)
    r02 = two_s * (qi * qk + qj * qr)
    r10 = two_s * (qi * qj + qk * qr)
    r11 = 1.0 - two_s * (qi * qi + qk * qk)
    r12 = two_s * (qj * qk - qi * qr)
    r20 = two_s * (qi * qk - qj * qr)
    r21 = two_s * (qj * qk + qi * qr)
    r22 = 1.0 - two_s * (qi * qi + qj * qj)
    r_ref[...] = jnp.concatenate(
        [r00, r01, r02, r10, r11, r12, r20, r21, r22], axis=-1)   # (N, 9)

    # ---------------------------- translation head ---------------------------
    h_t = y[2]                                                    # (N, 256)
    t = jnp.dot(h_t.astype(jnp.bfloat16), wt[...],
                preferred_element_type=jnp.float32) + bt[...]     # (N, 3)
    lane = jax.lax.broadcasted_iota(jnp.int32, t.shape, 1)
    t = jnp.where(lane == 2, t * t, t)                            # t[:, 2] squared
    t_ref[...] = t

    # ------------------- apply R, T (channel-major, no lane concat) ----------
    xc = x_ref[...]                                               # (3, N, J)
    xr = xc - xc[:, :, 0:1]                                       # root-relative
    xr_x, xr_y, xr_z = xr[0], xr[1], xr[2]                        # (N, J) each
    rt_ref[0] = r00 * xr_x + r01 * xr_y + r02 * xr_z + t[:, 0:1]
    rt_ref[1] = r10 * xr_x + r11 * xr_y + r12 * xr_z + t[:, 1:2]
    rt_ref[2] = r20 * xr_x + r21 * xr_y + r22 * xr_z + t[:, 2:3]


# ------------------------------ kernel wrapper ------------------------------- #

def _fused_pose_generator(noise, eps_r, x_cnj, params):
    n = noise.shape[1]
    j = x_cnj.shape[2]
    args = [noise, eps_r, x_cnj]
    for l in range(NUM_TRUNK_LAYERS):
        args += [params['trunk_w'][l], params['trunk_g'][l], params['trunk_b'][l]]
    args += [params['ba_w2'], params['ba_b2'], params['t_w2'], params['t_b2']]

    vmem = pl.BlockSpec(memory_space=pltpu.MemorySpace.VMEM)
    out_shapes = (
        jax.ShapeDtypeStruct((3, n, NUM_BA_JOINTS), jnp.float32),  # pose_ba (c, n, j)
        jax.ShapeDtypeStruct((n, 9), jnp.float32),                 # R (flattened)
        jax.ShapeDtypeStruct((n, 3), jnp.float32),                 # T
        jax.ShapeDtypeStruct((3, n, j), jnp.float32),              # pose_rt (c, n, j)
    )
    return pl.pallas_call(
        _pose_generator_kernel,
        out_shape=out_shapes,
        in_specs=[vmem] * len(args),
        out_specs=(vmem, vmem, vmem, vmem),
        compiler_params=pltpu.CompilerParams(vmem_limit_bytes=32 * 1024 * 1024),
    )(*args)


# --------------------------- parameter construction -------------------------- #

def _uniform(key, shape, fan_in):
    bound = 1.0 / math.sqrt(fan_in)
    return jax.random.uniform(key, shape, jnp.float32, -bound, bound)


def init_pose_generator_params(key):
    keys = jax.random.split(key, 4 + 3 * NUM_TRUNK_LAYERS)
    ki = iter(keys)

    # Layer 0 (noise -> 256). BA weight (32x256) zero-padded to 72 rows so the
    # zero-padded BA noise contributes nothing (exactly equivalent to 32-wide).
    w_ba0 = _uniform(next(ki), (BA_NOISE_CH, LINEAR_SIZE), BA_NOISE_CH)
    w_ba0 = jnp.concatenate(
        [w_ba0, jnp.zeros((NOISE_CH - BA_NOISE_CH, LINEAR_SIZE), jnp.float32)], axis=0)
    w_r0 = _uniform(next(ki), (NOISE_CH, LINEAR_SIZE), NOISE_CH)
    w_t0 = _uniform(next(ki), (NOISE_CH, LINEAR_SIZE), NOISE_CH)

    trunk_w = [jnp.stack([w_ba0, w_r0, w_t0], axis=0).astype(jnp.bfloat16)]
    trunk_g = [jnp.ones((3, 1, LINEAR_SIZE), jnp.float32)]
    trunk_b = [jnp.zeros((3, 1, LINEAR_SIZE), jnp.float32)]
    # NOTE: linear biases of the BN-followed layers are omitted on purpose:
    # training-mode BatchNorm subtracts the batch mean, cancelling them exactly.
    for _ in range(NUM_TRUNK_LAYERS - 1):
        ws = [_uniform(next(ki), (LINEAR_SIZE, LINEAR_SIZE), LINEAR_SIZE)
              for _ in range(3)]
        trunk_w.append(jnp.stack(ws, axis=0).astype(jnp.bfloat16))
        trunk_g.append(jnp.ones((3, 1, LINEAR_SIZE), jnp.float32))
        trunk_b.append(jnp.zeros((3, 1, LINEAR_SIZE), jnp.float32))

    # BA head w2 (256 -> 24*4), columns permuted to the lane-dense
    # [x(24) | y(24) | z(24) | theta(24)] layout used inside the kernel.
    w2 = _uniform(next(ki), (LINEAR_SIZE, NUM_BA_JOINTS * 4), LINEAR_SIZE)
    b2 = _uniform(next(ki), (1, NUM_BA_JOINTS * 4), LINEAR_SIZE)
    perm = jnp.asarray([4 * jt + c for c in range(4) for jt in range(NUM_BA_JOINTS)],
                       dtype=jnp.int32)
    ba_w2 = w2[:, perm].astype(jnp.bfloat16)
    ba_b2 = b2[:, perm]

    # RT translation head w2_T (256 -> 3).
    t_w2 = _uniform(next(ki), (LINEAR_SIZE, 3), LINEAR_SIZE).astype(jnp.bfloat16)
    t_b2 = _uniform(next(ki), (1, 3), LINEAR_SIZE)

    # NOTE: RTGenerator.w2_R (256 -> 7) is defined in __init__ but never used in
    # forward(), so it is intentionally omitted here.
    return {'trunk_w': trunk_w, 'trunk_g': trunk_g, 'trunk_b': trunk_b,
            'ba_w2': ba_w2, 'ba_b2': ba_b2, 't_w2': t_w2, 't_b2': t_b2}


# -------------------------------- forward pass ------------------------------- #

def _pose_generator_forward(params, inputs_3d, rng):
    n, j, _ = inputs_3d.shape
    k_ba, k_r, k_rax, k_t = jax.random.split(rng, 4)

    noise_ba = jax.random.normal(k_ba, (n, BA_NOISE_CH), jnp.float32)
    noise_ba = jnp.concatenate(
        [noise_ba, jnp.zeros((n, NOISE_CH - BA_NOISE_CH), jnp.float32)], axis=-1)
    noise_r = jax.random.normal(k_r, (n, NOISE_CH), jnp.float32)
    noise_t = jax.random.normal(k_t, (n, NOISE_CH), jnp.float32)
    noise = jnp.stack([noise_ba, noise_r, noise_t], axis=0)         # (3, n, 72)
    eps_r = jax.random.normal(k_rax, (n, 3), jnp.float32)           # for torch.normal

    x_cnj = jnp.transpose(inputs_3d.astype(jnp.float32), (2, 0, 1))  # (3, n, J)

    ba_cnj, r_flat, t_out, rt_cnj = _fused_pose_generator(noise, eps_r, x_cnj, params)

    pose_ba = jnp.transpose(ba_cnj, (1, 2, 0))                       # (n, 24, 3)
    pose_rt = jnp.transpose(rt_cnj, (1, 2, 0))                       # (n, J, 3)
    rM = r_flat.reshape(n, 3, 3)

    return {'pose_ba': pose_ba, 'ba_diff': None, 'pose_bl': None, 'blr': None,
            'pose_rt': pose_rt, 'R': rM, 'T': t_out}


pose_generator_forward = jax.jit(_pose_generator_forward)


# ----------------------------------- main ------------------------------------ #

if __name__ == "__main__":
    key = jax.random.PRNGKey(0)
    k_param, k_in, k_fwd = jax.random.split(key, 3)

    params = init_pose_generator_params(k_param)
    inputs_3d = jax.random.normal(k_in, (4, 16, 3), jnp.float32)     # n x 16 x 3

    out = pose_generator_forward(params, inputs_3d, k_fwd)

    jax.block_until_ready(out['pose_ba'])
    jax.block_until_ready(out['pose_rt'])
    jax.block_until_ready(out['R'])
    jax.block_until_ready(out['T'])

    assert out['pose_ba'].shape == (4, 24, 3)
    assert out['pose_rt'].shape == (4, 16, 3)
    assert out['R'].shape == (4, 3, 3)
    assert out['T'].shape == (4, 3)
    assert out['ba_diff'] is None and out['pose_bl'] is None and out['blr'] is None

    print("KERNEL_OK")
</pallas_src>

<mosaic_0001>
module attributes {stable_mosaic.version = 11 : i64} {
  func.func @_pose_generator_kernel(%arg0: memref<3x4x72xf32, #tpu.memory_space<vmem>>, %arg1: memref<4x3xf32, #tpu.memory_space<vmem>>, %arg2: memref<3x4x16xf32, #tpu.memory_space<vmem>>, %arg3: memref<3x72x256xbf16, #tpu.memory_space<vmem>>, %arg4: memref<3x1x256xf32, #tpu.memory_space<vmem>>, %arg5: memref<3x1x256xf32, #tpu.memory_space<vmem>>, %arg6: memref<3x256x256xbf16, #tpu.memory_space<vmem>>, %arg7: memref<3x1x256xf32, #tpu.memory_space<vmem>>, %arg8: memref<3x1x256xf32, #tpu.memory_space<vmem>>, %arg9: memref<3x256x256xbf16, #tpu.memory_space<vmem>>, %arg10: memref<3x1x256xf32, #tpu.memory_space<vmem>>, %arg11: memref<3x1x256xf32, #tpu.memory_space<vmem>>, %arg12: memref<3x256x256xbf16, #tpu.memory_space<vmem>>, %arg13: memref<3x1x256xf32, #tpu.memory_space<vmem>>, %arg14: memref<3x1x256xf32, #tpu.memory_space<vmem>>, %arg15: memref<3x256x256xbf16, #tpu.memory_space<vmem>>, %arg16: memref<3x1x256xf32, #tpu.memory_space<vmem>>, %arg17: memref<3x1x256xf32, #tpu.memory_space<vmem>>, %arg18: memref<256x96xbf16, #tpu.memory_space<vmem>>, %arg19: memref<1x96xf32, #tpu.memory_space<vmem>>, %arg20: memref<256x3xbf16, #tpu.memory_space<vmem>>, %arg21: memref<1x3xf32, #tpu.memory_space<vmem>>, %arg22: memref<3x4x24xf32, #tpu.memory_space<vmem>>, %arg23: memref<4x9xf32, #tpu.memory_space<vmem>>, %arg24: memref<4x3xf32, #tpu.memory_space<vmem>>, %arg25: memref<3x4x16xf32, #tpu.memory_space<vmem>>) attributes {dimension_semantics = [], scalar_prefetch = 0 : i64, scratch_operands = 0 : i64, tpu.core_type = #tpu.core_type<tc>} {
    %c0 = arith.constant 0 : index
    %c0_0 = arith.constant 0 : index
    %c0_1 = arith.constant 0 : index
    %0 = vector.load %arg0[%c0, %c0_0, %c0_1] : memref<3x4x72xf32, #tpu.memory_space<vmem>>, vector<3x4x72xf32>
    %1 = arith.truncf %0 : vector<3x4x72xf32> to vector<3x4x72xbf16>
    %c0_2 = arith.constant 0 : index
    %c0_3 = arith.constant 0 : index
    %c0_4 = arith.constant 0 : index
    %2 = vector.load %arg3[%c0_2, %c0_3, %c0_4] : memref<3x72x256xbf16, #tpu.memory_space<vmem>>, vector<3x72x256xbf16>
    "tpu.trace_start"() <{level = 10 : i32, message = "bnk,bkc->bnc"}> : () -> ()
    %cst = arith.constant dense<0.000000e+00> : vector<3x4x256xf32>
    %3 = tpu.matmul %1, %2, %cst {dimension_numbers = #tpu.dot_dimension_numbers<[2], [1], [1], [2], [0, 0, 0, 1, 1, 2], [0], [0]>} : vector<3x4x72xbf16>, vector<3x72x256xbf16>, vector<3x4x256xf32> -> vector<3x4x256xf32>
    "tpu.trace_stop"() : () -> ()
    %cst_5 = arith.constant dense<0.000000e+00> : vector<3x256xf32>
    %4 = vector.multi_reduction <add>, %3, %cst_5 [1] : vector<3x4x256xf32> to vector<3x256xf32>
    %5 = vector.shape_cast %4 : vector<3x256xf32> to vector<3x1x256xf32>
    %cst_6 = arith.constant 4.000000e+00 : f32
    %6 = vector.broadcast %cst_6 : f32 to vector<3x1x256xf32>
    %7 = arith.divf %5, %6 : vector<3x1x256xf32>
    %8 = arith.mulf %3, %3 : vector<3x4x256xf32>
    %cst_7 = arith.constant dense<0.000000e+00> : vector<3x256xf32>
    %9 = vector.multi_reduction <add>, %8, %cst_7 [1] : vector<3x4x256xf32> to vector<3x256xf32>
    %10 = vector.shape_cast %9 : vector<3x256xf32> to vector<3x1x256xf32>
    %cst_8 = arith.constant 4.000000e+00 : f32
    %11 = vector.broadcast %cst_8 : f32 to vector<3x1x256xf32>
    %12 = arith.divf %10, %11 : vector<3x1x256xf32>
    %c0_9 = arith.constant 0 : index
    %c0_10 = arith.constant 0 : index
    %c0_11 = arith.constant 0 : index
    %13 = vector.load %arg4[%c0_9, %c0_10, %c0_11] : memref<3x1x256xf32, #tpu.memory_space<vmem>>, vector<3x1x256xf32>
    %14 = arith.mulf %7, %7 : vector<3x1x256xf32>
    %15 = arith.subf %12, %14 : vector<3x1x256xf32>
    %cst_12 = arith.constant 9.99999974E-6 : f32
    %16 = vector.broadcast %cst_12 : f32 to vector<3x1x256xf32>
    %17 = arith.addf %15, %16 : vector<3x1x256xf32>
    %18 = math.rsqrt %17 : vector<3x1x256xf32>
    %19 = arith.mulf %13, %18 : vector<3x1x256xf32>
    %20 = vector.broadcast %7 : vector<3x1x256xf32> to vector<3x4x256xf32>
    %21 = arith.subf %3, %20 : vector<3x4x256xf32>
    %22 = vector.broadcast %19 : vector<3x1x256xf32> to vector<3x4x256xf32>
    %23 = arith.mulf %21, %22 : vector<3x4x256xf32>
    %c0_13 = arith.constant 0 : index
    %c0_14 = arith.constant 0 : index
    %c0_15 = arith.constant 0 : index
    %24 = vector.load %arg5[%c0_13, %c0_14, %c0_15] : memref<3x1x256xf32, #tpu.memory_space<vmem>>, vector<3x1x256xf32>
    %25 = vector.broadcast %24 : vector<3x1x256xf32> to vector<3x4x256xf32>
    %26 = arith.addf %23, %25 : vector<3x4x256xf32>
    %cst_16 = arith.constant 0.000000e+00 : f32
    %27 = vector.broadcast %cst_16 : f32 to vector<3x4x256xf32>
    %28 = arith.cmpf oge, %26, %27 : vector<3x4x256xf32>
    %cst_17 = arith.constant 0.00999999977 : f32
    %29 = vector.broadcast %cst_17 : f32 to vector<3x4x256xf32>
    %30 = arith.mulf %29, %26 : vector<3x4x256xf32>
    %31 = arith.select %28, %26, %30 : vector<3x4x256xi1>, vector<3x4x256xf32>
    %32 = arith.truncf %31 : vector<3x4x256xf32> to vector<3x4x256xbf16>
    %c0_18 = arith.constant 0 : index
    %c0_19 = arith.constant 0 : index
    %c0_20 = arith.constant 0 : index
    %33 = vector.load %arg6[%c0_18, %c0_19, %c0_20] : memref<3x256x256xbf16, #tpu.memory_space<vmem>>, vector<3x256x256xbf16>
    "tpu.trace_start"() <{level = 10 : i32, message = "bnk,bkc->bnc"}> : () -> ()
    %cst_21 = arith.constant dense<0.000000e+00> : vector<3x4x256xf32>
    %34 = tpu.matmul %32, %33, %cst_21 {dimension_numbers = #tpu.dot_dimension_numbers<[2], [1], [1], [2], [0, 0, 0, 1, 1, 2], [0], [0]>} : vector<3x4x256xbf16>, vector<3x256x256xbf16>, vector<3x4x256xf32> -> vector<3x4x256xf32>
    "tpu.trace_stop"() : () -> ()
    %cst_22 = arith.constant dense<0.000000e+00> : vector<3x256xf32>
    %35 = vector.multi_reduction <add>, %34, %cst_22 [1] : vector<3x4x256xf32> to vector<3x256xf32>
    %36 = vector.shape_cast %35 : vector<3x256xf32> to vector<3x1x256xf32>
    %cst_23 = arith.constant 4.000000e+00 : f32
    %37 = vector.broadcast %cst_23 : f32 to vector<3x1x256xf32>
    %38 = arith.divf %36, %37 : vector<3x1x256xf32>
    %39 = arith.mulf %34, %34 : vector<3x4x256xf32>
    %cst_24 = arith.constant dense<0.000000e+00> : vector<3x256xf32>
    %40 = vector.multi_reduction <add>, %39, %cst_24 [1] : vector<3x4x256xf32> to vector<3x256xf32>
    %41 = vector.shape_cast %40 : vector<3x256xf32> to vector<3x1x256xf32>
    %cst_25 = arith.constant 4.000000e+00 : f32
    %42 = vector.broadcast %cst_25 : f32 to vector<3x1x256xf32>
    %43 = arith.divf %41, %42 : vector<3x1x256xf32>
    %c0_26 = arith.constant 0 : index
    %c0_27 = arith.constant 0 : index
    %c0_28 = arith.constant 0 : index
    %44 = vector.load %arg7[%c0_26, %c0_27, %c0_28] : memref<3x1x256xf32, #tpu.memory_space<vmem>>, vector<3x1x256xf32>
    %45 = arith.mulf %38, %38 : vector<3x1x256xf32>
    %46 = arith.subf %43, %45 : vector<3x1x256xf32>
    %cst_29 = arith.constant 9.99999974E-6 : f32
    %47 = vector.broadcast %cst_29 : f32 to vector<3x1x256xf32>
    %48 = arith.addf %46, %47 : vector<3x1x256xf32>
    %49 = math.rsqrt %48 : vector<3x1x256xf32>
    %50 = arith.mulf %44, %49 : vector<3x1x256xf32>
    %51 = vector.broadcast %38 : vector<3x1x256xf32> to vector<3x4x256xf32>
    %52 = arith.subf %34, %51 : vector<3x4x256xf32>
    %53 = vector.broadcast %50 : vector<3x1x256xf32> to vector<3x4x256xf32>
    %54 = arith.mulf %52, %53 : vector<3x4x256xf32>
    %c0_30 = arith.constant 0 : index
    %c0_31 = arith.constant 0 : index
    %c0_32 = arith.constant 0 : index
    %55 = vector.load %arg8[%c0_30, %c0_31, %c0_32] : memref<3x1x256xf32, #tpu.memory_space<vmem>>, vector<3x1x256xf32>
    %56 = vector.broadcast %55 : vector<3x1x256xf32> to vector<3x4x256xf32>
    %57 = arith.addf %54, %56 : vector<3x4x256xf32>
    %cst_33 = arith.constant 0.000000e+00 : f32
    %58 = vector.broadcast %cst_33 : f32 to vector<3x4x256xf32>
    %59 = arith.cmpf oge, %57, %58 : vector<3x4x256xf32>
    %cst_34 = arith.constant 0.00999999977 : f32
    %60 = vector.broadcast %cst_34 : f32 to vector<3x4x256xf32>
    %61 = arith.mulf %60, %57 : vector<3x4x256xf32>
    %62 = arith.select %59, %57, %61 : vector<3x4x256xi1>, vector<3x4x256xf32>
    %63 = arith.truncf %62 : vector<3x4x256xf32> to vector<3x4x256xbf16>
    %c0_35 = arith.constant 0 : index
    %c0_36 = arith.constant 0 : index
    %c0_37 = arith.constant 0 : index
    %64 = vector.load %arg9[%c0_35, %c0_36, %c0_37] : memref<3x256x256xbf16, #tpu.memory_space<vmem>>, vector<3x256x256xbf16>
    "tpu.trace_start"() <{level = 10 : i32, message = "bnk,bkc->bnc"}> : () -> ()
    %cst_38 = arith.constant dense<0.000000e+00> : vector<3x4x256xf32>
    %65 = tpu.matmul %63, %64, %cst_38 {dimension_numbers = #tpu.dot_dimension_numbers<[2], [1], [1], [2], [0, 0, 0, 1, 1, 2], [0], [0]>} : vector<3x4x256xbf16>, vector<3x256x256xbf16>, vector<3x4x256xf32> -> vector<3x4x256xf32>
    "tpu.trace_stop"() : () -> ()
    %cst_39 = arith.constant dense<0.000000e+00> : vector<3x256xf32>
    %66 = vector.multi_reduction <add>, %65, %cst_39 [1] : vector<3x4x256xf32> to vector<3x256xf32>
    %67 = vector.shape_cast %66 : vector<3x256xf32> to vector<3x1x256xf32>
    %cst_40 = arith.constant 4.000000e+00 : f32
    %68 = vector.broadcast %cst_40 : f32 to vector<3x1x256xf32>
    %69 = arith.divf %67, %68 : vector<3x1x256xf32>
    %70 = arith.mulf %65, %65 : vector<3x4x256xf32>
    %cst_41 = arith.constant dense<0.000000e+00> : vector<3x256xf32>
    %71 = vector.multi_reduction <add>, %70, %cst_41 [1] : vector<3x4x256xf32> to vector<3x256xf32>
    %72 = vector.shape_cast %71 : vector<3x256xf32> to vector<3x1x256xf32>
    %cst_42 = arith.constant 4.000000e+00 : f32
    %73 = vector.broadcast %cst_42 : f32 to vector<3x1x256xf32>
    %74 = arith.divf %72, %73 : vector<3x1x256xf32>
    %c0_43 = arith.constant 0 : index
    %c0_44 = arith.constant 0 : index
    %c0_45 = arith.constant 0 : index
    %75 = vector.load %arg10[%c0_43, %c0_44, %c0_45] : memref<3x1x256xf32, #tpu.memory_space<vmem>>, vector<3x1x256xf32>
    %76 = arith.mulf %69, %69 : vector<3x1x256xf32>
    %77 = arith.subf %74, %76 : vector<3x1x256xf32>
    %cst_46 = arith.constant 9.99999974E-6 : f32
    %78 = vector.broadcast %cst_46 : f32 to vector<3x1x256xf32>
    %79 = arith.addf %77, %78 : vector<3x1x256xf32>
    %80 = math.rsqrt %79 : vector<3x1x256xf32>
    %81 = arith.mulf %75, %80 : vector<3x1x256xf32>
    %82 = vector.broadcast %69 : vector<3x1x256xf32> to vector<3x4x256xf32>
    %83 = arith.subf %65, %82 : vector<3x4x256xf32>
    %84 = vector.broadcast %81 : vector<3x1x256xf32> to vector<3x4x256xf32>
    %85 = arith.mulf %83, %84 : vector<3x4x256xf32>
    %c0_47 = arith.constant 0 : index
    %c0_48 = arith.constant 0 : index
    %c0_49 = arith.constant 0 : index
    %86 = vector.load %arg11[%c0_47, %c0_48, %c0_49] : memref<3x1x256xf32, #tpu.memory_space<vmem>>, vector<3x1x256xf32>
    %87 = vector.broadcast %86 : vector<3x1x256xf32> to vector<3x4x256xf32>
    %88 = arith.addf %85, %87 : vector<3x4x256xf32>
    %cst_50 = arith.constant 0.000000e+00 : f32
    %89 = vector.broadcast %cst_50 : f32 to vector<3x4x256xf32>
    %90 = arith.cmpf oge, %88, %89 : vector<3x4x256xf32>
    %cst_51 = arith.constant 0.00999999977 : f32
    %91 = vector.broadcast %cst_51 : f32 to vector<3x4x256xf32>
    %92 = arith.mulf %91, %88 : vector<3x4x256xf32>
    %93 = arith.select %90, %88, %92 : vector<3x4x256xi1>, vector<3x4x256xf32>
    %94 = arith.truncf %93 : vector<3x4x256xf32> to vector<3x4x256xbf16>
    %c0_52 = arith.constant 0 : index
    %c0_53 = arith.constant 0 : index
    %c0_54 = arith.constant 0 : index
    %95 = vector.load %arg12[%c0_52, %c0_53, %c0_54] : memref<3x256x256xbf16, #tpu.memory_space<vmem>>, vector<3x256x256xbf16>
    "tpu.trace_start"() <{level = 10 : i32, message = "bnk,bkc->bnc"}> : () -> ()
    %cst_55 = arith.constant dense<0.000000e+00> : vector<3x4x256xf32>
    %96 = tpu.matmul %94, %95, %cst_55 {dimension_numbers = #tpu.dot_dimension_numbers<[2], [1], [1], [2], [0, 0, 0, 1, 1, 2], [0], [0]>} : vector<3x4x256xbf16>, vector<3x256x256xbf16>, vector<3x4x256xf32> -> vector<3x4x256xf32>
    "tpu.trace_stop"() : () -> ()
    %cst_56 = arith.constant dense<0.000000e+00> : vector<3x256xf32>
    %97 = vector.multi_reduction <add>, %96, %cst_56 [1] : vector<3x4x256xf32> to vector<3x256xf32>
    %98 = vector.shape_cast %97 : vector<3x256xf32> to vector<3x1x256xf32>
    %cst_57 = arith.constant 4.000000e+00 : f32
    %99 = vector.broadcast %cst_57 : f32 to vector<3x1x256xf32>
    %100 = arith.divf %98, %99 : vector<3x1x256xf32>
    %101 = arith.mulf %96, %96 : vector<3x4x256xf32>
    %cst_58 = arith.constant dense<0.000000e+00> : vector<3x256xf32>
    %102 = vector.multi_reduction <add>, %101, %cst_58 [1] : vector<3x4x256xf32> to vector<3x256xf32>
    %103 = vector.shape_cast %102 : vector<3x256xf32> to vector<3x1x256xf32>
    %cst_59 = arith.constant 4.000000e+00 : f32
    %104 = vector.broadcast %cst_59 : f32 to vector<3x1x256xf32>
    %105 = arith.divf %103, %104 : vector<3x1x256xf32>
    %c0_60 = arith.constant 0 : index
    %c0_61 = arith.constant 0 : index
    %c0_62 = arith.constant 0 : index
    %106 = vector.load %arg13[%c0_60, %c0_61, %c0_62] : memref<3x1x256xf32, #tpu.memory_space<vmem>>, vector<3x1x256xf32>
    %107 = arith.mulf %100, %100 : vector<3x1x256xf32>
    %108 = arith.subf %105, %107 : vector<3x1x256xf32>
    %cst_63 = arith.constant 9.99999974E-6 : f32
    %109 = vector.broadcast %cst_63 : f32 to vector<3x1x256xf32>
    %110 = arith.addf %108, %109 : vector<3x1x256xf32>
    %111 = math.rsqrt %110 : vector<3x1x256xf32>
    %112 = arith.mulf %106, %111 : vector<3x1x256xf32>
    %113 = vector.broadcast %100 : vector<3x1x256xf32> to vector<3x4x256xf32>
    %114 = arith.subf %96, %113 : vector<3x4x256xf32>
    %115 = vector.broadcast %112 : vector<3x1x256xf32> to vector<3x4x256xf32>
    %116 = arith.mulf %114, %115 : vector<3x4x256xf32>
    %c0_64 = arith.constant 0 : index
    %c0_65 = arith.constant 0 : index
    %c0_66 = arith.constant 0 : index
    %117 = vector.load %arg14[%c0_64, %c0_65, %c0_66] : memref<3x1x256xf32, #tpu.memory_space<vmem>>, vector<3x1x256xf32>
    %118 = vector.broadcast %117 : vector<3x1x256xf32> to vector<3x4x256xf32>
    %119 = arith.addf %116, %118 : vector<3x4x256xf32>
    %cst_67 = arith.constant 0.000000e+00 : f32
    %120 = vector.broadcast %cst_67 : f32 to vector<3x4x256xf32>
    %121 = arith.cmpf oge, %119, %120 : vector<3x4x256xf32>
    %cst_68 = arith.constant 0.00999999977 : f32
    %122 = vector.broadcast %cst_68 : f32 to vector<3x4x256xf32>
    %123 = arith.mulf %122, %119 : vector<3x4x256xf32>
    %124 = arith.select %121, %119, %123 : vector<3x4x256xi1>, vector<3x4x256xf32>
    %125 = arith.truncf %124 : vector<3x4x256xf32> to vector<3x4x256xbf16>
    %c0_69 = arith.constant 0 : index
    %c0_70 = arith.constant 0 : index
    %c0_71 = arith.constant 0 : index
    %126 = vector.load %arg15[%c0_69, %c0_70, %c0_71] : memref<3x256x256xbf16, #tpu.memory_space<vmem>>, vector<3x256x256xbf16>
    "tpu.trace_start"() <{level = 10 : i32, message = "bnk,bkc->bnc"}> : () -> ()
    %cst_72 = arith.constant dense<0.000000e+00> : vector<3x4x256xf32>
    %127 = tpu.matmul %125, %126, %cst_72 {dimension_numbers = #tpu.dot_dimension_numbers<[2], [1], [1], [2], [0, 0, 0, 1, 1, 2], [0], [0]>} : vector<3x4x256xbf16>, vector<3x256x256xbf16>, vector<3x4x256xf32> -> vector<3x4x256xf32>
    "tpu.trace_stop"() : () -> ()
    %cst_73 = arith.constant dense<0.000000e+00> : vector<3x256xf32>
    %128 = vector.multi_reduction <add>, %127, %cst_73 [1] : vector<3x4x256xf32> to vector<3x256xf32>
    %129 = vector.shape_cast %128 : vector<3x256xf32> to vector<3x1x256xf32>
    %cst_74 = arith.constant 4.000000e+00 : f32
    %130 = vector.broadcast %cst_74 : f32 to vector<3x1x256xf32>
    %131 = arith.divf %129, %130 : vector<3x1x256xf32>
    %132 = arith.mulf %127, %127 : vector<3x4x256xf32>
    %cst_75 = arith.constant dense<0.000000e+00> : vector<3x256xf32>
    %133 = vector.multi_reduction <add>, %132, %cst_75 [1] : vector<3x4x256xf32> to vector<3x256xf32>
    %134 = vector.shape_cast %133 : vector<3x256xf32> to vector<3x1x256xf32>
    %cst_76 = arith.constant 4.000000e+00 : f32
    %135 = vector.broadcast %cst_76 : f32 to vector<3x1x256xf32>
    %136 = arith.divf %134, %135 : vector<3x1x256xf32>
    %c0_77 = arith.constant 0 : index
    %c0_78 = arith.constant 0 : index
    %c0_79 = arith.constant 0 : index
    %137 = vector.load %arg16[%c0_77, %c0_78, %c0_79] : memref<3x1x256xf32, #tpu.memory_space<vmem>>, vector<3x1x256xf32>
    %138 = arith.mulf %131, %131 : vector<3x1x256xf32>
    %139 = arith.subf %136, %138 : vector<3x1x256xf32>
    %cst_80 = arith.constant 9.99999974E-6 : f32
    %140 = vector.broadcast %cst_80 : f32 to vector<3x1x256xf32>
    %141 = arith.addf %139, %140 : vector<3x1x256xf32>
    %142 = math.rsqrt %141 : vector<3x1x256xf32>
    %143 = arith.mulf %137, %142 : vector<3x1x256xf32>
    %144 = vector.broadcast %131 : vector<3x1x256xf32> to vector<3x4x256xf32>
    %145 = arith.subf %127, %144 : vector<3x4x256xf32>
    %146 = vector.broadcast %143 : vector<3x1x256xf32> to vector<3x4x256xf32>
    %147 = arith.mulf %145, %146 : vector<3x4x256xf32>
    %c0_81 = arith.constant 0 : index
    %c0_82 = arith.constant 0 : index
    %c0_83 = arith.constant 0 : index
    %148 = vector.load %arg17[%c0_81, %c0_82, %c0_83] : memref<3x1x256xf32, #tpu.memory_space<vmem>>, vector<3x1x256xf32>
    %149 = vector.broadcast %148 : vector<3x1x256xf32> to vector<3x4x256xf32>
    %150 = arith.addf %147, %149 : vector<3x4x256xf32>
    %cst_84 = arith.constant 0.000000e+00 : f32
    %151 = vector.broadcast %cst_84 : f32 to vector<3x4x256xf32>
    %152 = arith.cmpf oge, %150, %151 : vector<3x4x256xf32>
    %cst_85 = arith.constant 0.00999999977 : f32
    %153 = vector.broadcast %cst_85 : f32 to vector<3x4x256xf32>
    %154 = arith.mulf %153, %150 : vector<3x4x256xf32>
    %155 = arith.select %152, %150, %154 : vector<3x4x256xi1>, vector<3x4x256xf32>
    %156 = vector.extract_strided_slice %155 {offsets = [0, 0, 0], sizes = [1, 4, 256], strides = [1, 1, 1]} : vector<3x4x256xf32> to vector<1x4x256xf32>
    %157 = vector.shape_cast %156 : vector<1x4x256xf32> to vector<4x256xf32>
    %158 = arith.truncf %157 : vector<4x256xf32> to vector<4x256xbf16>
    %c0_86 = arith.constant 0 : index
    %c0_87 = arith.constant 0 : index
    %159 = vector.load %arg18[%c0_86, %c0_87] : memref<256x96xbf16, #tpu.memory_space<vmem>>, vector<256x96xbf16>
    %cst_88 = arith.constant dense<0.000000e+00> : vector<4x96xf32>
    %160 = tpu.matmul %158, %159, %cst_88 {dimension_numbers = #tpu.dot_dimension_numbers<[1], [0], [0], [1], [0, 0, 1, 1], [], []>} : vector<4x256xbf16>, vector<256x96xbf16>, vector<4x96xf32> -> vector<4x96xf32>
    %c0_89 = arith.constant 0 : index
    %c0_90 = arith.constant 0 : index
    %161 = vector.load %arg19[%c0_89, %c0_90] : memref<1x96xf32, #tpu.memory_space<vmem>>, vector<1x96xf32>
    %162 = vector.broadcast %161 : vector<1x96xf32> to vector<4x96xf32>
    %163 = arith.addf %160, %162 : vector<4x96xf32>
    %164 = vector.extract_strided_slice %163 {offsets = [0, 0], sizes = [4, 24], strides = [1, 1]} : vector<4x96xf32> to vector<4x24xf32>
    %165 = vector.extract_strided_slice %163 {offsets = [0, 24], sizes = [4, 24], strides = [1, 1]} : vector<4x96xf32> to vector<4x24xf32>
    %166 = vector.extract_strided_slice %163 {offsets = [0, 48], sizes = [4, 24], strides = [1, 1]} : vector<4x96xf32> to vector<4x24xf32>
    %167 = vector.extract_strided_slice %163 {offsets = [0, 72], sizes = [4, 24], strides = [1, 1]} : vector<4x96xf32> to vector<4x24xf32>
    %168 = arith.mulf %164, %164 : vector<4x24xf32>
    %169 = arith.mulf %165, %165 : vector<4x24xf32>
    %170 = arith.addf %168, %169 : vector<4x24xf32>
    %171 = arith.mulf %166, %166 : vector<4x24xf32>
    %172 = arith.addf %170, %171 : vector<4x24xf32>
    %173 = math.rsqrt %172 : vector<4x24xf32>
    %174 = arith.mulf %167, %173 : vector<4x24xf32>
    %175 = tpu.iota {dimensions = array<i32: 1>} : vector<4x24xi32>
    %c0_i32 = arith.constant 0 : i32
    %176 = vector.broadcast %c0_i32 : i32 to vector<4x24xi32>
    %177 = arith.cmpi eq, %175, %176 : vector<4x24xi32>
    %cst_91 = arith.constant 6.280000e+00 : f32
    %178 = vector.broadcast %cst_91 : f32 to vector<4x24xf32>
    %179 = arith.mulf %174, %178 : vector<4x24xf32>
    %180 = arith.select %177, %179, %174 : vector<4x24xi1>, vector<4x24xf32>
    %181 = arith.mulf %164, %180 : vector<4x24xf32>
    %c0_92 = arith.constant 0 : index
    %c0_93 = arith.constant 0 : index
    %c0_94 = arith.constant 0 : index
    %182 = vector.load %arg22[%c0_92, %c0_93, %c0_94] : memref<3x4x24xf32, #tpu.memory_space<vmem>>, vector<1x4x24xf32>
    %183 = vector.shape_cast %182 : vector<1x4x24xf32> to vector<4x24xf32>
    %184 = vector.shape_cast %181 : vector<4x24xf32> to vector<1x4x24xf32>
    tpu.vector_store %arg22[%c0_92, %c0_93, %c0_94], %184 {strides = array<i32>} : memref<3x4x24xf32, #tpu.memory_space<vmem>>, vector<1x4x24xf32>,
    %185 = arith.mulf %165, %180 : vector<4x24xf32>
    %c1 = arith.constant 1 : index
    %c0_95 = arith.constant 0 : index
    %c0_96 = arith.constant 0 : index
    %186 = vector.load %arg22[%c1, %c0_95, %c0_96] : memref<3x4x24xf32, #tpu.memory_space<vmem>>, vector<1x4x24xf32>
    %187 = vector.shape_cast %186 : vector<1x4x24xf32> to vector<4x24xf32>
    %188 = vector.shape_cast %185 : vector<4x24xf32> to vector<1x4x24xf32>
    tpu.vector_store %arg22[%c1, %c0_95, %c0_96], %188 {strides = array<i32>} : memref<3x4x24xf32, #tpu.memory_space<vmem>>, vector<1x4x24xf32>,
    %189 = arith.mulf %166, %180 : vector<4x24xf32>
    %c2 = arith.constant 2 : index
    %c0_97 = arith.constant 0 : index
    %c0_98 = arith.constant 0 : index
    %190 = vector.load %arg22[%c2, %c0_97, %c0_98] : memref<3x4x24xf32, #tpu.memory_space<vmem>>, vector<1x4x24xf32>
    %191 = vector.shape_cast %190 : vector<1x4x24xf32> to vector<4x24xf32>
    %192 = vector.shape_cast %189 : vector<4x24xf32> to vector<1x4x24xf32>
    tpu.vector_store %arg22[%c2, %c0_97, %c0_98], %192 {strides = array<i32>} : memref<3x4x24xf32, #tpu.memory_space<vmem>>, vector<1x4x24xf32>,
    %193 = vector.extract_strided_slice %155 {offsets = [1, 0, 0], sizes = [1, 4, 256], strides = [1, 1, 1]} : vector<3x4x256xf32> to vector<1x4x256xf32>
    %194 = vector.shape_cast %193 : vector<1x4x256xf32> to vector<4x256xf32>
    %195 = vector.extract_strided_slice %194 {offsets = [0, 0], sizes = [4, 3], strides = [1, 1]} : vector<4x256xf32> to vector<4x3xf32>
    %196 = vector.extract_strided_slice %194 {offsets = [0, 3], sizes = [4, 3], strides = [1, 1]} : vector<4x256xf32> to vector<4x3xf32>
    %197 = vector.extract_strided_slice %194 {offsets = [0, 3], sizes = [4, 3], strides = [1, 1]} : vector<4x256xf32> to vector<4x3xf32>
    %198 = arith.mulf %196, %197 : vector<4x3xf32>
    %c0_99 = arith.constant 0 : index
    %c0_100 = arith.constant 0 : index
    %199 = vector.load %arg1[%c0_99, %c0_100] : memref<4x3xf32, #tpu.memory_space<vmem>>, vector<4x3xf32>
    %200 = arith.mulf %198, %199 : vector<4x3xf32>
    %201 = arith.addf %195, %200 : vector<4x3xf32>
    %202 = arith.mulf %201, %201 : vector<4x3xf32>
    %cst_101 = arith.constant dense<0.000000e+00> : vector<4xf32>
    %203 = vector.multi_reduction <add>, %202, %cst_101 [1] : vector<4x3xf32> to vector<4xf32>
    %204 = vector.shape_cast %203 : vector<4xf32> to vector<4x1xf32>
    %205 = math.rsqrt %204 : vector<4x1xf32>
    %206 = vector.broadcast %205 : vector<4x1xf32> to vector<4x3xf32>
    %207 = arith.mulf %201, %206 : vector<4x3xf32>
    %208 = vector.extract_strided_slice %194 {offsets = [0, 6], sizes = [4, 1], strides = [1, 1]} : vector<4x256xf32> to vector<4x1xf32>
    %209 = vector.broadcast %208 : vector<4x1xf32> to vector<4x3xf32>
    %210 = arith.mulf %207, %209 : vector<4x3xf32>
    %211 = arith.mulf %210, %210 : vector<4x3xf32>
    %cst_102 = arith.constant dense<0.000000e+00> : vector<4xf32>
    %212 = vector.multi_reduction <add>, %211, %cst_102 [1] : vector<4x3xf32> to vector<4xf32>
    %213 = vector.shape_cast %212 : vector<4xf32> to vector<4x1xf32>
    %214 = math.sqrt %213 : vector<4x1xf32>
    %cst_103 = arith.constant 5.000000e-01 : f32
    %215 = vector.broadcast %cst_103 : f32 to vector<4x1xf32>
    %216 = arith.mulf %214, %215 : vector<4x1xf32>
    %cst_104 = arith.constant 9.99999997E-7 : f32
    %217 = vector.broadcast %cst_104 : f32 to vector<4x1xf32>
    %218 = arith.cmpf olt, %214, %217 : vector<4x1xf32>
    %cst_105 = arith.constant 4.800000e+01 : f32
    %219 = vector.broadcast %cst_105 : f32 to vector<4x1xf32>
    %220 = arith.divf %213, %219 : vector<4x1xf32>
    %cst_106 = arith.constant 5.000000e-01 : f32
    %221 = vector.broadcast %cst_106 : f32 to vector<4x1xf32>
    %222 = arith.subf %221, %220 : vector<4x1xf32>
    %223 = math.sin %216 : vector<4x1xf32>
    %cst_107 = arith.constant 1.000000e+00 : f32
    %224 = vector.broadcast %cst_107 : f32 to vector<4x1xf32>
    %225 = arith.select %218, %224, %214 : vector<4x1xi1>, vector<4x1xf32>
    %226 = arith.divf %223, %225 : vector<4x1xf32>
    %227 = arith.select %218, %222, %226 : vector<4x1xi1>, vector<4x1xf32>
    %228 = math.cos %216 : vector<4x1xf32>
    %229 = vector.broadcast %227 : vector<4x1xf32> to vector<4x3xf32>
    %230 = arith.mulf %210, %229 : vector<4x3xf32>
    %231 = vector.extract_strided_slice %230 {offsets = [0, 0], sizes = [4, 1], strides = [1, 1]} : vector<4x3xf32> to vector<4x1xf32>
    %232 = vector.extract_strided_slice %230 {offsets = [0, 1], sizes = [4, 1], strides = [1, 1]} : vector<4x3xf32> to vector<4x1xf32>
    %233 = vector.extract_strided_slice %230 {offsets = [0, 2], sizes = [4, 1], strides = [1, 1]} : vector<4x3xf32> to vector<4x1xf32>
    %234 = arith.mulf %228, %228 : vector<4x1xf32>
    %235 = arith.mulf %231, %231 : vector<4x1xf32>
    %236 = arith.addf %234, %235 : vector<4x1xf32>
    %237 = arith.mulf %232, %232 : vector<4x1xf32>
    %238 = arith.addf %236, %237 : vector<4x1xf32>
    %239 = arith.mulf %233, %233 : vector<4x1xf32>
    %240 = arith.addf %238, %239 : vector<4x1xf32>
    %cst_108 = arith.constant 2.000000e+00 : f32
    %241 = vector.broadcast %cst_108 : f32 to vector<4x1xf32>
    %242 = arith.divf %241, %240 : vector<4x1xf32>
    %243 = arith.mulf %232, %232 : vector<4x1xf32>
    %244 = arith.mulf %233, %233 : vector<4x1xf32>
    %245 = arith.addf %243, %244 : vector<4x1xf32>
    %246 = arith.mulf %242, %245 : vector<4x1xf32>
    %cst_109 = arith.constant 1.000000e+00 : f32
    %247 = vector.broadcast %cst_109 : f32 to vector<4x1xf32>
    %248 = arith.subf %247, %246 : vector<4x1xf32>
    %249 = arith.mulf %231, %232 : vector<4x1xf32>
    %250 = arith.mulf %233, %228 : vector<4x1xf32>
    %251 = arith.subf %249, %250 : vector<4x1xf32>
    %252 = arith.mulf %242, %251 : vector<4x1xf32>
    %253 = arith.mulf %231, %233 : vector<4x1xf32>
    %254 = arith.mulf %232, %228 : vector<4x1xf32>
    %255 = arith.addf %253, %254 : vector<4x1xf32>
    %256 = arith.mulf %242, %255 : vector<4x1xf32>
    %257 = arith.mulf %231, %232 : vector<4x1xf32>
    %258 = arith.mulf %233, %228 : vector<4x1xf32>
    %259 = arith.addf %257, %258 : vector<4x1xf32>
    %260 = arith.mulf %242, %259 : vector<4x1xf32>
    %261 = arith.mulf %231, %231 : vector<4x1xf32>
    %262 = arith.mulf %233, %233 : vector<4x1xf32>
    %263 = arith.addf %261, %262 : vector<4x1xf32>
    %264 = arith.mulf %242, %263 : vector<4x1xf32>
    %cst_110 = arith.constant 1.000000e+00 : f32
    %265 = vector.broadcast %cst_110 : f32 to vector<4x1xf32>
    %266 = arith.subf %265, %264 : vector<4x1xf32>
    %267 = arith.mulf %232, %233 : vector<4x1xf32>
    %268 = arith.mulf %231, %228 : vector<4x1xf32>
    %269 = arith.subf %267, %268 : vector<4x1xf32>
    %270 = arith.mulf %242, %269 : vector<4x1xf32>
    %271 = arith.mulf %231, %233 : vector<4x1xf32>
    %272 = arith.mulf %232, %228 : vector<4x1xf32>
    %273 = arith.subf %271, %272 : vector<4x1xf32>
    %274 = arith.mulf %242, %273 : vector<4x1xf32>
    %275 = arith.mulf %232, %233 : vector<4x1xf32>
    %276 = arith.mulf %231, %228 : vector<4x1xf32>
    %277 = arith.addf %275, %276 : vector<4x1xf32>
    %278 = arith.mulf %242, %277 : vector<4x1xf32>
    %279 = arith.mulf %231, %231 : vector<4x1xf32>
    %280 = arith.mulf %232, %232 : vector<4x1xf32>
    %281 = arith.addf %279, %280 : vector<4x1xf32>
    %282 = arith.mulf %242, %281 : vector<4x1xf32>
    %cst_111 = arith.constant 1.000000e+00 : f32
    %283 = vector.broadcast %cst_111 : f32 to vector<4x1xf32>
    %284 = arith.subf %283, %282 : vector<4x1xf32>
    %285 = tpu.concatenate %248, %252, %256, %260, %266, %270, %274, %278, %284 in 1 : vector<4x1xf32>, vector<4x1xf32>, vector<4x1xf32>, vector<4x1xf32>, vector<4x1xf32>, vector<4x1xf32>, vector<4x1xf32>, vector<4x1xf32>, vector<4x1xf32> -> vector<4x9xf32>
    %c0_112 = arith.constant 0 : index
    %c0_113 = arith.constant 0 : index
    %286 = vector.load %arg23[%c0_112, %c0_113] : memref<4x9xf32, #tpu.memory_space<vmem>>, vector<4x9xf32>
    tpu.vector_store %arg23[%c0_112, %c0_113], %285 {strides = array<i32>} : memref<4x9xf32, #tpu.memory_space<vmem>>, vector<4x9xf32>,
    %287 = vector.extract_strided_slice %155 {offsets = [2, 0, 0], sizes = [1, 4, 256], strides = [1, 1, 1]} : vector<3x4x256xf32> to vector<1x4x256xf32>
    %288 = vector.shape_cast %287 : vector<1x4x256xf32> to vector<4x256xf32>
    %289 = arith.truncf %288 : vector<4x256xf32> to vector<4x256xbf16>
    %c0_114 = arith.constant 0 : index
    %c0_115 = arith.constant 0 : index
    %290 = vector.load %arg20[%c0_114, %c0_115] : memref<256x3xbf16, #tpu.memory_space<vmem>>, vector<256x3xbf16>
    %cst_116 = arith.constant dense<0.000000e+00> : vector<4x3xf32>
    %291 = tpu.matmul %289, %290, %cst_116 {dimension_numbers = #tpu.dot_dimension_numbers<[1], [0], [0], [1], [0, 0, 1, 1], [], []>} : vector<4x256xbf16>, vector<256x3xbf16>, vector<4x3xf32> -> vector<4x3xf32>
    %c0_117 = arith.constant 0 : index
    %c0_118 = arith.constant 0 : index
    %292 = vector.load %arg21[%c0_117, %c0_118] : memref<1x3xf32, #tpu.memory_space<vmem>>, vector<1x3xf32>
    %293 = vector.broadcast %292 : vector<1x3xf32> to vector<4x3xf32>
    %294 = arith.addf %291, %293 : vector<4x3xf32>
    %295 = tpu.iota {dimensions = array<i32: 1>} : vector<4x3xi32>
    %c2_i32 = arith.constant 2 : i32
    %296 = vector.broadcast %c2_i32 : i32 to vector<4x3xi32>
    %297 = arith.cmpi eq, %295, %296 : vector<4x3xi32>
    %298 = arith.mulf %294, %294 : vector<4x3xf32>
    %299 = arith.select %297, %298, %294 : vector<4x3xi1>, vector<4x3xf32>
    %c0_119 = arith.constant 0 : index
    %c0_120 = arith.constant 0 : index
    %300 = vector.load %arg24[%c0_119, %c0_120] : memref<4x3xf32, #tpu.memory_space<vmem>>, vector<4x3xf32>
    tpu.vector_store %arg24[%c0_119, %c0_120], %299 {strides = array<i32>} : memref<4x3xf32, #tpu.memory_space<vmem>>, vector<4x3xf32>,
    %c0_121 = arith.constant 0 : index
    %c0_122 = arith.constant 0 : index
    %c0_123 = arith.constant 0 : index
    %301 = vector.load %arg2[%c0_121, %c0_122, %c0_123] : memref<3x4x16xf32, #tpu.memory_space<vmem>>, vector<3x4x16xf32>
    %302 = vector.extract_strided_slice %301 {offsets = [0, 0, 0], sizes = [3, 4, 1], strides = [1, 1, 1]} : vector<3x4x16xf32> to vector<3x4x1xf32>
    %303 = vector.broadcast %302 : vector<3x4x1xf32> to vector<3x4x16xf32>
    %304 = arith.subf %301, %303 : vector<3x4x16xf32>
    %305 = vector.extract_strided_slice %304 {offsets = [0, 0, 0], sizes = [1, 4, 16], strides = [1, 1, 1]} : vector<3x4x16xf32> to vector<1x4x16xf32>
    %306 = vector.shape_cast %305 : vector<1x4x16xf32> to vector<4x16xf32>
    %307 = vector.extract_strided_slice %304 {offsets = [1, 0, 0], sizes = [1, 4, 16], strides = [1, 1, 1]} : vector<3x4x16xf32> to vector<1x4x16xf32>
    %308 = vector.shape_cast %307 : vector<1x4x16xf32> to vector<4x16xf32>
    %309 = vector.extract_strided_slice %304 {offsets = [2, 0, 0], sizes = [1, 4, 16], strides = [1, 1, 1]} : vector<3x4x16xf32> to vector<1x4x16xf32>
    %310 = vector.shape_cast %309 : vector<1x4x16xf32> to vector<4x16xf32>
    %311 = vector.broadcast %248 : vector<4x1xf32> to vector<4x16xf32>
    %312 = arith.mulf %311, %306 : vector<4x16xf32>
    %313 = vector.broadcast %252 : vector<4x1xf32> to vector<4x16xf32>
    %314 = arith.mulf %313, %308 : vector<4x16xf32>
    %315 = arith.addf %312, %314 : vector<4x16xf32>
    %316 = vector.broadcast %256 : vector<4x1xf32> to vector<4x16xf32>
    %317 = arith.mulf %316, %310 : vector<4x16xf32>
    %318 = arith.addf %315, %317 : vector<4x16xf32>
    %319 = vector.extract_strided_slice %299 {offsets = [0, 0], sizes = [4, 1], strides = [1, 1]} : vector<4x3xf32> to vector<4x1xf32>
    %320 = vector.broadcast %319 : vector<4x1xf32> to vector<4x16xf32>
    %321 = arith.addf %318, %320 : vector<4x16xf32>
    %c0_124 = arith.constant 0 : index
    %c0_125 = arith.constant 0 : index
    %c0_126 = arith.constant 0 : index
    %322 = vector.load %arg25[%c0_124, %c0_125, %c0_126] : memref<3x4x16xf32, #tpu.memory_space<vmem>>, vector<1x4x16xf32>
    %323 = vector.shape_cast %322 : vector<1x4x16xf32> to vector<4x16xf32>
    %324 = vector.shape_cast %321 : vector<4x16xf32> to vector<1x4x16xf32>
    tpu.vector_store %arg25[%c0_124, %c0_125, %c0_126], %324 {strides = array<i32>} : memref<3x4x16xf32, #tpu.memory_space<vmem>>, vector<1x4x16xf32>,
    %325 = vector.broadcast %260 : vector<4x1xf32> to vector<4x16xf32>
    %326 = arith.mulf %325, %306 : vector<4x16xf32>
    %327 = vector.broadcast %266 : vector<4x1xf32> to vector<4x16xf32>
    %328 = arith.mulf %327, %308 : vector<4x16xf32>
    %329 = arith.addf %326, %328 : vector<4x16xf32>
    %330 = vector.broadcast %270 : vector<4x1xf32> to vector<4x16xf32>
    %331 = arith.mulf %330, %310 : vector<4x16xf32>
    %332 = arith.addf %329, %331 : vector<4x16xf32>
    %333 = vector.extract_strided_slice %299 {offsets = [0, 1], sizes = [4, 1], strides = [1, 1]} : vector<4x3xf32> to vector<4x1xf32>
    %334 = vector.broadcast %333 : vector<4x1xf32> to vector<4x16xf32>
    %335 = arith.addf %332, %334 : vector<4x16xf32>
    %c1_127 = arith.constant 1 : index
    %c0_128 = arith.constant 0 : index
    %c0_129 = arith.constant 0 : index
    %336 = vector.load %arg25[%c1_127, %c0_128, %c0_129] : memref<3x4x16xf32, #tpu.memory_space<vmem>>, vector<1x4x16xf32>
    %337 = vector.shape_cast %336 : vector<1x4x16xf32> to vector<4x16xf32>
    %338 = vector.shape_cast %335 : vector<4x16xf32> to vector<1x4x16xf32>
    tpu.vector_store %arg25[%c1_127, %c0_128, %c0_129], %338 {strides = array<i32>} : memref<3x4x16xf32, #tpu.memory_space<vmem>>, vector<1x4x16xf32>,
    %339 = vector.broadcast %274 : vector<4x1xf32> to vector<4x16xf32>
    %340 = arith.mulf %339, %306 : vector<4x16xf32>
    %341 = vector.broadcast %278 : vector<4x1xf32> to vector<4x16xf32>
    %342 = arith.mulf %341, %308 : vector<4x16xf32>
    %343 = arith.addf %340, %342 : vector<4x16xf32>
    %344 = vector.broadcast %284 : vector<4x1xf32> to vector<4x16xf32>
    %345 = arith.mulf %344, %310 : vector<4x16xf32>
    %346 = arith.addf %343, %345 : vector<4x16xf32>
    %347 = vector.extract_strided_slice %299 {offsets = [0, 2], sizes = [4, 1], strides = [1, 1]} : vector<4x3xf32> to vector<4x1xf32>
    %348 = vector.broadcast %347 : vector<4x1xf32> to vector<4x16xf32>
    %349 = arith.addf %346, %348 : vector<4x16xf32>
    %c2_130 = arith.constant 2 : index
    %c0_131 = arith.constant 0 : index
    %c0_132 = arith.constant 0 : index
    %350 = vector.load %arg25[%c2_130, %c0_131, %c0_132] : memref<3x4x16xf32, #tpu.memory_space<vmem>>, vector<1x4x16xf32>
    %351 = vector.shape_cast %350 : vector<1x4x16xf32> to vector<4x16xf32>
    %352 = vector.shape_cast %349 : vector<4x16xf32> to vector<1x4x16xf32>
    tpu.vector_store %arg25[%c2_130, %c0_131, %c0_132], %352 {strides = array<i32>} : memref<3x4x16xf32, #tpu.memory_space<vmem>>, vector<1x4x16xf32>,
    return
  }
}

</mosaic_0001>

<bundles_post_ra>
// kernel: _pose_generator_forward.3
= control target key start
LH: loop header
LB: loop body
LE: loop exit
PB: predicated region body
PF: predicated region fallthrough
CT: control target
= control target key end

     0   :  { %s8210_s0 = inlined_call_operand.vmem [shape: f32[3,4,72], index: 0, kind: input, shape index: {}]   ;;  %s8211_s1 = inlined_call_operand.vmem [shape: f32[4,3], index: 1, kind: input, shape index: {}]   ;;  %s8212_s2 = inlined_call_operand.vmem [shape: f32[3,4,16], index: 2, kind: input, shape index: {}]   ;;  %s8213_s3 = inlined_call_operand.vmem [shape: bf16[3,72,256], index: 3, kind: input, shape index: {}]   ;;  %s8214_s4 = inlined_call_operand.vmem [shape: f32[3,1,256], index: 4, kind: input, shape index: {}]   ;;  %s8215_s5 = inlined_call_operand.vmem [shape: f32[3,1,256], index: 5, kind: input, shape index: {}]   ;;  %s8216_s6 = inlined_call_operand.hbm [shape: bf16[3,256,256], index: 6, kind: input, shape index: {}]   ;;  %s8217_s7 = inlined_call_operand.vmem [shape: f32[3,1,256], index: 7, kind: input, shape index: {}]   ;;  %s8218_s8 = inlined_call_operand.vmem [shape: f32[3,1,256], index: 8, kind: input, shape index: {}]   ;;  %s8219_s9 = inlined_call_operand.hbm [shape: bf16[3,256,256], index: 9, kind: input, shape index: {}]   ;;  %s8220_s10 = inlined_call_operand.vmem [shape: f32[3,1,256], index: 10, kind: input, shape index: {}]   ;;  %s8221_s11 = inlined_call_operand.vmem [shape: f32[3,1,256], index: 11, kind: input, shape index: {}]   ;;  %s8222_s12 = inlined_call_operand.hbm [shape: bf16[3,256,256], index: 12, kind: input, shape index: {}]   ;;  %s8223_s13 = inlined_call_operand.vmem [shape: f32[3,1,256], index: 13, kind: input, shape index: {}]   ;;  %s8224_s14 = inlined_call_operand.vmem [shape: f32[3,1,256], index: 14, kind: input, shape index: {}]   ;;  %s8225_s15 = inlined_call_operand.hbm [shape: bf16[3,256,256], index: 15, kind: input, shape index: {}]   ;;  %s8226_s16 = inlined_call_operand.vmem [shape: f32[3,1,256], index: 16, kind: input, shape index: {}]   ;;  %s8227_s17 = inlined_call_operand.vmem [shape: f32[3,1,256], index: 17, kind: input, shape index: {}]   ;;  %s8228_s18 = inlined_call_operand.vmem [shape: bf16[256,96], index: 18, kind: input, shape index: {}]   ;;  %s8229_s19 = inlined_call_operand.vmem [shape: f32[1,96], index: 19, kind: input, shape index: {}]   ;;  %s8230_s20 = inlined_call_operand.vmem [shape: bf16[256,3], index: 20, kind: input, shape index: {}]   ;;  %s8231_s21 = inlined_call_operand.vmem [shape: f32[1,3], index: 21, kind: input, shape index: {}]   ;;  %s8232_s22 = inlined_call_operand.hbm [shape: f32[3,4,24], index: 22, kind: output, shape index: {0}]   ;;  %s8233_s23 = inlined_call_operand.vmem [shape: f32[4,9], index: 23, kind: output, shape index: {1}]   ;;  %s8234_s24 = inlined_call_operand.hbm [shape: f32[4,3], index: 24, kind: output, shape index: {2}]   ;;  %s8235_s25 = inlined_call_operand.hbm [shape: f32[3,4,16], index: 25, kind: output, shape index: {3}]  }
   0x1   :  { %8246 = sst [smem:[#allocation19_spill]] %s8210_s0 }
   0x2   :  { %8247 = sst [smem:[#allocation20_spill]] %s8211_s1 }
   0x3   :  { %8248 = sst [smem:[#allocation21_spill]] %s8212_s2 }
   0x4   :  { %8249 = sst [smem:[#allocation22_spill]] %s8213_s3 }
   0x5   :  { %8250 = sst [smem:[#allocation23_spill]] %s8214_s4 }
   0x6   :  { %8251 = sst [smem:[#allocation24_spill]] %s8215_s5 }
   0x7   :  { %8252 = sst [smem:[#allocation25_spill]] %s8216_s6 }
   0x8   :  { %8253 = sst [smem:[#allocation26_spill]] %s8217_s7 }
   0x9   :  { %8254 = sst [smem:[#allocation27_spill]] %s8218_s8 }
   0xa   :  { %8255 = sst [smem:[#allocation28_spill]] %s8219_s9 }
   0xb   :  { %8256 = sst [smem:[#allocation29_spill]] %s8233_s23 }
   0xc   :  { %8257 = sst [smem:[#allocation30_spill]] %s8235_s25 }
   0xd   :  { %31 = vsyncpa [#allocation3], 0 }
   0xe   :  { %32 = vsyncpa [#allocation6], 0 }
   0xf   :  { %33 = vsyncpa [#allocation9], 0 }
  0x10   :  { %34 = vsyncpa [#allocation4], 0 }
  0x11   :  { %35 = vsyncpa [#allocation12], 0  ;;  %s7082_s29 = smov [#allocation5]   ;;  %s7083_s6 = smov [#allocation2]  }
  0x12   :  { %s69_s2 = sshll.u32 %s7082_s29, 4  ;;  %s53_s30 = sshll.u32 %s7083_s6, 4  ;;  %s70_s2 = int_to_ptr.vmem [resolvable:$true] %s69_s2  ;;  %s7249_s30 = int_to_ptr.vmem [resolvable:$true] %s53_s30 }
  0x13   :  { %s8258_s26 = sld [smem:[#allocation28_spill]] }
  0x19   :  { %s6918_s1 = scalar_lea.hbm %s8258_s26, 12288 }
  0x1a   :  { %p6919_p0 = scmp.ne.s32.totalorder %s8258_s26, %s6918_s1  ;;  %p6922_p1 = scmp.lt.u32.totalorder %s6918_s1, %s8258_s26 }
  0x1c   :  { %p6924_p2 = pnand %p6922_p1, %p6919_p0 }
  0x1e   :  { %6927 = shalt.err (!%p6924_p2)
}
  0x1f   :  { %s6928_s9 = scalar_lea.vmem %s70_s2, 12288  ;;  %p6933_p4 = scmp.lt.s32.totalorder %s70_s2, %s70_s2 }
  0x20   :  { %p6929_p3 = scmp.ne.s32.totalorder %s70_s2, %s6928_s9  ;;  %p6934_p5 = scmp.lt.s32.totalorder %s6928_s9, %s6928_s9 }
  0x22   :  { %p6935_p6 = por %p6934_p5, %p6933_p4 }
  0x24   :  { %p6936_p7 = pnand %p6935_p6, %p6929_p3 }
  0x26   :  { %6939 = shalt.err (!%p6936_p7)
}
  0x27   :  { %s7084_s5 = smov 128   ;;  %s7085_s0 = smov 8  }
  0x28   :  { %75 = dma.hbm_to_vmem [thread:$0]  %s8258_s26, 12288, %s70_s2, [#allocation6], %s7084_s5, %s7084_s5, %s7085_s0  }
  0x29   :  { %s8259_s1 = sld [smem:[#allocation25_spill]] }
  0x2f   :  { %s6940_s8 = scalar_lea.hbm %s8259_s1, 12288 }
  0x30   :  { %p6941_p8 = scmp.ne.s32.totalorder %s8259_s1, %s6940_s8  ;;  %p6944_p9 = scmp.lt.u32.totalorder %s6940_s8, %s8259_s1 }
  0x32   :  { %p6946_p10 = pnand %p6944_p9, %p6941_p8 }
  0x34   :  { %6949 = shalt.err (!%p6946_p10)
}
  0x35   :  { %s6950_s23 = scalar_lea.vmem %s7249_s30, 12288  ;;  %p6955_p12 = scmp.lt.s32.totalorder %s7249_s30, %s7249_s30 }
  0x36   :  { %p6951_p11 = scmp.ne.s32.totalorder %s7249_s30, %s6950_s23  ;;  %p6956_p13 = scmp.lt.s32.totalorder %s6950_s23, %s6950_s23 }
  0x38   :  { %p6957_p0 = por %p6956_p13, %p6955_p12 }
  0x3a   :  { %p6958_p1 = pnand %p6957_p0, %p6951_p11 }
  0x3c   :  { %6961 = shalt.err (!%p6958_p1)
}
  0x3d   :  { %59 = dma.hbm_to_vmem [thread:$0]  %s8259_s1, 12288, %s7249_s30, [#allocation3], %s7084_s5, %s7084_s5, %s7085_s0  }
  0x3e   :  { %s7086_s29 = smov [#allocation7]   ;;  %s7087_s7 = smov [#allocation8]  }
  0x3f   :  { %s85_s6 = sshll.u32 %s7086_s29, 4  ;;  %s101_s3 = sshll.u32 %s7087_s7, 4  ;;  %s86_s6 = int_to_ptr.vmem [resolvable:$true] %s85_s6  ;;  %s7286_s3 = int_to_ptr.vmem [resolvable:$true] %s101_s3 }
  0x40   :  { %s6962_s27 = scalar_lea.hbm %s8222_s12, 12288 }
  0x41   :  { %p6963_p2 = scmp.ne.s32.totalorder %s8222_s12, %s6962_s27  ;;  %p6966_p3 = scmp.lt.u32.totalorder %s6962_s27, %s8222_s12 }
  0x43   :  { %p6968_p4 = pnand %p6966_p3, %p6963_p2 }
  0x45   :  { %6971 = shalt.err (!%p6968_p4)
}
  0x46   :  { %s6972_s30 = scalar_lea.vmem %s86_s6, 12288  ;;  %p6977_p6 = scmp.lt.s32.totalorder %s86_s6, %s86_s6 }
  0x47   :  { %p6973_p5 = scmp.ne.s32.totalorder %s86_s6, %s6972_s30  ;;  %p6978_p7 = scmp.lt.s32.totalorder %s6972_s30, %s6972_s30 }
  0x49   :  { %p6979_p8 = por %p6978_p7, %p6977_p6 }
  0x4b   :  { %p6980_p9 = pnand %p6979_p8, %p6973_p5 }
  0x4d   :  { %6983 = shalt.err (!%p6980_p9)
}
  0x4e   :  { %91 = dma.hbm_to_vmem [thread:$0]  %s8222_s12, 12288, %s86_s6, [#allocation6], %s7084_s5, %s7084_s5, %s7085_s0  }
  0x4f   :  { %s6984_s25 = scalar_lea.hbm %s8225_s15, 12288 }
  0x50   :  { %p6985_p10 = scmp.ne.s32.totalorder %s8225_s15, %s6984_s25  ;;  %p6988_p11 = scmp.lt.u32.totalorder %s6984_s25, %s8225_s15 }
  0x52   :  { %p6990_p12 = pnand %p6988_p11, %p6985_p10 }
  0x54   :  { %6993 = shalt.err (!%p6990_p12)
}
  0x55   :  { %s6994_s4 = scalar_lea.vmem %s7286_s3, 12288  ;;  %p6999_p0 = scmp.lt.s32.totalorder %s7286_s3, %s7286_s3 }
  0x56   :  { %p6995_p13 = scmp.ne.s32.totalorder %s7286_s3, %s6994_s4  ;;  %p7000_p1 = scmp.lt.s32.totalorder %s6994_s4, %s6994_s4 }
  0x58   :  { %p7001_p2 = por %p7000_p1, %p6999_p0 }
  0x5a   :  { %p7002_p3 = pnand %p7001_p2, %p6995_p13 }
  0x5c   :  { %7005 = shalt.err (!%p7002_p3)
}
  0x5d   :  { %107 = dma.hbm_to_vmem [thread:$0]  %s8225_s15, 12288, %s7286_s3, [#allocation9], %s7084_s5, %s7084_s5, %s7085_s0  }
  0x5e   :  { %7072 = dma.done.wait [#allocation3], 12288  }
  0x5f   :  { %7073 = vsyncadd [#allocation3], 4294955008 }
  0x60   :  { %7074 = dma.done.wait [#allocation6], 24576  }
  0x61   :  { %7075 = vsyncadd [#allocation6], 4294942720 }
  0x62   :  { %7076 = dma.done.wait [#allocation9], 12288  }
  0x63   :  { %7077 = vsyncadd [#allocation9], 4294955008  ;;  %v7088_v0 = vmov 0   ;;  %s8260_s30 = sld [smem:[#allocation22_spill]]  ;;  %vm215_vm0 = vcmask 1043456   ;;  %s8261_s15 = sld [smem:[#allocation19_spill]] }
  0x64   :  { %254 = vmatprep.mubr.bf16.mxu0 %v7088_v0  ;;  %349 = vmatprep.mubr.bf16.mxu1 %v7088_v0  ;;  %v6238_v30 = vld [vmem:[#allocation2 + $0x4] ss:$8 sps:$4 sm:$0xff]   ;;  %vm211_vm1 = vcmask 588800   ;;  %v6236_v33 = vld [vmem:[#allocation2] ss:$8 sps:$4 sm:$0xff]   ;;  %s8262_s8 = sld [smem:[#allocation23_spill]] }
  0x65   :  { %v6244_v34 = vld [vmem:[#allocation2 + $0x14] ss:$8 sps:$4 sm:$0xff]   ;;  %v6242_v37 = vld [vmem:[#allocation2 + $0x10] ss:$8 sps:$4 sm:$0xff]   ;;  %v6250_v38 = vld [vmem:[#allocation2 + $0x24] ss:$8 sps:$4 sm:$0xff]  }
  0x66   :  { %v6248_v41 = vld [vmem:[#allocation2 + $0x20] ss:$8 sps:$4 sm:$0xff]   ;;  %v6241_v47 = vld [vmem:[#allocation2 + $0x104] ss:$8 sps:$4 sm:$0xff]   ;;  %v6247_v51 = vld [vmem:[#allocation2 + $0x114] ss:$8 sps:$4 sm:$0xff]  }
  0x67   :  { %v6239_v49 = vld [vmem:[#allocation2 + $0x100] ss:$8 sps:$4 sm:$0xff]   ;;  %v6245_v52 = vld [vmem:[#allocation2 + $0x110] ss:$8 sps:$4 sm:$0xff]   ;;  %v6253_v53 = vld [vmem:[#allocation2 + $0x124] ss:$8 sps:$4 sm:$0xff]  }
  0x68   :  { %v6251_v54 = vld [vmem:[#allocation2 + $0x120] ss:$8 sps:$4 sm:$0xff]   ;;  %v6256_v55 = vld [vmem:[#allocation2 + $0x34] ss:$8 sps:$4 sm:$0xff]   ;;  %v6254_v56 = vld [vmem:[#allocation2 + $0x30] ss:$8 sps:$4 sm:$0xff]  }
  0x69   :  { %v6194_v1 = vld [vmem:[%s8260_s30 + $0x4] ss:$8 sps:$4 sm:$0xff]   ;;  %v6198_v3 = vld [vmem:[%s8260_s30] ss:$8 sps:$4 sm:$0xff]   ;;  %v6200_v5 = vld [vmem:[%s8260_s30 + $0x14] ss:$8 sps:$4 sm:$0xff]  }
  0x6a   :  { %v6196_v2 = vld [vmem:[%s8260_s30 + $0x4c] ss:$8 sps:$4 sm:$0xff]   ;;  %222 = vmatprep.subr.bf16.mxu0 %v6194_v1  ;;  %v6199_v4 = vld [vmem:[%s8260_s30 + $0x48] ss:$8 sps:$4 sm:$0xff]   ;;  %v6202_v6 = vld [vmem:[%s8260_s30 + $0x5c] ss:$8 sps:$4 sm:$0xff]  }
  0x6b   :  { %317 = vmatprep.subr.bf16.mxu1 %v6196_v2  ;;  %223 = vmatpush1.bf16.msra.mxu0 %v6198_v3  ;;  %v6204_v7 = vld [vmem:[%s8260_s30 + $0x10] ss:$8 sps:$4 sm:$0xff]   ;;  %v6206_v9 = vld [vmem:[%s8260_s30 + $0x24] ss:$8 sps:$4 sm:$0xff]   ;;  %v6210_v11 = vld [vmem:[%s8260_s30 + $0x20] ss:$8 sps:$4 sm:$0xff]  }
  0x6c   :  { %318 = vmatpush1.bf16.msra.mxu1 %v6199_v4  ;;  %224 = vmatprep.subr.bf16.mxu0 %v6200_v5  ;;  %v6205_v8 = vld [vmem:[%s8260_s30 + $0x58] ss:$8 sps:$4 sm:$0xff]   ;;  %v6208_v10 = vld [vmem:[%s8260_s30 + $0x6c] ss:$8 sps:$4 sm:$0xff]   ;;  %v6211_v12 = vld [vmem:[%s8260_s30 + $0x68] ss:$8 sps:$4 sm:$0xff]  }
  0x6d   :  { %319 = vmatprep.subr.bf16.mxu1 %v6202_v6  ;;  %v6212_v13 = vld [vmem:[%s8260_s30 + $0x34] ss:$8 sps:$4 sm:$0xff]   ;;  %v147_v15 = vld [vmem:[%s8260_s30 + $0x40] sm:$0xff]  ;;  %v6216_v16 = vld [vmem:[%s8260_s30 + $0x30] ss:$8 sps:$4 sm:$0xff]   ;;  %s8263_s4 = sld [smem:[#allocation24_spill]] }
  0x6e   :  { %v6214_v14 = vld [vmem:[%s8260_s30 + $0x7c] ss:$8 sps:$4 sm:$0xff]   ;;  %v156_v17 = vld [vmem:[%s8260_s30 + $0x88] sm:$0xff]  ;;  %v6217_v18 = vld [vmem:[%s8260_s30 + $0x78] ss:$8 sps:$4 sm:$0xff]   ;;  %v5649_v19 = vcombine.high %v147_v15, %v147_v15  ;;  %v5648_v21 = vcombine.low %v147_v15, %v147_v15  ;;  %s8264_s25 = sld [smem:[#allocation26_spill]] }
  0x6f   :  { %225 = vmatpush1.bf16.msra.mxu0 %v6204_v7  ;;  %v5661_v20 = vcombine.high %v156_v17, %v156_v17  ;;  %v5660_v22 = vcombine.low %v156_v17, %v156_v17  ;;  %v133_v23 = vld [vmem:[%s8261_s15] sm:$0xf]  ;;  %v134_v24 = vld [vmem:[%s8261_s15 + $0x4] sm:$0xf]  ;;  %v6224_v27 = vld [vmem:[%s8260_s30 + $0x94] ss:$8 sps:$4 sm:$0xff]  }
  0x70   :  { %320 = vmatpush1.bf16.msra.mxu1 %v6205_v8  ;;  %226 = vmatprep.subr.bf16.mxu0 %v6206_v9  ;;  %v217_v25 = vsel %vm215_vm0, %v5648_v21, 0  ;;  %v136_v28 = vpack.c.bf16 %v133_v23, %v133_v23  ;;  %v137_v29 = vpack.c.bf16 %v134_v24, %v134_v24  ;;  %v6222_v31 = vld [vmem:[%s8260_s30 + $0x90] ss:$8 sps:$4 sm:$0xff]   ;;  %v6227_v32 = vld [vmem:[%s8260_s30 + $0xa4] ss:$8 sps:$4 sm:$0xff]   ;;  %s8266_s27 = sld [smem:[#allocation20_spill]] }
  0x71   :  { %321 = vmatprep.subr.bf16.mxu1 %v6208_v10  ;;  %v312_v26 = vsel %vm215_vm0, %v5660_v22, 0  ;;  %v6225_v35 = vld [vmem:[%s8260_s30 + $0xa0] ss:$8 sps:$4 sm:$0xff]   ;;  %v6230_v36 = vld [vmem:[%s8260_s30 + $0xb4] ss:$8 sps:$4 sm:$0xff]   ;;  %s7093_s28 = smov 104  }
  0x72   :  { %v6228_v39 = vld [vmem:[%s8260_s30 + $0xb0] ss:$8 sps:$4 sm:$0xff]   ;;  %v6233_v40 = vld [vmem:[%s8260_s30 + $0xc4] ss:$8 sps:$4 sm:$0xff]   ;;  %v6231_v43 = vld [vmem:[%s8260_s30 + $0xc0] ss:$8 sps:$4 sm:$0xff]  }
  0x73   :  { %227 = vmatpush1.bf16.msra.mxu0 %v6210_v11  ;;  %v165_v42 = vld [vmem:[%s8260_s30 + $0xd0] sm:$0xff]  ;;  %v135_v46 = vld [vmem:[%s8261_s15 + $0x8] sm:$0xf]  ;;  %v6262_v59 = vld [vmem:[#allocation2 + $0x44] ss:$8 sps:$4 sm:$0xff]   ;;  %s8265_s15 = sld [smem:[#allocation27_spill]] }
  0x74   :  { %322 = vmatpush1.bf16.msra.mxu1 %v6211_v12  ;;  %228 = vmatprep.subr.bf16.mxu0 %v6212_v13  ;;  %v5673_v44 = vcombine.high %v165_v42, %v165_v42  ;;  %v5672_v45 = vcombine.low %v165_v42, %v165_v42  ;;  %v138_v50 = vpack.c.bf16 %v135_v46, %v135_v46  ;;  %v6259_v57 = vld [vmem:[#allocation2 + $0x134] ss:$8 sps:$4 sm:$0xff]   ;;  %v6257_v58 = vld [vmem:[#allocation2 + $0x130] ss:$8 sps:$4 sm:$0xff]   ;;  %v6260_v60 = vld [vmem:[#allocation2 + $0x40] ss:$8 sps:$4 sm:$0xff]  }
  0x75   :  { %323 = vmatprep.subr.bf16.mxu1 %v6214_v14  ;;  %v6265_v61 = vld [vmem:[#allocation2 + $0x144] ss:$8 sps:$4 sm:$0xff]   ;;  %v6263_v62 = vld [vmem:[#allocation2 + $0x140] ss:$8 sps:$4 sm:$0xff]   ;;  %v6268_v63 = vld [vmem:[#allocation2 + $0x54] ss:$8 sps:$4 sm:$0xff]  }
  0x76   :  { %v407_v48 = vsel %vm215_vm0, %v5672_v45, 0  ;;  %v6266_v1 = vld [vmem:[#allocation2 + $0x50] ss:$8 sps:$4 sm:$0xff]   ;;  %v6271_v2 = vld [vmem:[#allocation2 + $0x154] ss:$8 sps:$4 sm:$0xff]   ;;  %s7094_s9 = smov 80  }
  0x77   :  { %229 = vmatpush1.bf16.msra.mxu0 %v6216_v16  ;;  %v6269_v3 = vld [vmem:[#allocation2 + $0x150] ss:$8 sps:$4 sm:$0xff]   ;;  %v6274_v4 = vld [vmem:[#allocation2 + $0x64] ss:$8 sps:$4 sm:$0xff]   ;;  %v6272_v5 = vld [vmem:[#allocation2 + $0x60] ss:$8 sps:$4 sm:$0xff]  }
  0x78   :  { %324 = vmatpush1.bf16.msra.mxu1 %v6217_v18  ;;  %5650 = vmatprep.subr.msk.bf16.mxu0 %vm215_vm0, %v5649_v19  ;;  %v6277_v6 = vld [vmem:[#allocation2 + $0x164] ss:$8 sps:$4 sm:$0xff]   ;;  %v6275_v7 = vld [vmem:[#allocation2 + $0x160] ss:$8 sps:$4 sm:$0xff]   ;;  %v6280_v8 = vld [vmem:[#allocation2 + $0x74] ss:$8 sps:$4 sm:$0xff]  }
  0x79   :  { %5662 = vmatprep.subr.msk.bf16.mxu1 %vm215_vm0, %v5661_v20  ;;  %v6278_v9 = vld [vmem:[#allocation2 + $0x70] ss:$8 sps:$4 sm:$0xff]   ;;  %v6283_v10 = vld [vmem:[#allocation2 + $0x174] ss:$8 sps:$4 sm:$0xff]   ;;  %v6286_v12 = vld [vmem:[#allocation2 + $0x84] ss:$8 sps:$4 sm:$0xff]  }
  0x7a   :  { %v6281_v11 = vld [vmem:[#allocation2 + $0x170] ss:$8 sps:$4 sm:$0xff]   ;;  %v6284_v13 = vld [vmem:[#allocation2 + $0x80] ss:$8 sps:$4 sm:$0xff]   ;;  %v6289_v14 = vld [vmem:[#allocation2 + $0x184] ss:$8 sps:$4 sm:$0xff]  }
  0x7b   :  { %231 = vmatpush1.bf16.msra.mxu0 %v217_v25  ;;  %v6287_v15 = vld [vmem:[#allocation2 + $0x180] ss:$8 sps:$4 sm:$0xff]   ;;  %v6292_v16 = vld [vmem:[#allocation2 + $0x94] ss:$8 sps:$4 sm:$0xff]   ;;  %v6290_v17 = vld [vmem:[#allocation2 + $0x90] ss:$8 sps:$4 sm:$0xff]  }
  0x7c   :  { %326 = vmatpush1.bf16.msra.mxu1 %v312_v26  ;;  %412 = vmatprep.subr.bf16.mxu0 %v6224_v27  ;;  %v6295_v18 = vld [vmem:[#allocation2 + $0x194] ss:$8 sps:$4 sm:$0xff]   ;;  %v6293_v19 = vld [vmem:[#allocation2 + $0x190] ss:$8 sps:$4 sm:$0xff]   ;;  %v6298_v20 = vld [vmem:[#allocation2 + $0xa4] ss:$8 sps:$4 sm:$0xff]  }
  0x7d   :  { %1007 = vmatprep.subr.bf16.mxu1 %v6238_v30  ;;  %v6296_v21 = vld [vmem:[#allocation2 + $0xa0] ss:$8 sps:$4 sm:$0xff]   ;;  %v6301_v22 = vld [vmem:[#allocation2 + $0x1a4] ss:$8 sps:$4 sm:$0xff]   ;;  %v6304_v24 = vld [vmem:[#allocation2 + $0xb4] ss:$8 sps:$4 sm:$0xff]  }
  0x7e   :  { %5651 = vmatmul.mubr.msk.bf16.vlgmr.msra.gmra.mrb[0].mxu0 %vm211_vm1, %v136_v28  ;;  %v6299_v23 = vld [vmem:[#allocation2 + $0x1a0] ss:$8 sps:$4 sm:$0xff]   ;;  %v6302_v25 = vld [vmem:[#allocation2 + $0xb0] ss:$8 sps:$4 sm:$0xff]   ;;  %v6307_v26 = vld [vmem:[#allocation2 + $0x1b4] ss:$8 sps:$4 sm:$0xff]  }
  0x7f   :  { %5663 = vmatmul.mubr.msk.bf16.vlgmr.msra.gmra.mrb[0].mxu1 %vm211_vm1, %v137_v29  ;;  %413 = vmatpush1.bf16.msra.mxu0 %v6222_v31  ;;  %v6305_v27 = vld [vmem:[#allocation2 + $0x1b0] ss:$8 sps:$4 sm:$0xff]   ;;  %v6310_v28 = vld [vmem:[#allocation2 + $0xc4] ss:$8 sps:$4 sm:$0xff]   ;;  %v6308_v29 = vld [vmem:[#allocation2 + $0xc0] ss:$8 sps:$4 sm:$0xff]  }
  0x80   :  { %444 = vmatprep.mubr.bf16.mxu0 %v7088_v0  ;;  %414 = vmatprep.subr.bf16.mxu0 %v6227_v32  ;;  %v6313_v30 = vld [vmem:[#allocation2 + $0x1c4] ss:$8 sps:$4 sm:$0xff]   ;;  %v6311_v31 = vld [vmem:[#allocation2 + $0x1c0] ss:$8 sps:$4 sm:$0xff]   ;;  %v6316_v32 = vld [vmem:[#allocation2 + $0xd4] ss:$8 sps:$4 sm:$0xff]  }
  0x81   :  { %1008 = vmatpush1.bf16.msra.mxu1 %v6236_v33  ;;  %v6314_v33 = vld [vmem:[#allocation2 + $0xd0] ss:$8 sps:$4 sm:$0xff]   ;;  %v6382_v45 = vld [vmem:[#allocation5 + $0x4] ss:$8 sps:$4 sm:$0xff]   ;;  %s7103_s5 = smov 127   ;;  %s7104_s3 = smov 126  }
  0x82   :  { %1009 = vmatprep.subr.bf16.mxu1 %v6244_v34  ;;  %v6319_v34 = vld [vmem:[#allocation2 + $0x1d4] ss:$8 sps:$4 sm:$0xff]   ;;  %v6329_v42 = vld [vmem:[#allocation2 + $0x1f0] ss:$8 sps:$4 sm:$0xff]   ;;  %s7106_s26 = smov 56   ;;  %s7107_s29 = smov 48  }
  0x83   :  { %415 = vmatpush1.bf16.msra.mxu0 %v6225_v35  ;;  %v6317_v35 = vld [vmem:[#allocation2 + $0x1d0] ss:$8 sps:$4 sm:$0xff]   ;;  %s8267_s7 = sld [smem:[#allocation21_spill]]  ;;  %s7111_s23 = smov 4  }
  0x84   :  { %416 = vmatprep.subr.bf16.mxu0 %v6230_v36  ;;  %v6322_v36 = vld [vmem:[#allocation2 + $0xe4] ss:$8 sps:$4 sm:$0xff]   ;;  %s7115_s12 = smov [#allocation11]  }
  0x85   :  { %1010 = vmatpush1.bf16.msra.mxu1 %v6242_v37  ;;  %v6320_v37 = vld [vmem:[#allocation2 + $0xe0] ss:$8 sps:$4 sm:$0xff]   ;;  %s5608_s6 = sshll.u32 %s7115_s12, 4  ;;  %s5609_s6 = int_to_ptr.vmem [resolvable:$true] %s5608_s6 }
  0x86   :  { %1011 = vmatprep.subr.bf16.mxu1 %v6250_v38  ;;  %v6325_v38 = vld [vmem:[#allocation2 + $0x1e4] ss:$8 sps:$4 sm:$0xff]   ;;  %p7011_p5 = scmp.lt.s32.totalorder %s5609_s6, %s5609_s6 }
  0x87   :  { %417 = vmatpush1.bf16.msra.mxu0 %v6228_v39  ;;  %v6323_v39 = vld [vmem:[#allocation2 + $0x1e0] ss:$8 sps:$4 sm:$0xff]  }
  0x88   :  { %418 = vmatprep.subr.bf16.mxu0 %v6233_v40  ;;  %v6326_v40 = vld [vmem:[#allocation2 + $0xf0] ss:$8 sps:$4 sm:$0xff]  }
  0x89   :  { %1012 = vmatpush1.bf16.msra.mxu1 %v6248_v41  ;;  %v6328_v41 = vld [vmem:[#allocation2 + $0xf4] ss:$8 sps:$4 sm:$0xff]  }
  0x8a   :  { %1013 = vmatprep.subr.bf16.mxu1 %v6256_v55 }
  0x8b   :  { %419 = vmatpush1.bf16.msra.mxu0 %v6231_v43  ;;  %v6331_v43 = vld [vmem:[#allocation2 + $0x1f4] ss:$8 sps:$4 sm:$0xff]  }
  0x8c   :  { %5674 = vmatprep.subr.msk.bf16.mxu0 %vm215_vm0, %v5673_v44  ;;  %v6334_v44 = vld [vmem:[#allocation2 + $0x204] ss:$8 sps:$4 sm:$0xff]  }
  0x8d   :  { %1014 = vmatpush1.bf16.msra.mxu1 %v6254_v56 }
  0x8e   :  { %1015 = vmatprep.subr.bf16.mxu1 %v6262_v59 }
  0x8f   :  { %421 = vmatpush1.bf16.msra.mxu0 %v407_v48 }
  0x90   :  { %1208 = vmatprep.subr.bf16.mxu0 %v6241_v47 }
  0x91   :  { %1016 = vmatpush1.bf16.msra.mxu1 %v6260_v60 }
  0x92   :  { %5675 = vmatmul.mubr.msk.bf16.vlgmr.msra.gmra.mrb[4].mxu0 %vm211_vm1, %v138_v50  ;;  %1017 = vmatprep.subr.bf16.mxu1 %v6268_v63 }
  0x93   :  { %1209 = vmatpush1.bf16.msra.mxu0 %v6239_v49 }
  0x94   :  { %1210 = vmatprep.subr.bf16.mxu0 %v6247_v51 }
  0x95   :  { %1018 = vmatpush1.bf16.msra.mxu1 %v6266_v1 }
  0x96   :  { %1019 = vmatprep.subr.bf16.mxu1 %v6274_v4 }
  0x97   :  { %1211 = vmatpush1.bf16.msra.mxu0 %v6245_v52 }
  0x98   :  { %1212 = vmatprep.subr.bf16.mxu0 %v6253_v53 }
  0x99   :  { %1020 = vmatpush1.bf16.msra.mxu1 %v6272_v5 }
  0x9a   :  { %1021 = vmatprep.subr.bf16.mxu1 %v6280_v8 }
  0x9b   :  { %1213 = vmatpush1.bf16.msra.mxu0 %v6251_v54 }
  0x9c   :  { %1214 = vmatprep.subr.bf16.mxu0 %v6259_v57 }
  0x9d   :  { %1022 = vmatpush1.bf16.msra.mxu1 %v6278_v9 }
  0x9e   :  { %1023 = vmatprep.subr.bf16.mxu1 %v6286_v12 }
  0x9f   :  { %1215 = vmatpush1.bf16.msra.mxu0 %v6257_v58 }
  0xa0   :  { %1216 = vmatprep.subr.bf16.mxu0 %v6265_v61 }
  0xa1   :  { %1024 = vmatpush1.bf16.msra.mxu1 %v6284_v13 }
  0xa2   :  { %1025 = vmatprep.subr.bf16.mxu1 %v6292_v16 }
  0xa3   :  { %1217 = vmatpush1.bf16.msra.mxu0 %v6263_v62 }
  0xa4   :  { %1218 = vmatprep.subr.bf16.mxu0 %v6271_v2 }
  0xa5   :  { %1026 = vmatpush1.bf16.msra.mxu1 %v6290_v17 }
  0xa6   :  { %1027 = vmatprep.subr.bf16.mxu1 %v6298_v20 }
  0xa7   :  { %1219 = vmatpush1.bf16.msra.mxu0 %v6269_v3 }
  0xa8   :  { %1220 = vmatprep.subr.bf16.mxu0 %v6277_v6 }
  0xa9   :  { %1028 = vmatpush1.bf16.msra.mxu1 %v6296_v21 }
  0xaa   :  { %1029 = vmatprep.subr.bf16.mxu1 %v6304_v24 }
  0xab   :  { %1221 = vmatpush1.bf16.msra.mxu0 %v6275_v7 }
  0xac   :  { %1222 = vmatprep.subr.bf16.mxu0 %v6283_v10 }
  0xad   :  { %1030 = vmatpush1.bf16.msra.mxu1 %v6302_v25 }
  0xae   :  { %1031 = vmatprep.subr.bf16.mxu1 %v6310_v28 }
  0xaf   :  { %1223 = vmatpush1.bf16.msra.mxu0 %v6281_v11 }
  0xb0   :  { %1224 = vmatprep.subr.bf16.mxu0 %v6289_v14 }
  0xb1   :  { %1032 = vmatpush1.bf16.msra.mxu1 %v6308_v29 }
  0xb2   :  { %1033 = vmatprep.subr.bf16.mxu1 %v6316_v32 }
  0xb3   :  { %1225 = vmatpush1.bf16.msra.mxu0 %v6287_v15 }
  0xb4   :  { %1226 = vmatprep.subr.bf16.mxu0 %v6295_v18 }
  0xb5   :  { %1034 = vmatpush1.bf16.msra.mxu1 %v6314_v33 }
  0xb6   :  { %1035 = vmatprep.subr.bf16.mxu1 %v6322_v36 }
  0xb7   :  { %1227 = vmatpush1.bf16.msra.mxu0 %v6293_v19 }
  0xb8   :  { %1228 = vmatprep.subr.bf16.mxu0 %v6301_v22 }
  0xb9   :  { %1036 = vmatpush1.bf16.msra.mxu1 %v6320_v37 }
  0xba   :  { %1037 = vmatprep.subr.bf16.mxu1 %v6328_v41 }
  0xbb   :  { %1229 = vmatpush1.bf16.msra.mxu0 %v6299_v23 }
  0xbc   :  { %1230 = vmatprep.subr.bf16.mxu0 %v6307_v26 }
  0xbd   :  { %1038 = vmatpush1.bf16.msra.mxu1 %v6326_v40 }
  0xbe   :  { %1409 = vmatprep.subr.bf16.mxu1 %v6334_v44 }
  0xbf   :  { %1231 = vmatpush1.bf16.msra.mxu0 %v6305_v27 }
  0xc0   :  { %1232 = vmatprep.subr.bf16.mxu0 %v6313_v30 }
  0xc3   :  { %1233 = vmatpush1.bf16.msra.mxu0 %v6311_v31 }
  0xc4   :  { %1234 = vmatprep.subr.bf16.mxu0 %v6319_v34 }
  0xc7   :  { %1235 = vmatpush1.bf16.msra.mxu0 %v6317_v35 }
  0xc8   :  { %1236 = vmatprep.subr.bf16.mxu0 %v6325_v38 }
  0xcb   :  { %1237 = vmatpush1.bf16.msra.mxu0 %v6323_v39 }
  0xcc   :  { %1238 = vmatprep.subr.bf16.mxu0 %v6331_v43 }
  0xcf   :  { %1239 = vmatpush1.bf16.msra.mxu0 %v6329_v42 }
  0xd0   :  { %2003 = vmatprep.subr.bf16.mxu0 %v6382_v45 }
 0x151   :  { %v7425_v46 = vpop.f32.mrb[0].mxu0 }
 0x152   :  { %v7427_v47 = vpop.f32.mrb[0].mxu1  ;;  %v453_v48 = vsel %vm215_vm0, %v7425_v46, 0.0  ;;  %v502_v49 = vmul.f32 %v7425_v46, %v7425_v46  ;;  %v7437_v52 = vpop.f32.mrb[1].mxu0 }
 0x153   :  { %v467_v50 = vsel %vm215_vm0, %v7427_v47, 0.0  ;;  %v504_v51 = vmul.f32 %v7427_v47, %v7427_v47  ;;  %v7439_v53 = vpop.f32.mrb[1].mxu1  ;;  %v454_v54 = vrot.slane %v453_v48, 4  ;;  %v460_v56 = vsel %vm215_vm0, %v7437_v52, 0.0  ;;  %v260_v59 = vpop.f32.mrb[2].mxu0 }
 0x154   :  { %v468_v55 = vrot.slane %v467_v50, 4  ;;  %v503_v57 = vmul.f32 %v7437_v52, %v7437_v52  ;;  %v355_v58 = vpop.f32.mrb[2].mxu1  ;;  %v508_v60 = vsel %vm215_vm0, %v502_v49, 0.0  ;;  %v461_v62 = vrot.slane %v460_v56, 4  ;;  %v261_v2 = vpop.f32.mrb[3].mxu0 }
 0x155   :  { %v522_v61 = vsel %vm215_vm0, %v504_v51, 0.0  ;;  %v474_v63 = vsel %vm215_vm0, %v7439_v53, 0.0  ;;  %v356_v1 = vpop.f32.mrb[3].mxu1  ;;  %v455_v3 = vadd.f32 %v454_v54, %v453_v48  ;;  %v509_v4 = vrot.slane %v508_v60, 4 }
 0x156   :  { %v469_v5 = vadd.f32 %v468_v55, %v467_v50  ;;  %v523_v6 = vrot.slane %v522_v61, 4  ;;  %v462_v7 = vadd.f32 %v461_v62, %v460_v56  ;;  %v515_v8 = vsel %vm215_vm0, %v503_v57, 0.0 }
 0x157   :  { %v475_v9 = vrot.slane %v474_v63, 4  ;;  %v505_v10 = vmul.f32 %v7439_v53, %v7439_v53  ;;  %v456_v11 = vrot.slane %v455_v3, 2  ;;  %v510_v12 = vadd.f32 %v509_v4, %v508_v60 }
 0x158   :  { %v470_v13 = vrot.slane %v469_v5, 2  ;;  %v524_v14 = vadd.f32 %v523_v6, %v522_v61  ;;  %v463_v15 = vrot.slane %v462_v7, 2  ;;  %v516_v16 = vrot.slane %v515_v8, 4 }
 0x159   :  { %v476_v17 = vadd.f32 %v475_v9, %v474_v63  ;;  %v529_v18 = vsel %vm215_vm0, %v505_v10, 0.0  ;;  %v457_v19 = vadd.f32 %v456_v11, %v455_v3  ;;  %v511_v20 = vrot.slane %v510_v12, 2 }
 0x15a   :  { %v471_v21 = vadd.f32 %v470_v13, %v469_v5  ;;  %v525_v22 = vrot.slane %v524_v14, 2  ;;  %v464_v23 = vadd.f32 %v463_v15, %v462_v7  ;;  %v517_v24 = vadd.f32 %v516_v16, %v515_v8 }
 0x15b   :  { %v477_v25 = vrot.slane %v476_v17, 2  ;;  %v530_v26 = vrot.slane %v529_v18, 4  ;;  %v458_v27 = vrot.slane %v457_v19, 1  ;;  %v512_v28 = vadd.f32 %v511_v20, %v510_v12 }
 0x15c   :  { %v472_v29 = vrot.slane %v471_v21, 1  ;;  %v526_v30 = vadd.f32 %v525_v22, %v524_v14  ;;  %v465_v31 = vrot.slane %v464_v23, 1  ;;  %v518_v32 = vrot.slane %v517_v24, 2 }
 0x15d   :  { %v478_v33 = vadd.f32 %v477_v25, %v476_v17  ;;  %v531_v34 = vadd.f32 %v530_v26, %v529_v18  ;;  %v459_v35 = vadd.f32 %v458_v27, %v457_v19  ;;  %v513_v36 = vrot.slane %v512_v28, 1 }
 0x15e   :  { %v473_v37 = vadd.f32 %v472_v29, %v471_v21  ;;  %v527_v38 = vrot.slane %v526_v30, 1  ;;  %v466_v39 = vadd.f32 %v465_v31, %v464_v23  ;;  %v519_v40 = vadd.f32 %v518_v32, %v517_v24 }
 0x15f   :  { %v479_v41 = vrot.slane %v478_v33, 1  ;;  %v532_v42 = vrot.slane %v531_v34, 2  ;;  %v7453_v43 = vmul.f32 0.25, %v459_v35  ;;  %v514_v44 = vadd.f32 %v513_v36, %v512_v28 }
 0x160   :  { %v7455_v45 = vmul.f32 0.25, %v473_v37  ;;  %v528_v48 = vadd.f32 %v527_v38, %v526_v30  ;;  %v7457_v49 = vmul.f32 0.25, %v466_v39  ;;  %v520_v50 = vrot.slane %v519_v40, 1 }
 0x161   :  { %v480_v51 = vadd.f32 %v479_v41, %v478_v33  ;;  %v533_v54 = vadd.f32 %v532_v42, %v531_v34  ;;  %v550_v55 = vmul.f32 0.25, %v514_v44  ;;  %v559_v56 = vmul.f32 %v7453_v43, %v7453_v43 }
 0x162   :  { %v552_v57 = vmul.f32 0.25, %v528_v48  ;;  %v561_v58 = vmul.f32 %v7455_v45, %v7455_v45  ;;  %v521_v59 = vadd.f32 %v520_v50, %v519_v40  ;;  %v560_v60 = vmul.f32 %v7457_v49, %v7457_v49 }
 0x163   :  { %v565_v61 = vsub.f32 %v550_v55, %v559_v56  ;;  %v7465_v62 = vmul.f32 0.25, %v480_v51  ;;  %v534_v63 = vrot.slane %v533_v54, 1  ;;  %v7089_v24 = vmov 1966171168  }
 0x164   :  { %v567_v1 = vsub.f32 %v552_v57, %v561_v58  ;;  %v551_v2 = vmul.f32 0.25, %v521_v59  ;;  %v591_v25 = vunpack.c.l.s4 %v7089_v24  ;;  %v593_v26 = vlaneseq }
 0x165   :  { %v571_v3 = vadd.f32 1e-05, %v565_v61  ;;  %v535_v4 = vadd.f32 %v534_v63, %v533_v54  ;;  %v562_v5 = vmul.f32 %v7465_v62, %v7465_v62  ;;  %v7469_v6 = vpop.f32.mrb[4].mxu0  ;;  %v641_v24 = vsub.f32 %v7437_v52, %v7457_v49 }
 0x166   :  { %v573_v7 = vadd.f32 1e-05, %v567_v1  ;;  %v566_v8 = vsub.f32 %v551_v2, %v560_v60  ;;  %v481_v9 = vsel %vm215_vm0, %v7469_v6, 0.0  ;;  %v506_v10 = vmul.f32 %v7469_v6, %v7469_v6  ;;  %v7475_v11 = vpop.f32.mrb[5].mxu0 }
 0x167   :  { %6844 = vrsqrt.f32 %v571_v3  ;;  %v553_v12 = vmul.f32 0.25, %v535_v4  ;;  %v482_v13 = vrot.slane %v481_v9, 4  ;;  %v488_v14 = vsel %vm215_vm0, %v7475_v11, 0.0  ;;  %v450_v15 = vpop.f32.mrb[6].mxu0 }
 0x168   :  { %6846 = vrsqrt.f32 %v573_v7  ;;  %v572_v16 = vadd.f32 1e-05, %v566_v8  ;;  %v536_v17 = vsel %vm215_vm0, %v506_v10, 0.0  ;;  %v489_v18 = vrot.slane %v488_v14, 4  ;;  %v451_v19 = vpop.f32.mrb[7].mxu0 }
 0x169   :  { %v568_v20 = vsub.f32 %v553_v12, %v562_v5  ;;  %v483_v21 = vadd.f32 %v482_v13, %v481_v9  ;;  %v537_v22 = vrot.slane %v536_v17, 4  ;;  %v507_v23 = vmul.f32 %v7475_v11, %v7475_v11  ;;  %v556_v12 = vld [vmem:[%s8262_s8] sm:$0x3] }
 0x16a   :  { %6848 = vrsqrt.f32 %v572_v16  ;;  %v490_v27 = vadd.f32 %v489_v18, %v488_v14  ;;  %v592_v38 = vunpack.c.0.s8 %v591_v25  ;;  %v594_v39 = vshrl.u32 %v593_v26, 7  ;;  %v685_v19 = vld [vmem:[%s8263_s4] sm:$0x3]  ;;  %v557_v25 = vld [vmem:[%s8262_s8 + $0x2] sm:$0x3] }
 0x16b   :  { %v574_v28 = vadd.f32 1e-05, %v568_v20  ;;  %v484_v29 = vrot.slane %v483_v21, 2  ;;  %v538_v30 = vadd.f32 %v537_v22, %v536_v17  ;;  %v543_v31 = vsel %vm215_vm0, %v507_v23, 0.0 }
 0x16c   :  { %v491_v32 = vrot.slane %v490_v27, 2  ;;  %v544_v33 = vrot.slane %v543_v31, 4  ;;  %v7484_v57 = vsub.s32 %v592_v38, %v594_v39  ;;  %v7501_v16 = vsub.s32 0, %v594_v39 }
 0x16d   :  { %6850 = vrsqrt.f32 %v574_v28  ;;  %v485_v34 = vadd.f32 %v484_v29, %v483_v21  ;;  %v539_v35 = vrot.slane %v538_v30, 2  ;;  %v7503_v17 = vsub.s32 1, %v594_v39  ;;  %v686_v28 = vld [vmem:[%s8263_s4 + $0x2] sm:$0x3] }
 0x16e   :  { %v492_v36 = vadd.f32 %v491_v32, %v490_v27  ;;  %v545_v37 = vadd.f32 %v544_v33, %v543_v31  ;;  %v640_v22 = vsub.f32 %v7425_v46, %v7453_v43  ;;  %v694_v43 = vrot.slane %v685_v19, %v7501_v16 }
 0x16f   :  { %v486_v40 = vrot.slane %v485_v34, 1  ;;  %v540_v41 = vadd.f32 %v539_v35, %v538_v30  ;;  %v698_v52 = vrot.slane %v685_v19, %v7503_v17  ;;  %v702_v33 = vrot.slane %v686_v28, %v7501_v16  ;;  %v6338_v19 = vld [vmem:[#allocation2 + $0x220] ss:$8 sps:$4 sm:$0xff]  }
 0x170   :  { %v493_v42 = vrot.slane %v492_v36, 1  ;;  %v546_v44 = vrot.slane %v545_v37, 2  ;;  %v642_v35 = vsub.f32 %v7427_v47, %v7455_v45 }
 0x171   :  { %v6845_v48 = vpop.eup %6844  ;;  %v487_v50 = vadd.f32 %v486_v40, %v485_v34  ;;  %v541_v51 = vrot.slane %v540_v41, 1  ;;  %v706_v34 = vrot.slane %v686_v28, %v7503_v17 }
 0x172   :  { %v6847_v54 = vpop.eup %6846  ;;  %v494_v55 = vadd.f32 %v493_v42, %v492_v36  ;;  %v547_v56 = vadd.f32 %v546_v44, %v545_v37  ;;  %v643_v36 = vsub.f32 %v7439_v53, %v7465_v62  ;;  %v6332_v62 = vld [vmem:[#allocation2 + $0x200] ss:$8 sps:$4 sm:$0xff]  }
 0x173   :  { %v7486_v58 = vmul.f32 0.25, %v487_v50  ;;  %v542_v59 = vadd.f32 %v541_v51, %v540_v41 }
 0x174   :  { %v6849_v60 = vpop.eup %6848  ;;  %v7488_v61 = vmul.f32 0.25, %v494_v55  ;;  %v548_v63 = vrot.slane %v547_v56, 1 }
 0x175   :  { %v589_v1 = vcombine.low %v6845_v48, %v6849_v60  ;;  %v554_v2 = vmul.f32 0.25, %v542_v59  ;;  %v563_v3 = vmul.f32 %v7486_v58, %v7486_v58  ;;  %v644_v4 = vsub.f32 %v7469_v6, %v7486_v58  ;;  %v6337_v60 = vld [vmem:[#allocation2 + $0x214] ss:$8 sps:$4 sm:$0xff]   ;;  %v6350_v6 = vld [vmem:[#allocation2 + $0x260] ss:$8 sps:$4 sm:$0xff]  }
 0x176   :  { %v549_v5 = vadd.f32 %v548_v63, %v547_v56  ;;  %v564_v7 = vmul.f32 %v7488_v61, %v7488_v61  ;;  %v6355_v58 = vld [vmem:[#allocation2 + $0x274] ss:$8 sps:$4 sm:$0xff]  }
 0x177   :  { %v6851_v8 = vpop.eup %6850  ;;  %v596_v9 = vrot.slane %v589_v1, %v7484_v57  ;;  %v569_v10 = vsub.f32 %v554_v2, %v563_v3 }
 0x178   :  { %v604_v13 = vcombine.low %v6847_v54, %v6851_v8  ;;  %v555_v14 = vmul.f32 0.25, %v549_v5 }
 0x179   :  { %v603_v15 = vrot.slane %v596_v9, %v7484_v57  ;;  %v575_v18 = vadd.f32 1e-05, %v569_v10  ;;  %v6335_v9 = vld [vmem:[#allocation2 + $0x210] ss:$8 sps:$4 sm:$0xff]   ;;  %v6388_v10 = vld [vmem:[#allocation5 + $0x14] ss:$8 sps:$4 sm:$0xff]  }
 0x17a   :  { %v611_v20 = vrot.slane %v604_v13, %v7484_v57  ;;  %v570_v21 = vsub.f32 %v555_v14, %v564_v7  ;;  %v6380_v7 = vld [vmem:[#allocation5] ss:$8 sps:$4 sm:$0xff]   ;;  %v558_v14 = vld [vmem:[%s8262_s8 + $0x4] sm:$0x3]  ;;  %s7110_s8 = smov 2  }
 0x17b   :  { %v637_v23 = vmul.f32 %v603_v15, %v556_v12  ;;  %6852 = vrsqrt.f32 %v575_v18  ;;  %v6340_v12 = vld [vmem:[#allocation2 + $0x224] ss:$8 sps:$4 sm:$0xff]   ;;  %v6386_v18 = vld [vmem:[#allocation5 + $0x10] ss:$8 sps:$4 sm:$0xff]  }
 0x17c   :  { %v618_v27 = vrot.slane %v611_v20, %v7484_v57  ;;  %v576_v29 = vadd.f32 1e-05, %v570_v21  ;;  %v7540_v20 = vld [vmem:[%s8263_s4 + $0x4] sm:$0x3]  ;;  %s7090_s4 = smov 3  }
 0x17d   :  { %v652_v30 = vrot.slane %v637_v23, %v7501_v16  ;;  %v656_v46 = vrot.slane %v637_v23, %v7503_v17  ;;  %v6394_v21 = vld [vmem:[#allocation5 + $0x24] ss:$8 sps:$4 sm:$0xff]   ;;  %v645_v23 = vsub.f32 %v7475_v11, %v7488_v61  ;;  %v714_v28 = vrot.slane %v7540_v20, %v7503_v17 }
 0x17e   :  { %v638_v49 = vmul.f32 %v618_v27, %v557_v25  ;;  %6854 = vrsqrt.f32 %v576_v29  ;;  %v6392_v29 = vld [vmem:[#allocation5 + $0x20] ss:$8 sps:$4 sm:$0xff]   ;;  %v6346_v11 = vld [vmem:[#allocation2 + $0x244] ss:$8 sps:$4 sm:$0xff]  }
 0x17f   :  { %v679_v31 = vmul.f32 %v652_v30, %v640_v22  ;;  %v680_v32 = vmul.f32 %v656_v46, %v641_v24  ;;  %v6343_v24 = vld [vmem:[#allocation2 + $0x234] ss:$8 sps:$4 sm:$0xff]   ;;  %v6341_v30 = vld [vmem:[#allocation2 + $0x230] ss:$8 sps:$4 sm:$0xff]  }
 0x180   :  { %v660_v37 = vrot.slane %v638_v49, %v7501_v16  ;;  %v664_v38 = vrot.slane %v638_v49, %v7503_v17  ;;  %v6349_v49 = vld [vmem:[#allocation2 + $0x254] ss:$8 sps:$4 sm:$0xff]  }
 0x181   :  { %v722_v39 = vadd.f32 %v698_v52, %v680_v32  ;;  %v721_v40 = vadd.f32 %v694_v43, %v679_v31  ;;  %v6344_v52 = vld [vmem:[#allocation2 + $0x240] ss:$8 sps:$4 sm:$0xff]  }
 0x182   :  { %v681_v41 = vmul.f32 %v660_v37, %v642_v35  ;;  %v682_v42 = vmul.f32 %v664_v38, %v643_v36  ;;  %v6352_v35 = vld [vmem:[#allocation2 + $0x264] ss:$8 sps:$4 sm:$0xff]   ;;  %v6356_v37 = vld [vmem:[#allocation2 + $0x280] ss:$8 sps:$4 sm:$0xff]   ;;  %v6361_v38 = vld [vmem:[#allocation2 + $0x294] ss:$8 sps:$4 sm:$0xff]  }
 0x183   :  { %vm728_vm2 = vcmp.ge.f32.partialorder %v722_v39, 0.0  ;;  %v734_v44 = vmul.f32 0.01, %v722_v39  ;;  %vm727_vm3 = vcmp.ge.f32.partialorder %v721_v40, 0.0  ;;  %v733_v48 = vmul.f32 0.01, %v721_v40 }
 0x184   :  { %v724_v50 = vadd.f32 %v706_v34, %v682_v42  ;;  %v723_v51 = vadd.f32 %v702_v33, %v681_v41  ;;  %v6347_v33 = vld [vmem:[#allocation2 + $0x250] ss:$8 sps:$4 sm:$0xff]   ;;  %v6358_v36 = vld [vmem:[#allocation2 + $0x284] ss:$8 sps:$4 sm:$0xff]   ;;  %v6362_v41 = vld [vmem:[#allocation2 + $0x2a0] ss:$8 sps:$4 sm:$0xff]  }
 0x185   :  { %v740_v54 = vsel %vm728_vm2, %v722_v39, %v734_v44  ;;  %v739_v55 = vsel %vm727_vm3, %v721_v40, %v733_v48  ;;  %v6853_v47 = vpop.eup %6852  ;;  %v6359_v39 = vld [vmem:[#allocation2 + $0x290] ss:$8 sps:$4 sm:$0xff]   ;;  %v6364_v40 = vld [vmem:[#allocation2 + $0x2a4] ss:$8 sps:$4 sm:$0xff]   ;;  %v6367_v42 = vld [vmem:[#allocation2 + $0x2b4] ss:$8 sps:$4 sm:$0xff]  }
 0x186   :  { %v746_v45 = vpack.c.bf16 %v740_v54, %v740_v54  ;;  %vm730_vm4 = vcmp.ge.f32.partialorder %v724_v50, 0.0  ;;  %v736_v53 = vmul.f32 0.01, %v724_v50  ;;  %v745_v56 = vpack.c.bf16 %v739_v55, %v739_v55  ;;  %v6365_v44 = vld [vmem:[#allocation2 + $0x2b0] ss:$8 sps:$4 sm:$0xff]  }
 0x187   :  { %vm729_vm5 = vcmp.ge.f32.partialorder %v723_v51, 0.0  ;;  %v735_v59 = vmul.f32 0.01, %v723_v51  ;;  %v6370_v48 = vld [vmem:[#allocation2 + $0x2c4] ss:$8 sps:$4 sm:$0xff]  }
 0x188   :  { %v6855_v63 = vpop.eup %6854  ;;  %1039 = vmatprep.mubr.bf16.mxu1 %v746_v45  ;;  %v742_v1 = vsel %vm730_vm4, %v724_v50, %v736_v53  ;;  %v710_v50 = vrot.slane %v7540_v20, %v7501_v16  ;;  %v6373_v54 = vld [vmem:[#allocation2 + $0x2d4] ss:$8 sps:$4 sm:$0xff]   ;;  %v6371_v55 = vld [vmem:[#allocation2 + $0x2d0] ss:$8 sps:$4 sm:$0xff]   ;;  %v6376_v45 = vld [vmem:[#allocation2 + $0x2e4] ss:$8 sps:$4 sm:$0xff]  }
 0x189   :  { %v748_v2 = vpack.c.bf16 %v742_v1, %v742_v1  ;;  %1040 = vmatmul.mubr.bf16.vlgmr.msra.gmra.mrb[4].mxu1 %v745_v56  ;;  %v741_v3 = vsel %vm729_vm5, %v723_v51, %v735_v59  ;;  %v619_v5 = vcombine.low %v6853_v47, %v6855_v63  ;;  %v6368_v51 = vld [vmem:[#allocation2 + $0x2c0] ss:$8 sps:$4 sm:$0xff]   ;;  %v6379_v56 = vld [vmem:[#allocation2 + $0x2f4] ss:$8 sps:$4 sm:$0xff]   ;;  %v6377_v59 = vld [vmem:[#allocation2 + $0x2f0] ss:$8 sps:$4 sm:$0xff]  }
 0x18a   :  { %v747_v8 = vpack.c.bf16 %v741_v3, %v741_v3  ;;  %1410 = vmatpush1.bf16.msra.mxu1 %v6332_v62  ;;  %v6374_v53 = vld [vmem:[#allocation2 + $0x2e0] ss:$8 sps:$4 sm:$0xff]   ;;  %v6385_v63 = vld [vmem:[#allocation5 + $0x104] ss:$8 sps:$4 sm:$0xff]   ;;  %v6391_v3 = vld [vmem:[#allocation5 + $0x114] ss:$8 sps:$4 sm:$0xff]  }
 0x18b   :  { %1240 = vmatprep.mubr.bf16.mxu0 %v748_v2  ;;  %1411 = vmatprep.subr.bf16.mxu1 %v6337_v60  ;;  %v626_v13 = vrot.slane %v619_v5, %v7484_v57  ;;  %v6383_v2 = vld [vmem:[#allocation5 + $0x100] ss:$8 sps:$4 sm:$0xff]   ;;  %v6389_v5 = vld [vmem:[#allocation5 + $0x110] ss:$8 sps:$4 sm:$0xff]   ;;  %v6412_v20 = vld [vmem:[#allocation5 + $0x54] ss:$8 sps:$4 sm:$0xff]  }
 0x18c   :  { %1241 = vmatmul.mubr.bf16.vlgmr.msra.gmra.mrb[8].mxu0 %v747_v8  ;;  %v6395_v8 = vld [vmem:[#allocation5 + $0x120] ss:$8 sps:$4 sm:$0xff]  }
 0x18d   :  { %v633_v15 = vrot.slane %v626_v13, %v7484_v57  ;;  %2004 = vmatpush1.bf16.msra.mxu0 %v6380_v7  ;;  %v6397_v7 = vld [vmem:[#allocation5 + $0x124] ss:$8 sps:$4 sm:$0xff]   ;;  %v6401_v13 = vld [vmem:[#allocation5 + $0x130] ss:$8 sps:$4 sm:$0xff]  }
 0x18e   :  { %1412 = vmatpush1.bf16.msra.mxu1 %v6335_v9  ;;  %2005 = vmatprep.subr.bf16.mxu0 %v6388_v10  ;;  %v6400_v9 = vld [vmem:[#allocation5 + $0x34] ss:$8 sps:$4 sm:$0xff]   ;;  %v6398_v10 = vld [vmem:[#allocation5 + $0x30] ss:$8 sps:$4 sm:$0xff]  }
 0x18f   :  { %1413 = vmatprep.subr.bf16.mxu1 %v6340_v12  ;;  %v639_v22 = vmul.f32 %v633_v15, %v558_v14  ;;  %v6403_v12 = vld [vmem:[#allocation5 + $0x134] ss:$8 sps:$4 sm:$0xff]   ;;  %v6406_v14 = vld [vmem:[#allocation5 + $0x44] ss:$8 sps:$4 sm:$0xff]   ;;  %v6404_v15 = vld [vmem:[#allocation5 + $0x40] ss:$8 sps:$4 sm:$0xff]  }
 0x191   :  { %v668_v25 = vrot.slane %v639_v22, %v7501_v16  ;;  %v672_v27 = vrot.slane %v639_v22, %v7503_v17  ;;  %2006 = vmatpush1.bf16.msra.mxu0 %v6386_v18  ;;  %v6409_v18 = vld [vmem:[#allocation5 + $0x144] ss:$8 sps:$4 sm:$0xff]   ;;  %v6415_v22 = vld [vmem:[#allocation5 + $0x154] ss:$8 sps:$4 sm:$0xff]  }
 0x192   :  { %1414 = vmatpush1.bf16.msra.mxu1 %v6338_v19  ;;  %2007 = vmatprep.subr.bf16.mxu0 %v6394_v21  ;;  %v6407_v19 = vld [vmem:[#allocation5 + $0x140] ss:$8 sps:$4 sm:$0xff]   ;;  %v6410_v21 = vld [vmem:[#allocation5 + $0x50] ss:$8 sps:$4 sm:$0xff]  }
 0x193   :  { %v683_v46 = vmul.f32 %v668_v25, %v644_v4  ;;  %v684_v43 = vmul.f32 %v672_v27, %v645_v23  ;;  %1415 = vmatprep.subr.bf16.mxu1 %v6343_v24  ;;  %v6353_v4 = vld [vmem:[#allocation2 + $0x270] ss:$8 sps:$4 sm:$0xff]   ;;  %v6418_v24 = vld [vmem:[#allocation5 + $0x64] ss:$8 sps:$4 sm:$0xff]   ;;  %v6416_v25 = vld [vmem:[#allocation5 + $0x60] ss:$8 sps:$4 sm:$0xff]  }
 0x194   :  { %v6413_v23 = vld [vmem:[#allocation5 + $0x150] ss:$8 sps:$4 sm:$0xff]   ;;  %v6421_v27 = vld [vmem:[#allocation5 + $0x164] ss:$8 sps:$4 sm:$0xff]  }
 0x195   :  { %v726_v61 = vadd.f32 %v714_v28, %v684_v43  ;;  %2008 = vmatpush1.bf16.msra.mxu0 %v6392_v29  ;;  %v725_v47 = vadd.f32 %v710_v50, %v683_v46  ;;  %v6419_v28 = vld [vmem:[#allocation5 + $0x160] ss:$8 sps:$4 sm:$0xff]   ;;  %v6424_v29 = vld [vmem:[#allocation5 + $0x74] ss:$8 sps:$4 sm:$0xff]   ;;  %v6425_v43 = vld [vmem:[#allocation5 + $0x170] ss:$8 sps:$4 sm:$0xff]  }
 0x196   :  { %1416 = vmatpush1.bf16.msra.mxu1 %v6341_v30  ;;  %2009 = vmatprep.subr.bf16.mxu0 %v6400_v9  ;;  %v6422_v30 = vld [vmem:[#allocation5 + $0x70] ss:$8 sps:$4 sm:$0xff]   ;;  %v6427_v46 = vld [vmem:[#allocation5 + $0x174] ss:$8 sps:$4 sm:$0xff]  }
 0x197   :  { %1417 = vmatprep.subr.bf16.mxu1 %v6346_v11  ;;  %vm732_vm6 = vcmp.ge.f32.partialorder %v726_v61, 0.0  ;;  %v738_v31 = vmul.f32 0.01, %v726_v61  ;;  %v737_v62 = vmul.f32 0.01, %v725_v47  ;;  %vm731_vm7 = vcmp.ge.f32.partialorder %v725_v47, 0.0 }
 0x198   :  { %v6430_v11 = vld [vmem:[#allocation5 + $0x84] ss:$8 sps:$4 sm:$0xff]   ;;  %v6458_v50 = vld [vmem:[#allocation5 + $0xd0] ss:$8 sps:$4 sm:$0xff]  }
 0x199   :  { %v744_v32 = vsel %vm732_vm6, %v726_v61, %v738_v31  ;;  %v743_v60 = vsel %vm731_vm7, %v725_v47, %v737_v62  ;;  %2010 = vmatpush1.bf16.msra.mxu0 %v6398_v10  ;;  %v6428_v61 = vld [vmem:[#allocation5 + $0x80] ss:$8 sps:$4 sm:$0xff]   ;;  %v6436_v31 = vld [vmem:[#allocation5 + $0x94] ss:$8 sps:$4 sm:$0xff]   ;;  %v6470_v62 = vld [vmem:[#allocation5 + $0xf0] ss:$8 sps:$4 sm:$0xff]  }
 0x19a   :  { %1418 = vmatpush1.bf16.msra.mxu1 %v6344_v52  ;;  %v750_v34 = vpack.c.bf16 %v744_v32, %v744_v32  ;;  %v749_v1 = vpack.c.bf16 %v743_v60, %v743_v60  ;;  %2011 = vmatprep.subr.bf16.mxu0 %v6406_v14  ;;  %v6433_v52 = vld [vmem:[#allocation5 + $0x184] ss:$8 sps:$4 sm:$0xff]   ;;  %v6434_v32 = vld [vmem:[#allocation5 + $0x90] ss:$8 sps:$4 sm:$0xff]   ;;  %v6464_v47 = vld [vmem:[#allocation5 + $0xe0] ss:$8 sps:$4 sm:$0xff]  }
 0x19b   :  { %1419 = vmatprep.subr.bf16.mxu1 %v6349_v49  ;;  %v6431_v49 = vld [vmem:[#allocation5 + $0x180] ss:$8 sps:$4 sm:$0xff]   ;;  %v6475_v60 = vld [vmem:[#allocation5 + $0x1f4] ss:$8 sps:$4 sm:$0xff]  }
 0x19c   :  { %1441 = vmatprep.mubr.bf16.mxu1 %v750_v34  ;;  %v6437_v34 = vld [vmem:[#allocation5 + $0x190] ss:$8 sps:$4 sm:$0xff]  }
 0x19d   :  { %2012 = vmatpush1.bf16.msra.mxu0 %v6404_v15 }
 0x19e   :  { %1420 = vmatpush1.bf16.msra.mxu1 %v6347_v33  ;;  %2013 = vmatprep.subr.bf16.mxu0 %v6412_v20  ;;  %v6439_v33 = vld [vmem:[#allocation5 + $0x194] ss:$8 sps:$4 sm:$0xff]  }
 0x19f   :  { %1421 = vmatprep.subr.bf16.mxu1 %v6352_v35  ;;  %v6442_v35 = vld [vmem:[#allocation5 + $0xa4] ss:$8 sps:$4 sm:$0xff]  }
 0x1a1   :  { %2014 = vmatpush1.bf16.msra.mxu0 %v6410_v21 }
 0x1a2   :  { %1422 = vmatpush1.bf16.msra.mxu1 %v6350_v6  ;;  %2015 = vmatprep.subr.bf16.mxu0 %v6418_v24  ;;  %v6440_v6 = vld [vmem:[#allocation5 + $0xa0] ss:$8 sps:$4 sm:$0xff]  }
 0x1a3   :  { %1423 = vmatprep.subr.bf16.mxu1 %v6355_v58  ;;  %v6445_v58 = vld [vmem:[#allocation5 + $0x1a4] ss:$8 sps:$4 sm:$0xff]  }
 0x1a5   :  { %2016 = vmatpush1.bf16.msra.mxu0 %v6416_v25 }
 0x1a6   :  { %1424 = vmatpush1.bf16.msra.mxu1 %v6353_v4  ;;  %2017 = vmatprep.subr.bf16.mxu0 %v6424_v29  ;;  %v6443_v4 = vld [vmem:[#allocation5 + $0x1a0] ss:$8 sps:$4 sm:$0xff]  }
 0x1a7   :  { %1425 = vmatprep.subr.bf16.mxu1 %v6358_v36  ;;  %v6448_v36 = vld [vmem:[#allocation5 + $0xb4] ss:$8 sps:$4 sm:$0xff]  }
 0x1a9   :  { %2018 = vmatpush1.bf16.msra.mxu0 %v6422_v30 }
 0x1aa   :  { %1426 = vmatpush1.bf16.msra.mxu1 %v6356_v37  ;;  %2019 = vmatprep.subr.bf16.mxu0 %v6430_v11  ;;  %v6446_v37 = vld [vmem:[#allocation5 + $0xb0] ss:$8 sps:$4 sm:$0xff]  }
 0x1ab   :  { %1427 = vmatprep.subr.bf16.mxu1 %v6361_v38  ;;  %v6451_v38 = vld [vmem:[#allocation5 + $0x1b4] ss:$8 sps:$4 sm:$0xff]  }
 0x1ad   :  { %2020 = vmatpush1.bf16.msra.mxu0 %v6428_v61 }
 0x1ae   :  { %1428 = vmatpush1.bf16.msra.mxu1 %v6359_v39  ;;  %2021 = vmatprep.subr.bf16.mxu0 %v6436_v31  ;;  %v6449_v39 = vld [vmem:[#allocation5 + $0x1b0] ss:$8 sps:$4 sm:$0xff]  }
 0x1af   :  { %1429 = vmatprep.subr.bf16.mxu1 %v6364_v40  ;;  %v6454_v40 = vld [vmem:[#allocation5 + $0xc4] ss:$8 sps:$4 sm:$0xff]  }
 0x1b1   :  { %2022 = vmatpush1.bf16.msra.mxu0 %v6434_v32 }
 0x1b2   :  { %1430 = vmatpush1.bf16.msra.mxu1 %v6362_v41  ;;  %2023 = vmatprep.subr.bf16.mxu0 %v6442_v35  ;;  %v6452_v41 = vld [vmem:[#allocation5 + $0xc0] ss:$8 sps:$4 sm:$0xff]  }
 0x1b3   :  { %1431 = vmatprep.subr.bf16.mxu1 %v6367_v42  ;;  %v6457_v42 = vld [vmem:[#allocation5 + $0x1c4] ss:$8 sps:$4 sm:$0xff]  }
 0x1b5   :  { %2024 = vmatpush1.bf16.msra.mxu0 %v6440_v6 }
 0x1b6   :  { %1432 = vmatpush1.bf16.msra.mxu1 %v6365_v44  ;;  %2025 = vmatprep.subr.bf16.mxu0 %v6448_v36  ;;  %v6455_v44 = vld [vmem:[#allocation5 + $0x1c0] ss:$8 sps:$4 sm:$0xff]  }
 0x1b7   :  { %1433 = vmatprep.subr.bf16.mxu1 %v6370_v48  ;;  %v6460_v48 = vld [vmem:[#allocation5 + $0xd4] ss:$8 sps:$4 sm:$0xff]  }
 0x1b9   :  { %2026 = vmatpush1.bf16.msra.mxu0 %v6446_v37 }
 0x1ba   :  { %1434 = vmatpush1.bf16.msra.mxu1 %v6368_v51  ;;  %2027 = vmatprep.subr.bf16.mxu0 %v6454_v40  ;;  %v6463_v51 = vld [vmem:[#allocation5 + $0x1d4] ss:$8 sps:$4 sm:$0xff]  }
 0x1bb   :  { %1435 = vmatprep.subr.bf16.mxu1 %v6373_v54  ;;  %v6461_v54 = vld [vmem:[#allocation5 + $0x1d0] ss:$8 sps:$4 sm:$0xff]  }
 0x1bd   :  { %2028 = vmatpush1.bf16.msra.mxu0 %v6452_v41 }
 0x1be   :  { %1436 = vmatpush1.bf16.msra.mxu1 %v6371_v55  ;;  %2029 = vmatprep.subr.bf16.mxu0 %v6460_v48  ;;  %v6466_v55 = vld [vmem:[#allocation5 + $0xe4] ss:$8 sps:$4 sm:$0xff]  }
 0x1bf   :  { %1437 = vmatprep.subr.bf16.mxu1 %v6376_v45  ;;  %v6469_v45 = vld [vmem:[#allocation5 + $0x1e4] ss:$8 sps:$4 sm:$0xff]  }
 0x1c1   :  { %2030 = vmatpush1.bf16.msra.mxu0 %v6458_v50 }
 0x1c2   :  { %1438 = vmatpush1.bf16.msra.mxu1 %v6374_v53  ;;  %2031 = vmatprep.subr.bf16.mxu0 %v6466_v55  ;;  %v6467_v53 = vld [vmem:[#allocation5 + $0x1e0] ss:$8 sps:$4 sm:$0xff]  }
 0x1c3   :  { %1439 = vmatprep.subr.bf16.mxu1 %v6379_v56  ;;  %v6472_v56 = vld [vmem:[#allocation5 + $0xf4] ss:$8 sps:$4 sm:$0xff]  }
 0x1c5   :  { %2032 = vmatpush1.bf16.msra.mxu0 %v6464_v47 }
 0x1c6   :  { %1440 = vmatpush1.bf16.msra.mxu1 %v6377_v59  ;;  %v6473_v59 = vld [vmem:[#allocation5 + $0x1f0] ss:$8 sps:$4 sm:$0xff]   ;;  %2033 = vmatprep.subr.bf16.mxu0 %v6472_v56 }
 0x1c7   :  { %2204 = vmatprep.subr.bf16.mxu1 %v6385_v63  ;;  %v6478_v63 = vld [vmem:[#allocation5 + $0x204] ss:$8 sps:$4 sm:$0xff]  }
 0x1c9   :  { %1442 = vmatmul.mubr.bf16.vlgmr.msra.gmra.mrb[8].mxu1 %v749_v1  ;;  %2034 = vmatpush1.bf16.msra.mxu0 %v6470_v62  ;;  %v6526_v1 = vld [vmem:[#allocation7 + $0x4] ss:$8 sps:$4 sm:$0xff]  }
 0x1ca   :  { %2205 = vmatpush1.bf16.msra.mxu1 %v6383_v2  ;;  %2405 = vmatprep.subr.bf16.mxu0 %v6478_v63 }
 0x1cb   :  { %2206 = vmatprep.subr.bf16.mxu1 %v6391_v3 }
 0x1ce   :  { %2207 = vmatpush1.bf16.msra.mxu1 %v6389_v5 }
 0x1cf   :  { %2208 = vmatprep.subr.bf16.mxu1 %v6397_v7 }
 0x1d2   :  { %2209 = vmatpush1.bf16.msra.mxu1 %v6395_v8 }
 0x1d3   :  { %2210 = vmatprep.subr.bf16.mxu1 %v6403_v12 }
 0x1d6   :  { %2211 = vmatpush1.bf16.msra.mxu1 %v6401_v13 }
 0x1d7   :  { %2212 = vmatprep.subr.bf16.mxu1 %v6409_v18 }
 0x1da   :  { %2213 = vmatpush1.bf16.msra.mxu1 %v6407_v19 }
 0x1db   :  { %2214 = vmatprep.subr.bf16.mxu1 %v6415_v22 }
 0x1de   :  { %2215 = vmatpush1.bf16.msra.mxu1 %v6413_v23 }
 0x1df   :  { %2216 = vmatprep.subr.bf16.mxu1 %v6421_v27 }
 0x1e2   :  { %2217 = vmatpush1.bf16.msra.mxu1 %v6419_v28 }
 0x1e3   :  { %2218 = vmatprep.subr.bf16.mxu1 %v6427_v46 }
 0x1e6   :  { %2219 = vmatpush1.bf16.msra.mxu1 %v6425_v43 }
 0x1e7   :  { %2220 = vmatprep.subr.bf16.mxu1 %v6433_v52 }
 0x1ea   :  { %2221 = vmatpush1.bf16.msra.mxu1 %v6431_v49 }
 0x1eb   :  { %2222 = vmatprep.subr.bf16.mxu1 %v6439_v33 }
 0x1ee   :  { %2223 = vmatpush1.bf16.msra.mxu1 %v6437_v34 }
 0x1ef   :  { %2224 = vmatprep.subr.bf16.mxu1 %v6445_v58 }
 0x1f2   :  { %2225 = vmatpush1.bf16.msra.mxu1 %v6443_v4 }
 0x1f3   :  { %2226 = vmatprep.subr.bf16.mxu1 %v6451_v38 }
 0x1f6   :  { %2227 = vmatpush1.bf16.msra.mxu1 %v6449_v39 }
 0x1f7   :  { %2228 = vmatprep.subr.bf16.mxu1 %v6457_v42 }
 0x1fa   :  { %2229 = vmatpush1.bf16.msra.mxu1 %v6455_v44 }
 0x1fb   :  { %2230 = vmatprep.subr.bf16.mxu1 %v6463_v51 }
 0x1fe   :  { %2231 = vmatpush1.bf16.msra.mxu1 %v6461_v54 }
 0x1ff   :  { %2232 = vmatprep.subr.bf16.mxu1 %v6469_v45 }
 0x202   :  { %2233 = vmatpush1.bf16.msra.mxu1 %v6467_v53 }
 0x203   :  { %2234 = vmatprep.subr.bf16.mxu1 %v6475_v60 }
 0x206   :  { %2235 = vmatpush1.bf16.msra.mxu1 %v6473_v59 }
 0x207   :  { %2999 = vmatprep.subr.bf16.mxu1 %v6526_v1 }
 0x25c   :  { %v7553_v2 = vpop.f32.mrb[4].mxu1 }
 0x25d   :  { %v1450_v3 = vsel %vm215_vm0, %v7553_v2, 0.0  ;;  %v1498_v5 = vmul.f32 %v7553_v2, %v7553_v2  ;;  %v7559_v7 = vpop.f32.mrb[5].mxu1 }
 0x25e   :  { %v1451_v8 = vrot.slane %v1450_v3, 4  ;;  %v1457_v9 = vsel %vm215_vm0, %v7559_v7, 0.0  ;;  %v1499_v10 = vmul.f32 %v7559_v7, %v7559_v7  ;;  %v1045_v12 = vpop.f32.mrb[6].mxu1 }
 0x25f   :  { %v1504_v13 = vsel %vm215_vm0, %v1498_v5, 0.0  ;;  %v7566_v14 = vpop.f32.mrb[8].mxu0  ;;  %v1458_v15 = vrot.slane %v1457_v9, 4  ;;  %v1046_v18 = vpop.f32.mrb[7].mxu1 }
 0x260   :  { %v1452_v19 = vadd.f32 %v1451_v8, %v1450_v3  ;;  %v1505_v20 = vrot.slane %v1504_v13, 4  ;;  %v1464_v21 = vsel %vm215_vm0, %v7566_v14, 0.0  ;;  %v1500_v22 = vmul.f32 %v7566_v14, %v7566_v14  ;;  %v7572_v23 = vpop.f32.mrb[9].mxu0 }
 0x261   :  { %v1465_v24 = vrot.slane %v1464_v21, 4  ;;  %v1459_v25 = vadd.f32 %v1458_v15, %v1457_v9  ;;  %v1511_v27 = vsel %vm215_vm0, %v1499_v10, 0.0  ;;  %v1471_v28 = vsel %vm215_vm0, %v7572_v23, 0.0  ;;  %v1246_v29 = vpop.f32.mrb[10].mxu0 }
 0x262   :  { %v1453_v30 = vrot.slane %v1452_v19, 2  ;;  %v1506_v46 = vadd.f32 %v1505_v20, %v1504_v13  ;;  %v1518_v43 = vsel %vm215_vm0, %v1500_v22, 0.0  ;;  %v1512_v11 = vrot.slane %v1511_v27, 4  ;;  %v1247_v61 = vpop.f32.mrb[11].mxu0 }
 0x263   :  { %v1466_v52 = vadd.f32 %v1465_v24, %v1464_v21  ;;  %v1519_v49 = vrot.slane %v1518_v43, 4  ;;  %v1460_v31 = vrot.slane %v1459_v25, 2  ;;  %v1472_v32 = vrot.slane %v1471_v28, 4 }
 0x264   :  { %v1454_v33 = vadd.f32 %v1453_v30, %v1452_v19  ;;  %v1507_v34 = vrot.slane %v1506_v46, 2  ;;  %v1513_v35 = vadd.f32 %v1512_v11, %v1511_v27  ;;  %v1501_v6 = vmul.f32 %v7572_v23, %v7572_v23 }
 0x265   :  { %v1467_v58 = vrot.slane %v1466_v52, 2  ;;  %v1520_v4 = vadd.f32 %v1519_v49, %v1518_v43  ;;  %v1461_v36 = vadd.f32 %v1460_v31, %v1459_v25  ;;  %v1473_v37 = vadd.f32 %v1472_v32, %v1471_v28 }
 0x266   :  { %v1455_v38 = vrot.slane %v1454_v33, 1  ;;  %v1508_v39 = vadd.f32 %v1507_v34, %v1506_v46  ;;  %v1514_v40 = vrot.slane %v1513_v35, 2  ;;  %v1525_v41 = vsel %vm215_vm0, %v1501_v6, 0.0 }
 0x267   :  { %v1468_v42 = vadd.f32 %v1467_v58, %v1466_v52  ;;  %v1521_v44 = vrot.slane %v1520_v4, 2  ;;  %v1462_v48 = vrot.slane %v1461_v36, 1  ;;  %v1474_v50 = vrot.slane %v1473_v37, 2 }
 0x268   :  { %v1456_v51 = vadd.f32 %v1455_v38, %v1454_v33  ;;  %v1509_v54 = vrot.slane %v1508_v39, 1  ;;  %v1515_v55 = vadd.f32 %v1514_v40, %v1513_v35  ;;  %v1526_v47 = vrot.slane %v1525_v41, 4  ;;  %v1681_v38 = vld [vmem:[%s8265_s15] sm:$0x3] }
 0x269   :  { %v1469_v45 = vrot.slane %v1468_v42, 1  ;;  %v1522_v53 = vadd.f32 %v1521_v44, %v1520_v4  ;;  %v1463_v62 = vadd.f32 %v1462_v48, %v1461_v36  ;;  %v1475_v56 = vadd.f32 %v1474_v50, %v1473_v37  ;;  %v1552_v36 = vld [vmem:[%s8264_s25] sm:$0x3] }
 0x26a   :  { %v1492_v59 = vmul.f32 0.25, %v1456_v51  ;;  %v1510_v60 = vadd.f32 %v1509_v54, %v1508_v39  ;;  %v1516_v63 = vrot.slane %v1515_v55, 1  ;;  %v1527_v1 = vadd.f32 %v1526_v47, %v1525_v41 }
 0x26b   :  { %v1470_v3 = vadd.f32 %v1469_v45, %v1468_v42  ;;  %v1523_v5 = vrot.slane %v1522_v53, 1  ;;  %v1493_v8 = vmul.f32 0.25, %v1463_v62  ;;  %v1476_v9 = vrot.slane %v1475_v56, 1  ;;  %v1553_v62 = vld [vmem:[%s8264_s25 + $0x2] sm:$0x3] }
 0x26c   :  { %v1546_v10 = vmul.f32 0.25, %v1510_v60  ;;  %v1555_v12 = vmul.f32 %v1492_v59, %v1492_v59  ;;  %v1517_v13 = vadd.f32 %v1516_v63, %v1515_v55  ;;  %v1528_v24 = vrot.slane %v1527_v1, 2 }
 0x26d   :  { %v7581_v15 = vmul.f32 0.25, %v1470_v3  ;;  %v1524_v18 = vadd.f32 %v1523_v5, %v1522_v53  ;;  %v1556_v19 = vmul.f32 %v1493_v8, %v1493_v8  ;;  %v1477_v22 = vadd.f32 %v1476_v9, %v1475_v56 }
 0x26e   :  { %v1561_v20 = vsub.f32 %v1546_v10, %v1555_v12  ;;  %v1547_v21 = vmul.f32 0.25, %v1517_v13  ;;  %v1529_v46 = vadd.f32 %v1528_v24, %v1527_v1  ;;  %v1636_v42 = vsub.f32 %v7553_v2, %v1492_v59 }
 0x26f   :  { %v1548_v25 = vmul.f32 0.25, %v1524_v18  ;;  %v1557_v27 = vmul.f32 %v7581_v15, %v7581_v15  ;;  %v1495_v30 = vmul.f32 0.25, %v1477_v22  ;;  %v1690_v44 = vrot.slane %v1681_v38, %v7501_v16 }
 0x270   :  { %v1567_v28 = vadd.f32 1e-05, %v1561_v20  ;;  %v1562_v29 = vsub.f32 %v1547_v21, %v1556_v19  ;;  %v1530_v61 = vrot.slane %v1529_v46, 1  ;;  %v1694_v48 = vrot.slane %v1681_v38, %v7503_v17  ;;  %v6476_v19 = vld [vmem:[#allocation5 + $0x200] ss:$8 sps:$4 sm:$0xff]  }
 0x271   :  { %v1563_v43 = vsub.f32 %v1548_v25, %v1557_v27  ;;  %v1558_v49 = vmul.f32 %v1495_v30, %v1495_v30  ;;  %v1637_v50 = vsub.f32 %v7559_v7, %v1493_v8  ;;  %v1682_v7 = vld [vmem:[%s8265_s15 + $0x2] sm:$0x3]  ;;  %v1638_v1 = vsub.f32 %v7566_v14, %v7581_v15  ;;  %v6481_v25 = vld [vmem:[#allocation5 + $0x214] ss:$8 sps:$4 sm:$0xff]   ;;  %v6479_v27 = vld [vmem:[#allocation5 + $0x210] ss:$8 sps:$4 sm:$0xff]  }
 0x272   :  { %6856 = vrsqrt.f32 %v1567_v28  ;;  %v1568_v11 = vadd.f32 1e-05, %v1562_v29  ;;  %v1531_v52 = vadd.f32 %v1530_v61, %v1529_v46  ;;  %v1698_v3 = vrot.slane %v1682_v7, %v7501_v16  ;;  %v6484_v28 = vld [vmem:[#allocation5 + $0x224] ss:$8 sps:$4 sm:$0xff]   ;;  %v6482_v61 = vld [vmem:[#allocation5 + $0x220] ss:$8 sps:$4 sm:$0xff]  }
 0x273   :  { %v1569_v31 = vadd.f32 1e-05, %v1563_v43  ;;  %v1702_v5 = vrot.slane %v1682_v7, %v7503_v17  ;;  %v1639_v9 = vsub.f32 %v7572_v23, %v1495_v30 }
 0x274   :  { %6858 = vrsqrt.f32 %v1568_v11  ;;  %v1549_v32 = vmul.f32 0.25, %v1531_v52  ;;  %v6524_v52 = vld [vmem:[#allocation7] ss:$8 sps:$4 sm:$0xff]  }
 0x275   :  { %6860 = vrsqrt.f32 %v1569_v31  ;;  %v6532_v31 = vld [vmem:[#allocation7 + $0x14] ss:$8 sps:$4 sm:$0xff]  }
 0x276   :  { %v1564_v33 = vsub.f32 %v1549_v32, %v1558_v49  ;;  %v6487_v49 = vld [vmem:[#allocation5 + $0x234] ss:$8 sps:$4 sm:$0xff]  }
 0x278   :  { %v1570_v34 = vadd.f32 1e-05, %v1564_v33  ;;  %v6485_v33 = vld [vmem:[#allocation5 + $0x230] ss:$8 sps:$4 sm:$0xff]  }
 0x27a   :  { %6862 = vrsqrt.f32 %v1570_v34  ;;  %v6530_v34 = vld [vmem:[#allocation7 + $0x10] ss:$8 sps:$4 sm:$0xff]  }
 0x27c   :  { %v6857_v35 = vpop.eup %6856 }
 0x27e   :  { %v6859_v6 = vpop.eup %6858 }
 0x27f   :  { %v1585_v58 = vcombine.low %v6857_v35, %v6859_v6  ;;  %v6861_v39 = vpop.eup %6860 }
 0x281   :  { %v1592_v4 = vrot.slane %v1585_v58, %v7484_v57 }
 0x283   :  { %v1599_v37 = vrot.slane %v1592_v4, %v7484_v57  ;;  %v6490_v4 = vld [vmem:[#allocation5 + $0x244] ss:$8 sps:$4 sm:$0xff]  }
 0x284   :  { %v6863_v41 = vpop.eup %6862 }
 0x285   :  { %v1633_v40 = vmul.f32 %v1599_v37, %v1552_v36  ;;  %v1600_v55 = vcombine.low %v6861_v39, %v6863_v41  ;;  %v6538_v36 = vld [vmem:[#allocation7 + $0x24] ss:$8 sps:$4 sm:$0xff]  }
 0x287   :  { %v1648_v51 = vrot.slane %v1633_v40, %v7501_v16  ;;  %v1652_v54 = vrot.slane %v1633_v40, %v7503_v17  ;;  %v1607_v53 = vrot.slane %v1600_v55, %v7484_v57  ;;  %v6536_v55 = vld [vmem:[#allocation7 + $0x20] ss:$8 sps:$4 sm:$0xff]  }
 0x289   :  { %v1675_v47 = vmul.f32 %v1648_v51, %v1636_v42  ;;  %v1676_v45 = vmul.f32 %v1652_v54, %v1637_v50  ;;  %v1614_v56 = vrot.slane %v1607_v53, %v7484_v57  ;;  %v6488_v54 = vld [vmem:[#allocation5 + $0x240] ss:$8 sps:$4 sm:$0xff]   ;;  %v6493_v53 = vld [vmem:[#allocation5 + $0x254] ss:$8 sps:$4 sm:$0xff]  }
 0x28b   :  { %v1718_v2 = vadd.f32 %v1694_v48, %v1676_v45  ;;  %v1717_v59 = vadd.f32 %v1690_v44, %v1675_v47  ;;  %v1634_v60 = vmul.f32 %v1614_v56, %v1553_v62 }
 0x28d   :  { %vm1724_vm8 = vcmp.ge.f32.partialorder %v1718_v2, 0.0  ;;  %v1730_v63 = vmul.f32 0.01, %v1718_v2  ;;  %vm1723_vm9 = vcmp.ge.f32.partialorder %v1717_v59, 0.0  ;;  %v1729_v8 = vmul.f32 0.01, %v1717_v59 }
 0x28e   :  { %v1656_v10 = vrot.slane %v1634_v60, %v7501_v16  ;;  %v1660_v12 = vrot.slane %v1634_v60, %v7503_v17 }
 0x28f   :  { %v1736_v13 = vsel %vm1724_vm8, %v1718_v2, %v1730_v63  ;;  %v1735_v20 = vsel %vm1723_vm9, %v1717_v59, %v1729_v8  ;;  %v6491_v63 = vld [vmem:[#allocation5 + $0x250] ss:$8 sps:$4 sm:$0xff]  }
 0x290   :  { %v1742_v18 = vpack.c.bf16 %v1736_v13, %v1736_v13  ;;  %v1677_v21 = vmul.f32 %v1656_v10, %v1638_v1  ;;  %v1678_v22 = vmul.f32 %v1660_v12, %v1639_v9  ;;  %v1741_v24 = vpack.c.bf16 %v1735_v20, %v1735_v20 }
 0x292   :  { %2035 = vmatprep.mubr.bf16.mxu0 %v1742_v18  ;;  %v1720_v14 = vadd.f32 %v1702_v5, %v1678_v22  ;;  %v1719_v15 = vadd.f32 %v1698_v3, %v1677_v21  ;;  %v6496_v5 = vld [vmem:[#allocation5 + $0x264] ss:$8 sps:$4 sm:$0xff]   ;;  %v6499_v22 = vld [vmem:[#allocation5 + $0x274] ss:$8 sps:$4 sm:$0xff]  }
 0x293   :  { %2036 = vmatmul.mubr.bf16.vlgmr.msra.gmra.mrb[12].mxu0 %v1741_v24 }
 0x294   :  { %2406 = vmatpush1.bf16.msra.mxu0 %v6476_v19  ;;  %vm1726_vm10 = vcmp.ge.f32.partialorder %v1720_v14, 0.0  ;;  %v1732_v23 = vmul.f32 0.01, %v1720_v14  ;;  %vm1725_vm11 = vcmp.ge.f32.partialorder %v1719_v15, 0.0  ;;  %v1731_v29 = vmul.f32 0.01, %v1719_v15 }
 0x295   :  { %2407 = vmatprep.subr.bf16.mxu0 %v6481_v25  ;;  %v6494_v19 = vld [vmem:[#allocation5 + $0x260] ss:$8 sps:$4 sm:$0xff]  }
 0x296   :  { %v1738_v30 = vsel %vm1726_vm10, %v1720_v14, %v1732_v23  ;;  %v1737_v46 = vsel %vm1725_vm11, %v1719_v15, %v1731_v29  ;;  %v6497_v23 = vld [vmem:[#allocation5 + $0x270] ss:$8 sps:$4 sm:$0xff]  }
 0x297   :  { %v1744_v43 = vpack.c.bf16 %v1738_v30, %v1738_v30  ;;  %v1743_v11 = vpack.c.bf16 %v1737_v46, %v1737_v46  ;;  %v6502_v46 = vld [vmem:[#allocation5 + $0x284] ss:$8 sps:$4 sm:$0xff]  }
 0x298   :  { %2408 = vmatpush1.bf16.msra.mxu0 %v6479_v27 }
 0x299   :  { %2409 = vmatprep.subr.bf16.mxu0 %v6484_v28  ;;  %2236 = vmatprep.mubr.bf16.mxu1 %v1744_v43 }
 0x29a   :  { %2237 = vmatmul.mubr.bf16.vlgmr.msra.gmra.mrb[12].mxu1 %v1743_v11 }
 0x29b   :  { %3000 = vmatpush1.bf16.msra.mxu1 %v6524_v52  ;;  %v6500_v52 = vld [vmem:[#allocation5 + $0x280] ss:$8 sps:$4 sm:$0xff]  }
 0x29c   :  { %2410 = vmatpush1.bf16.msra.mxu0 %v6482_v61  ;;  %v7614_v32 = vpop.f32.mrb[8].mxu1  ;;  %3001 = vmatprep.subr.bf16.mxu1 %v6532_v31  ;;  %v6505_v31 = vld [vmem:[#allocation5 + $0x294] ss:$8 sps:$4 sm:$0xff]  }
 0x29d   :  { %v1478_v35 = vsel %vm215_vm0, %v7614_v32, 0.0  ;;  %v1502_v6 = vmul.f32 %v7614_v32, %v7614_v32  ;;  %v7620_v58 = vpop.f32.mrb[9].mxu1  ;;  %2411 = vmatprep.subr.bf16.mxu0 %v6487_v49 }
 0x29e   :  { %v1479_v37 = vrot.slane %v1478_v35, 4  ;;  %v1485_v38 = vsel %vm215_vm0, %v7620_v58, 0.0  ;;  %v1503_v39 = vmul.f32 %v7620_v58, %v7620_v58  ;;  %v1447_v40 = vpop.f32.mrb[10].mxu1 }
 0x29f   :  { %v1532_v41 = vsel %vm215_vm0, %v1502_v6, 0.0  ;;  %v1486_v42 = vrot.slane %v1485_v38, 4  ;;  %v1448_v44 = vpop.f32.mrb[11].mxu1  ;;  %3002 = vmatpush1.bf16.msra.mxu1 %v6530_v34  ;;  %v6508_v34 = vld [vmem:[#allocation5 + $0x2a4] ss:$8 sps:$4 sm:$0xff]  }
 0x2a0   :  { %v1480_v48 = vadd.f32 %v1479_v37, %v1478_v35  ;;  %v1533_v50 = vrot.slane %v1532_v41, 4  ;;  %v1539_v51 = vsel %vm215_vm0, %v1503_v39, 0.0  ;;  %2412 = vmatpush1.bf16.msra.mxu0 %v6485_v33  ;;  %3003 = vmatprep.subr.bf16.mxu1 %v6538_v36  ;;  %v6503_v33 = vld [vmem:[#allocation5 + $0x290] ss:$8 sps:$4 sm:$0xff]   ;;  %v6506_v35 = vld [vmem:[#allocation5 + $0x2a0] ss:$8 sps:$4 sm:$0xff]  }
 0x2a1   :  { %v1487_v47 = vadd.f32 %v1486_v42, %v1485_v38  ;;  %v1540_v45 = vrot.slane %v1539_v51, 4  ;;  %2413 = vmatprep.subr.bf16.mxu0 %v6490_v4  ;;  %v6511_v6 = vld [vmem:[#allocation5 + $0x2b4] ss:$8 sps:$4 sm:$0xff]   ;;  %v6509_v36 = vld [vmem:[#allocation5 + $0x2b0] ss:$8 sps:$4 sm:$0xff]  }
 0x2a2   :  { %v1481_v62 = vrot.slane %v1480_v48, 2  ;;  %v1534_v2 = vadd.f32 %v1533_v50, %v1532_v41  ;;  %v6514_v38 = vld [vmem:[#allocation5 + $0x2c4] ss:$8 sps:$4 sm:$0xff]   ;;  %v6512_v41 = vld [vmem:[#allocation5 + $0x2c0] ss:$8 sps:$4 sm:$0xff]  }
 0x2a3   :  { %v1488_v56 = vrot.slane %v1487_v47, 2  ;;  %v1541_v7 = vadd.f32 %v1540_v45, %v1539_v51  ;;  %3004 = vmatpush1.bf16.msra.mxu1 %v6536_v55  ;;  %v1554_v42 = vld [vmem:[%s8264_s25 + $0x4] sm:$0x3]  ;;  %v6517_v44 = vld [vmem:[#allocation5 + $0x2d4] ss:$8 sps:$4 sm:$0xff]  }
 0x2a4   :  { %v1482_v59 = vadd.f32 %v1481_v62, %v1480_v48  ;;  %v1535_v60 = vrot.slane %v1534_v2, 2  ;;  %2414 = vmatpush1.bf16.msra.mxu0 %v6488_v54  ;;  %v1683_v50 = vld [vmem:[%s8265_s15 + $0x4] sm:$0x3] }
 0x2a5   :  { %v1489_v1 = vadd.f32 %v1488_v56, %v1487_v47  ;;  %v1542_v3 = vrot.slane %v1541_v7, 2  ;;  %2415 = vmatprep.subr.bf16.mxu0 %v6493_v53  ;;  %v6515_v47 = vld [vmem:[#allocation5 + $0x2d0] ss:$8 sps:$4 sm:$0xff]   ;;  %v6520_v45 = vld [vmem:[#allocation5 + $0x2e4] ss:$8 sps:$4 sm:$0xff]   ;;  %v1710_v56 = vrot.slane %v1683_v50, %v7503_v17 }
 0x2a6   :  { %v1483_v8 = vrot.slane %v1482_v59, 1  ;;  %v1536_v9 = vadd.f32 %v1535_v60, %v1534_v2  ;;  %v1706_v2 = vrot.slane %v1683_v50, %v7501_v16  ;;  %v6518_v60 = vld [vmem:[#allocation5 + $0x2e0] ss:$8 sps:$4 sm:$0xff]   ;;  %v6589_v50 = vld [vmem:[#allocation7 + $0x1a4] ss:$8 sps:$4 sm:$0xff]  }
 0x2a7   :  { %v1490_v10 = vrot.slane %v1489_v1, 1  ;;  %v1543_v12 = vadd.f32 %v1542_v3, %v1541_v7 }
 0x2a8   :  { %v1484_v13 = vadd.f32 %v1483_v8, %v1482_v59  ;;  %v1537_v18 = vrot.slane %v1536_v9, 1  ;;  %2416 = vmatpush1.bf16.msra.mxu0 %v6491_v63  ;;  %v6529_v8 = vld [vmem:[#allocation7 + $0x104] ss:$8 sps:$4 sm:$0xff]  }
 0x2a9   :  { %v1491_v20 = vadd.f32 %v1490_v10, %v1489_v1  ;;  %v1544_v21 = vrot.slane %v1543_v12, 1  ;;  %2417 = vmatprep.subr.bf16.mxu0 %v6496_v5  ;;  %v6521_v1 = vld [vmem:[#allocation5 + $0x2f0] ss:$8 sps:$4 sm:$0xff]  }
 0x2aa   :  { %v1496_v24 = vmul.f32 0.25, %v1484_v13  ;;  %v1538_v25 = vadd.f32 %v1537_v18, %v1536_v9  ;;  %v6527_v18 = vld [vmem:[#allocation7 + $0x100] ss:$8 sps:$4 sm:$0xff]  }
 0x2ab   :  { %v1497_v14 = vmul.f32 0.25, %v1491_v20  ;;  %v1545_v15 = vadd.f32 %v1544_v21, %v1543_v12  ;;  %v6533_v20 = vld [vmem:[#allocation7 + $0x110] ss:$8 sps:$4 sm:$0xff]   ;;  %v6541_v21 = vld [vmem:[#allocation7 + $0x124] ss:$8 sps:$4 sm:$0xff]  }
 0x2ac   :  { %v1550_v27 = vmul.f32 0.25, %v1538_v25  ;;  %v1559_v28 = vmul.f32 %v1496_v24, %v1496_v24  ;;  %2418 = vmatpush1.bf16.msra.mxu0 %v6494_v19  ;;  %v1640_v51 = vsub.f32 %v7614_v32, %v1496_v24  ;;  %v6523_v32 = vld [vmem:[#allocation5 + $0x2f4] ss:$8 sps:$4 sm:$0xff]   ;;  %v6542_v25 = vld [vmem:[#allocation7 + $0x30] ss:$8 sps:$4 sm:$0xff]  }
 0x2ad   :  { %v1551_v29 = vmul.f32 0.25, %v1545_v15  ;;  %v1560_v30 = vmul.f32 %v1497_v14, %v1497_v14  ;;  %2419 = vmatprep.subr.bf16.mxu0 %v6499_v22  ;;  %v1641_v55 = vsub.f32 %v7620_v58, %v1497_v14  ;;  %v6535_v19 = vld [vmem:[#allocation7 + $0x114] ss:$8 sps:$4 sm:$0xff]   ;;  %v6539_v22 = vld [vmem:[#allocation7 + $0x120] ss:$8 sps:$4 sm:$0xff]  }
 0x2ae   :  { %v1565_v43 = vsub.f32 %v1550_v27, %v1559_v28  ;;  %v6544_v24 = vld [vmem:[#allocation7 + $0x34] ss:$8 sps:$4 sm:$0xff]   ;;  %v6545_v15 = vld [vmem:[#allocation7 + $0x130] ss:$8 sps:$4 sm:$0xff]   ;;  %v6550_v27 = vld [vmem:[#allocation7 + $0x44] ss:$8 sps:$4 sm:$0xff]  }
 0x2af   :  { %v1566_v11 = vsub.f32 %v1551_v29, %v1560_v30  ;;  %v6547_v14 = vld [vmem:[#allocation7 + $0x134] ss:$8 sps:$4 sm:$0xff]   ;;  %3005 = vmatprep.subr.bf16.mxu1 %v6544_v24  ;;  %v6548_v28 = vld [vmem:[#allocation7 + $0x40] ss:$8 sps:$4 sm:$0xff]  }
 0x2b0   :  { %v1571_v61 = vadd.f32 1e-05, %v1565_v43  ;;  %2420 = vmatpush1.bf16.msra.mxu0 %v6497_v23  ;;  %3006 = vmatpush1.bf16.msra.mxu1 %v6542_v25  ;;  %v6553_v23 = vld [vmem:[#allocation7 + $0x144] ss:$8 sps:$4 sm:$0xff]   ;;  %v6551_v29 = vld [vmem:[#allocation7 + $0x140] ss:$8 sps:$4 sm:$0xff]  }
 0x2b1   :  { %v1572_v49 = vadd.f32 1e-05, %v1566_v11  ;;  %2421 = vmatprep.subr.bf16.mxu0 %v6502_v46  ;;  %3007 = vmatprep.subr.bf16.mxu1 %v6550_v27  ;;  %v6556_v30 = vld [vmem:[#allocation7 + $0x54] ss:$8 sps:$4 sm:$0xff]   ;;  %v6554_v46 = vld [vmem:[#allocation7 + $0x50] ss:$8 sps:$4 sm:$0xff]  }
 0x2b2   :  { %6864 = vrsqrt.f32 %v1571_v61  ;;  %v6559_v43 = vld [vmem:[#allocation7 + $0x154] ss:$8 sps:$4 sm:$0xff]   ;;  %v6557_v11 = vld [vmem:[#allocation7 + $0x150] ss:$8 sps:$4 sm:$0xff]   ;;  %v6562_v61 = vld [vmem:[#allocation7 + $0x64] ss:$8 sps:$4 sm:$0xff]  }
 0x2b3   :  { %6866 = vrsqrt.f32 %v1572_v49  ;;  %v6565_v49 = vld [vmem:[#allocation7 + $0x164] ss:$8 sps:$4 sm:$0xff]  }
 0x2b4   :  { %2422 = vmatpush1.bf16.msra.mxu0 %v6500_v52  ;;  %3008 = vmatpush1.bf16.msra.mxu1 %v6548_v28  ;;  %v6560_v52 = vld [vmem:[#allocation7 + $0x60] ss:$8 sps:$4 sm:$0xff]  }
 0x2b5   :  { %2423 = vmatprep.subr.bf16.mxu0 %v6505_v31  ;;  %3009 = vmatprep.subr.bf16.mxu1 %v6556_v30  ;;  %v6563_v31 = vld [vmem:[#allocation7 + $0x160] ss:$8 sps:$4 sm:$0xff]  }
 0x2b8   :  { %2424 = vmatpush1.bf16.msra.mxu0 %v6503_v33  ;;  %3010 = vmatpush1.bf16.msra.mxu1 %v6554_v46  ;;  %v6568_v33 = vld [vmem:[#allocation7 + $0x74] ss:$8 sps:$4 sm:$0xff]  }
 0x2b9   :  { %2425 = vmatprep.subr.bf16.mxu0 %v6508_v34  ;;  %3011 = vmatprep.subr.bf16.mxu1 %v6562_v61  ;;  %v6566_v34 = vld [vmem:[#allocation7 + $0x70] ss:$8 sps:$4 sm:$0xff]  }
 0x2bc   :  { %v6865_v4 = vpop.eup %6864  ;;  %2426 = vmatpush1.bf16.msra.mxu0 %v6506_v35  ;;  %3012 = vmatpush1.bf16.msra.mxu1 %v6560_v52  ;;  %v6571_v35 = vld [vmem:[#allocation7 + $0x174] ss:$8 sps:$4 sm:$0xff]  }
 0x2bd   :  { %v6867_v37 = vpop.eup %6866  ;;  %2427 = vmatprep.subr.bf16.mxu0 %v6511_v6  ;;  %3013 = vmatprep.subr.bf16.mxu1 %v6568_v33  ;;  %v6569_v6 = vld [vmem:[#allocation7 + $0x170] ss:$8 sps:$4 sm:$0xff]  }
 0x2be   :  { %v1615_v39 = vcombine.low %v6865_v4, %v6867_v37  ;;  %v6574_v4 = vld [vmem:[#allocation7 + $0x84] ss:$8 sps:$4 sm:$0xff]  }
 0x2bf   :  { %v6577_v37 = vld [vmem:[#allocation7 + $0x184] ss:$8 sps:$4 sm:$0xff]  }
 0x2c0   :  { %v1622_v40 = vrot.slane %v1615_v39, %v7484_v57  ;;  %2428 = vmatpush1.bf16.msra.mxu0 %v6509_v36  ;;  %3014 = vmatpush1.bf16.msra.mxu1 %v6566_v34  ;;  %v6572_v36 = vld [vmem:[#allocation7 + $0x80] ss:$8 sps:$4 sm:$0xff]   ;;  %v6580_v39 = vld [vmem:[#allocation7 + $0x94] ss:$8 sps:$4 sm:$0xff]  }
 0x2c1   :  { %2429 = vmatprep.subr.bf16.mxu0 %v6514_v38  ;;  %3015 = vmatprep.subr.bf16.mxu1 %v6574_v4  ;;  %v6575_v38 = vld [vmem:[#allocation7 + $0x180] ss:$8 sps:$4 sm:$0xff]  }
 0x2c2   :  { %v1629_v48 = vrot.slane %v1622_v40, %v7484_v57  ;;  %v6578_v40 = vld [vmem:[#allocation7 + $0x90] ss:$8 sps:$4 sm:$0xff]  }
 0x2c4   :  { %v1635_v54 = vmul.f32 %v1629_v48, %v1554_v42  ;;  %2430 = vmatpush1.bf16.msra.mxu0 %v6512_v41  ;;  %3016 = vmatpush1.bf16.msra.mxu1 %v6572_v36  ;;  %v6583_v41 = vld [vmem:[#allocation7 + $0x194] ss:$8 sps:$4 sm:$0xff]   ;;  %v6581_v42 = vld [vmem:[#allocation7 + $0x190] ss:$8 sps:$4 sm:$0xff]   ;;  %v6584_v48 = vld [vmem:[#allocation7 + $0xa0] ss:$8 sps:$4 sm:$0xff]  }
 0x2c5   :  { %2431 = vmatprep.subr.bf16.mxu0 %v6517_v44  ;;  %3017 = vmatprep.subr.bf16.mxu1 %v6580_v39  ;;  %v6586_v44 = vld [vmem:[#allocation7 + $0xa4] ss:$8 sps:$4 sm:$0xff]  }
 0x2c6   :  { %v1664_v53 = vrot.slane %v1635_v54, %v7501_v16  ;;  %v1668_v62 = vrot.slane %v1635_v54, %v7503_v17  ;;  %v6592_v54 = vld [vmem:[#allocation7 + $0xb4] ss:$8 sps:$4 sm:$0xff]  }
 0x2c8   :  { %v1679_v7 = vmul.f32 %v1664_v53, %v1640_v51  ;;  %v1680_v59 = vmul.f32 %v1668_v62, %v1641_v55  ;;  %2432 = vmatpush1.bf16.msra.mxu0 %v6515_v47  ;;  %3018 = vmatpush1.bf16.msra.mxu1 %v6578_v40  ;;  %v6587_v51 = vld [vmem:[#allocation7 + $0x1a0] ss:$8 sps:$4 sm:$0xff]   ;;  %v6590_v55 = vld [vmem:[#allocation7 + $0xb0] ss:$8 sps:$4 sm:$0xff]   ;;  %v6595_v47 = vld [vmem:[#allocation7 + $0x1b4] ss:$8 sps:$4 sm:$0xff]  }
 0x2c9   :  { %2433 = vmatprep.subr.bf16.mxu0 %v6520_v45  ;;  %3019 = vmatprep.subr.bf16.mxu1 %v6586_v44  ;;  %v6593_v45 = vld [vmem:[#allocation7 + $0x1b0] ss:$8 sps:$4 sm:$0xff]   ;;  %v6598_v53 = vld [vmem:[#allocation7 + $0xc4] ss:$8 sps:$4 sm:$0xff]   ;;  %v6596_v62 = vld [vmem:[#allocation7 + $0xc0] ss:$8 sps:$4 sm:$0xff]  }
 0x2ca   :  { %v1722_v63 = vadd.f32 %v1710_v56, %v1680_v59  ;;  %v1721_v58 = vadd.f32 %v1706_v2, %v1679_v7  ;;  %v6601_v2 = vld [vmem:[#allocation7 + $0x1c4] ss:$8 sps:$4 sm:$0xff]   ;;  %v6599_v56 = vld [vmem:[#allocation7 + $0x1c0] ss:$8 sps:$4 sm:$0xff]   ;;  %v6604_v7 = vld [vmem:[#allocation7 + $0xd4] ss:$8 sps:$4 sm:$0xff]  }
 0x2cb   :  { %v6602_v59 = vld [vmem:[#allocation7 + $0xd0] ss:$8 sps:$4 sm:$0xff]  }
 0x2cc   :  { %2434 = vmatpush1.bf16.msra.mxu0 %v6518_v60  ;;  %vm1728_vm12 = vcmp.ge.f32.partialorder %v1722_v63, 0.0  ;;  %v1734_v3 = vmul.f32 0.01, %v1722_v63  ;;  %vm1727_vm13 = vcmp.ge.f32.partialorder %v1721_v58, 0.0  ;;  %v1733_v5 = vmul.f32 0.01, %v1721_v58  ;;  %3020 = vmatpush1.bf16.msra.mxu1 %v6584_v48 }
 0x2cd   :  { %2435 = vmatprep.subr.bf16.mxu0 %v6523_v32  ;;  %3021 = vmatprep.subr.bf16.mxu1 %v6592_v54  ;;  %v6607_v60 = vld [vmem:[#allocation7 + $0x1d4] ss:$8 sps:$4 sm:$0xff]   ;;  %v6605_v32 = vld [vmem:[#allocation7 + $0x1d0] ss:$8 sps:$4 sm:$0xff]  }
 0x2ce   :  { %v1740_v9 = vsel %vm1728_vm12, %v1722_v63, %v1734_v3  ;;  %v1739_v10 = vsel %vm1727_vm13, %v1721_v58, %v1733_v5  ;;  %v6610_v63 = vld [vmem:[#allocation7 + $0xe4] ss:$8 sps:$4 sm:$0xff]   ;;  %v6608_v58 = vld [vmem:[#allocation7 + $0xe0] ss:$8 sps:$4 sm:$0xff]   ;;  %v6614_v5 = vld [vmem:[#allocation7 + $0xf0] ss:$8 sps:$4 sm:$0xff]  }
 0x2cf   :  { %v1746_v12 = vpack.c.bf16 %v1740_v9, %v1740_v9  ;;  %v1745_v13 = vpack.c.bf16 %v1739_v10, %v1739_v10  ;;  %v6611_v3 = vld [vmem:[#allocation7 + $0x1e0] ss:$8 sps:$4 sm:$0xff]   ;;  %v6617_v9 = vld [vmem:[#allocation7 + $0x1f0] ss:$8 sps:$4 sm:$0xff]   ;;  %v6619_v10 = vld [vmem:[#allocation7 + $0x1f4] ss:$8 sps:$4 sm:$0xff]  }
 0x2d0   :  { %2436 = vmatpush1.bf16.msra.mxu0 %v6521_v1  ;;  %3022 = vmatpush1.bf16.msra.mxu1 %v6590_v55  ;;  %v6613_v1 = vld [vmem:[#allocation7 + $0x1e4] ss:$8 sps:$4 sm:$0xff]  }
 0x2d1   :  { %2437 = vmatprep.mubr.bf16.mxu0 %v1746_v12  ;;  %3200 = vmatprep.subr.bf16.mxu0 %v6529_v8  ;;  %v6616_v8 = vld [vmem:[#allocation7 + $0xf4] ss:$8 sps:$4 sm:$0xff]   ;;  %v6622_v12 = vld [vmem:[#allocation7 + $0x204] ss:$8 sps:$4 sm:$0xff]  }
 0x2d2   :  { %3023 = vmatprep.subr.bf16.mxu1 %v6598_v53 }
 0x2d3   :  { %2438 = vmatmul.mubr.bf16.vlgmr.msra.gmra.mrb[16].mxu0 %v1745_v13  ;;  %v6670_v13 = vld [vmem:[#allocation8 + $0x4] ss:$8 sps:$4 sm:$0xff]  }
 0x2d4   :  { %3201 = vmatpush1.bf16.msra.mxu0 %v6527_v18  ;;  %3024 = vmatpush1.bf16.msra.mxu1 %v6596_v62 }
 0x2d5   :  { %3202 = vmatprep.subr.bf16.mxu0 %v6535_v19  ;;  %3025 = vmatprep.subr.bf16.mxu1 %v6604_v7 }
 0x2d8   :  { %3203 = vmatpush1.bf16.msra.mxu0 %v6533_v20  ;;  %3026 = vmatpush1.bf16.msra.mxu1 %v6602_v59 }
 0x2d9   :  { %3204 = vmatprep.subr.bf16.mxu0 %v6541_v21  ;;  %3027 = vmatprep.subr.bf16.mxu1 %v6610_v63 }
 0x2dc   :  { %3205 = vmatpush1.bf16.msra.mxu0 %v6539_v22  ;;  %3028 = vmatpush1.bf16.msra.mxu1 %v6608_v58 }
 0x2dd   :  { %3206 = vmatprep.subr.bf16.mxu0 %v6547_v14  ;;  %3029 = vmatprep.subr.bf16.mxu1 %v6616_v8 }
 0x2e0   :  { %3207 = vmatpush1.bf16.msra.mxu0 %v6545_v15  ;;  %3030 = vmatpush1.bf16.msra.mxu1 %v6614_v5 }
 0x2e1   :  { %3208 = vmatprep.subr.bf16.mxu0 %v6553_v23  ;;  %3401 = vmatprep.subr.bf16.mxu1 %v6622_v12 }
 0x2e4   :  { %3209 = vmatpush1.bf16.msra.mxu0 %v6551_v29 }
 0x2e5   :  { %3210 = vmatprep.subr.bf16.mxu0 %v6559_v43 }
 0x2e8   :  { %3211 = vmatpush1.bf16.msra.mxu0 %v6557_v11 }
 0x2e9   :  { %3212 = vmatprep.subr.bf16.mxu0 %v6565_v49 }
 0x2ec   :  { %3213 = vmatpush1.bf16.msra.mxu0 %v6563_v31 }
 0x2ed   :  { %3214 = vmatprep.subr.bf16.mxu0 %v6571_v35 }
 0x2f0   :  { %3215 = vmatpush1.bf16.msra.mxu0 %v6569_v6 }
 0x2f1   :  { %3216 = vmatprep.subr.bf16.mxu0 %v6577_v37 }
 0x2f4   :  { %3217 = vmatpush1.bf16.msra.mxu0 %v6575_v38 }
 0x2f5   :  { %3218 = vmatprep.subr.bf16.mxu0 %v6583_v41 }
 0x2f8   :  { %3219 = vmatpush1.bf16.msra.mxu0 %v6581_v42 }
 0x2f9   :  { %3220 = vmatprep.subr.bf16.mxu0 %v6589_v50 }
 0x2fc   :  { %3221 = vmatpush1.bf16.msra.mxu0 %v6587_v51 }
 0x2fd   :  { %3222 = vmatprep.subr.bf16.mxu0 %v6595_v47 }
 0x300   :  { %3223 = vmatpush1.bf16.msra.mxu0 %v6593_v45 }
 0x301   :  { %3224 = vmatprep.subr.bf16.mxu0 %v6601_v2 }
 0x304   :  { %3225 = vmatpush1.bf16.msra.mxu0 %v6599_v56 }
 0x305   :  { %3226 = vmatprep.subr.bf16.mxu0 %v6607_v60 }
 0x308   :  { %3227 = vmatpush1.bf16.msra.mxu0 %v6605_v32 }
 0x309   :  { %3228 = vmatprep.subr.bf16.mxu0 %v6613_v1 }
 0x30c   :  { %3229 = vmatpush1.bf16.msra.mxu0 %v6611_v3 }
 0x30d   :  { %3230 = vmatprep.subr.bf16.mxu0 %v6619_v10 }
 0x310   :  { %3231 = vmatpush1.bf16.msra.mxu0 %v6617_v9 }
 0x311   :  { %3995 = vmatprep.subr.bf16.mxu0 %v6670_v13 }
 0x366   :  { %v7642_v18 = vpop.f32.mrb[12].mxu0 }
 0x367   :  { %v2446_v19 = vsel %vm215_vm0, %v7642_v18, 0.0  ;;  %v2494_v20 = vmul.f32 %v7642_v18, %v7642_v18  ;;  %v7648_v21 = vpop.f32.mrb[13].mxu0 }
 0x368   :  { %v2447_v22 = vrot.slane %v2446_v19, 4  ;;  %v2453_v24 = vsel %vm215_vm0, %v7648_v21, 0.0  ;;  %v2495_v25 = vmul.f32 %v7648_v21, %v7648_v21  ;;  %v2041_v14 = vpop.f32.mrb[14].mxu0 }
 0x369   :  { %v2500_v15 = vsel %vm215_vm0, %v2494_v20, 0.0  ;;  %v2454_v27 = vrot.slane %v2453_v24, 4  ;;  %v2042_v28 = vpop.f32.mrb[15].mxu0 }
 0x36a   :  { %v2448_v23 = vadd.f32 %v2447_v22, %v2446_v19  ;;  %v2501_v29 = vrot.slane %v2500_v15, 4  ;;  %v2507_v30 = vsel %vm215_vm0, %v2495_v25, 0.0 }
 0x36b   :  { %v2455_v46 = vadd.f32 %v2454_v27, %v2453_v24  ;;  %v2508_v43 = vrot.slane %v2507_v30, 4 }
 0x36c   :  { %v2449_v11 = vrot.slane %v2448_v23, 2  ;;  %v2502_v61 = vadd.f32 %v2501_v29, %v2500_v15 }
 0x36d   :  { %v2456_v52 = vrot.slane %v2455_v46, 2  ;;  %v2509_v49 = vadd.f32 %v2508_v43, %v2507_v30  ;;  %v7656_v34 = vpop.f32.mrb[12].mxu1 }
 0x36e   :  { %v2450_v31 = vadd.f32 %v2449_v11, %v2448_v23  ;;  %v2503_v33 = vrot.slane %v2502_v61, 2  ;;  %v2460_v35 = vsel %vm215_vm0, %v7656_v34, 0.0  ;;  %v2496_v6 = vmul.f32 %v7656_v34, %v7656_v34  ;;  %v7662_v37 = vpop.f32.mrb[13].mxu1 }
 0x36f   :  { %v2457_v4 = vadd.f32 %v2456_v52, %v2455_v46  ;;  %v2510_v36 = vrot.slane %v2509_v49, 2  ;;  %v2461_v40 = vrot.slane %v2460_v35, 4  ;;  %v2467_v41 = vsel %vm215_vm0, %v7662_v37, 0.0  ;;  %v2242_v42 = vpop.f32.mrb[14].mxu1 }
 0x370   :  { %v2451_v38 = vrot.slane %v2450_v31, 1  ;;  %v2504_v39 = vadd.f32 %v2503_v33, %v2502_v61  ;;  %v2514_v44 = vsel %vm215_vm0, %v2496_v6, 0.0  ;;  %v2468_v51 = vrot.slane %v2467_v41, 4  ;;  %v2243_v54 = vpop.f32.mrb[15].mxu1 }
 0x371   :  { %v2458_v48 = vrot.slane %v2457_v4, 1  ;;  %v2511_v50 = vadd.f32 %v2510_v36, %v2509_v49  ;;  %v2462_v45 = vadd.f32 %v2461_v40, %v2460_v35  ;;  %v2515_v53 = vrot.slane %v2514_v44, 4  ;;  %v2548_v54 = vld [vmem:[%s8220_s10] sm:$0x3] }
 0x372   :  { %v2452_v55 = vadd.f32 %v2451_v38, %v2450_v31  ;;  %v2505_v47 = vrot.slane %v2504_v39, 1  ;;  %v2469_v56 = vadd.f32 %v2468_v51, %v2467_v41  ;;  %v2497_v7 = vmul.f32 %v7662_v37, %v7662_v37 }
 0x373   :  { %v2459_v62 = vadd.f32 %v2458_v48, %v2457_v4  ;;  %v2512_v2 = vrot.slane %v2511_v50, 1  ;;  %v2463_v32 = vrot.slane %v2462_v45, 2  ;;  %v2516_v63 = vadd.f32 %v2515_v53, %v2514_v44 }
 0x374   :  { %v2488_v59 = vmul.f32 0.25, %v2452_v55  ;;  %v2506_v60 = vadd.f32 %v2505_v47, %v2504_v39  ;;  %v2470_v3 = vrot.slane %v2469_v56, 2  ;;  %v2521_v5 = vsel %vm215_vm0, %v2497_v7, 0.0  ;;  %v2677_v47 = vld [vmem:[%s8221_s11] sm:$0x3] }
 0x375   :  { %v2489_v58 = vmul.f32 0.25, %v2459_v62  ;;  %v2513_v1 = vadd.f32 %v2512_v2, %v2511_v50  ;;  %v2464_v10 = vadd.f32 %v2463_v32, %v2462_v45  ;;  %v2517_v12 = vrot.slane %v2516_v63, 2 }
 0x376   :  { %v2542_v8 = vmul.f32 0.25, %v2506_v60  ;;  %v2551_v9 = vmul.f32 %v2488_v59, %v2488_v59  ;;  %v2471_v24 = vadd.f32 %v2470_v3, %v2469_v56  ;;  %v2522_v25 = vrot.slane %v2521_v5, 4 }
 0x377   :  { %v2543_v13 = vmul.f32 0.25, %v2513_v1  ;;  %v2552_v19 = vmul.f32 %v2489_v58, %v2489_v58  ;;  %v2465_v22 = vrot.slane %v2464_v10, 1  ;;  %v2518_v14 = vadd.f32 %v2517_v12, %v2516_v63 }
 0x378   :  { %v2557_v20 = vsub.f32 %v2542_v8, %v2551_v9  ;;  %v2472_v23 = vrot.slane %v2471_v24, 1  ;;  %v2523_v29 = vadd.f32 %v2522_v25, %v2521_v5  ;;  %v2686_v53 = vrot.slane %v2677_v47, %v7501_v16  ;;  %v6625_v25 = vld [vmem:[#allocation7 + $0x214] ss:$8 sps:$4 sm:$0xff]  }
 0x379   :  { %v2558_v15 = vsub.f32 %v2543_v13, %v2552_v19  ;;  %v2466_v28 = vadd.f32 %v2465_v22, %v2464_v10  ;;  %v2519_v30 = vrot.slane %v2518_v14, 1  ;;  %v2690_v62 = vrot.slane %v2677_v47, %v7503_v17  ;;  %v2678_v19 = vld [vmem:[%s8221_s11 + $0x2] sm:$0x3] }
 0x37a   :  { %v2563_v27 = vadd.f32 1e-05, %v2557_v20  ;;  %v2473_v11 = vadd.f32 %v2472_v23, %v2471_v24  ;;  %v2524_v61 = vrot.slane %v2523_v29, 2  ;;  %v2632_v2 = vsub.f32 %v7642_v18, %v2488_v59  ;;  %v2549_v18 = vld [vmem:[%s8220_s10 + $0x2] sm:$0x3] }
 0x37b   :  { %v2564_v46 = vadd.f32 1e-05, %v2558_v15  ;;  %v7670_v43 = vmul.f32 0.25, %v2466_v28  ;;  %v2520_v52 = vadd.f32 %v2519_v30, %v2518_v14  ;;  %v2633_v56 = vsub.f32 %v7648_v21, %v2489_v58  ;;  %v6620_v22 = vld [vmem:[#allocation7 + $0x200] ss:$8 sps:$4 sm:$0xff]  }
 0x37c   :  { %6868 = vrsqrt.f32 %v2563_v27  ;;  %v7674_v31 = vmul.f32 0.25, %v2473_v11  ;;  %v2525_v33 = vadd.f32 %v2524_v61, %v2523_v29  ;;  %v2694_v15 = vrot.slane %v2678_v19, %v7501_v16  ;;  %v6628_v11 = vld [vmem:[#allocation7 + $0x224] ss:$8 sps:$4 sm:$0xff]  }
 0x37d   :  { %6870 = vrsqrt.f32 %v2564_v46  ;;  %v2553_v49 = vmul.f32 %v7670_v43, %v7670_v43  ;;  %v2544_v35 = vmul.f32 0.25, %v2520_v52  ;;  %v2698_v27 = vrot.slane %v2678_v19, %v7503_v17  ;;  %v6623_v46 = vld [vmem:[#allocation7 + $0x210] ss:$8 sps:$4 sm:$0xff]  }
 0x37e   :  { %v2526_v6 = vrot.slane %v2525_v33, 1  ;;  %v2554_v38 = vmul.f32 %v7674_v31, %v7674_v31  ;;  %v2634_v28 = vsub.f32 %v7656_v34, %v7670_v43  ;;  %v2635_v23 = vsub.f32 %v7662_v37, %v7674_v31 }
 0x37f   :  { %v2559_v4 = vsub.f32 %v2544_v35, %v2553_v49  ;;  %v6626_v35 = vld [vmem:[#allocation7 + $0x220] ss:$8 sps:$4 sm:$0xff]  }
 0x380   :  { %v2527_v36 = vadd.f32 %v2526_v6, %v2525_v33  ;;  %v6631_v6 = vld [vmem:[#allocation7 + $0x234] ss:$8 sps:$4 sm:$0xff]  }
 0x381   :  { %v2565_v39 = vadd.f32 1e-05, %v2559_v4  ;;  %v6629_v4 = vld [vmem:[#allocation7 + $0x230] ss:$8 sps:$4 sm:$0xff]  }
 0x382   :  { %v2545_v40 = vmul.f32 0.25, %v2527_v36 }
 0x383   :  { %6872 = vrsqrt.f32 %v2565_v39 }
 0x384   :  { %v2560_v42 = vsub.f32 %v2545_v40, %v2554_v38  ;;  %v6634_v40 = vld [vmem:[#allocation7 + $0x244] ss:$8 sps:$4 sm:$0xff]  }
 0x386   :  { %v6869_v41 = vpop.eup %6868  ;;  %v2566_v50 = vadd.f32 1e-05, %v2560_v42 }
 0x387   :  { %v6871_v44 = vpop.eup %6870 }
 0x388   :  { %v2581_v48 = vcombine.low %v6869_v41, %v6871_v44  ;;  %6874 = vrsqrt.f32 %v2566_v50  ;;  %v6668_v41 = vld [vmem:[#allocation8] ss:$8 sps:$4 sm:$0xff]   ;;  %v6676_v50 = vld [vmem:[#allocation8 + $0x14] ss:$8 sps:$4 sm:$0xff]  }
 0x38a   :  { %v2588_v51 = vrot.slane %v2581_v48, %v7484_v57 }
 0x38c   :  { %v2595_v55 = vrot.slane %v2588_v51, %v7484_v57 }
 0x38d   :  { %v6873_v32 = vpop.eup %6872 }
 0x38e   :  { %v2629_v45 = vmul.f32 %v2595_v55, %v2548_v54 }
 0x390   :  { %v2644_v7 = vrot.slane %v2629_v45, %v7501_v16  ;;  %v2648_v60 = vrot.slane %v2629_v45, %v7503_v17 }
 0x392   :  { %v2671_v63 = vmul.f32 %v2644_v7, %v2632_v2  ;;  %v2672_v1 = vmul.f32 %v2648_v60, %v2633_v56  ;;  %v6875_v3 = vpop.eup %6874 }
 0x393   :  { %v2596_v9 = vcombine.low %v6873_v32, %v6875_v3  ;;  %v6637_v32 = vld [vmem:[#allocation7 + $0x254] ss:$8 sps:$4 sm:$0xff]  }
 0x394   :  { %v2714_v5 = vadd.f32 %v2690_v62, %v2672_v1  ;;  %v2713_v8 = vadd.f32 %v2686_v53, %v2671_v63  ;;  %v6632_v62 = vld [vmem:[#allocation7 + $0x240] ss:$8 sps:$4 sm:$0xff]   ;;  %v6674_v63 = vld [vmem:[#allocation8 + $0x10] ss:$8 sps:$4 sm:$0xff]  }
 0x395   :  { %v2603_v13 = vrot.slane %v2596_v9, %v7484_v57 }
 0x396   :  { %vm2720_vm14 = vcmp.ge.f32.partialorder %v2714_v5, 0.0  ;;  %v2726_v10 = vmul.f32 0.01, %v2714_v5  ;;  %vm2719_vm15 = vcmp.ge.f32.partialorder %v2713_v8, 0.0  ;;  %v2725_v12 = vmul.f32 0.01, %v2713_v8 }
 0x397   :  { %v2610_v58 = vrot.slane %v2603_v13, %v7484_v57  ;;  %v6635_v13 = vld [vmem:[#allocation7 + $0x250] ss:$8 sps:$4 sm:$0xff]  }
 0x398   :  { %v2732_v21 = vsel %vm2720_vm14, %v2714_v5, %v2726_v10  ;;  %v2731_v59 = vsel %vm2719_vm15, %v2713_v8, %v2725_v12  ;;  %v6682_v5 = vld [vmem:[#allocation8 + $0x24] ss:$8 sps:$4 sm:$0xff]   ;;  %vm4956_vm15 = vcmask 19456  }
 0x399   :  { %v2738_v20 = vpack.c.bf16 %v2732_v21, %v2732_v21  ;;  %v2737_v24 = vpack.c.bf16 %v2731_v59, %v2731_v59  ;;  %v2630_v14 = vmul.f32 %v2610_v58, %v2549_v18  ;;  %v6640_v59 = vld [vmem:[#allocation7 + $0x264] ss:$8 sps:$4 sm:$0xff]   ;;  %v6680_v58 = vld [vmem:[#allocation8 + $0x20] ss:$8 sps:$4 sm:$0xff]  }
 0x39b   :  { %3031 = vmatprep.mubr.bf16.mxu1 %v2738_v20  ;;  %v2652_v29 = vrot.slane %v2630_v14, %v7501_v16  ;;  %v2656_v30 = vrot.slane %v2630_v14, %v7503_v17 }
 0x39c   :  { %3032 = vmatmul.mubr.bf16.vlgmr.msra.gmra.mrb[16].mxu1 %v2737_v24 }
 0x39d   :  { %3402 = vmatpush1.bf16.msra.mxu1 %v6620_v22  ;;  %v2673_v61 = vmul.f32 %v2652_v29, %v2634_v28  ;;  %v2674_v52 = vmul.f32 %v2656_v30, %v2635_v23  ;;  %v6643_v23 = vld [vmem:[#allocation7 + $0x274] ss:$8 sps:$4 sm:$0xff]  }
 0x39e   :  { %3403 = vmatprep.subr.bf16.mxu1 %v6625_v25 }
 0x39f   :  { %v2716_v49 = vadd.f32 %v2698_v27, %v2674_v52  ;;  %v2715_v33 = vadd.f32 %v2694_v15, %v2673_v61  ;;  %v6638_v15 = vld [vmem:[#allocation7 + $0x260] ss:$8 sps:$4 sm:$0xff]  }
 0x3a1   :  { %3404 = vmatpush1.bf16.msra.mxu1 %v6623_v46  ;;  %vm2722_vm1 = vcmp.ge.f32.partialorder %v2716_v49, 0.0  ;;  %v2728_v34 = vmul.f32 0.01, %v2716_v49  ;;  %vm2721_vm2 = vcmp.ge.f32.partialorder %v2715_v33, 0.0  ;;  %v2727_v37 = vmul.f32 0.01, %v2715_v33 }
 0x3a2   :  { %3405 = vmatprep.subr.bf16.mxu1 %v6628_v11 }
 0x3a3   :  { %v2734_v43 = vsel %vm2722_vm1, %v2716_v49, %v2728_v34  ;;  %v2733_v31 = vsel %vm2721_vm2, %v2715_v33, %v2727_v37  ;;  %v6641_v49 = vld [vmem:[#allocation7 + $0x270] ss:$8 sps:$4 sm:$0xff]  }
 0x3a4   :  { %v2740_v36 = vpack.c.bf16 %v2734_v43, %v2734_v43  ;;  %v2739_v38 = vpack.c.bf16 %v2733_v31, %v2733_v31 }
 0x3a5   :  { %3406 = vmatpush1.bf16.msra.mxu1 %v6626_v35 }
 0x3a6   :  { %v7708_v39 = vpop.f32.mrb[16].mxu0  ;;  %3407 = vmatprep.subr.bf16.mxu1 %v6631_v6  ;;  %3232 = vmatprep.mubr.bf16.mxu0 %v2740_v36  ;;  %v6646_v6 = vld [vmem:[#allocation7 + $0x284] ss:$8 sps:$4 sm:$0xff]  }
 0x3a7   :  { %v2474_v42 = vsel %vm215_vm0, %v7708_v39, 0.0  ;;  %v2498_v44 = vmul.f32 %v7708_v39, %v7708_v39  ;;  %v7714_v48 = vpop.f32.mrb[17].mxu0  ;;  %3233 = vmatmul.mubr.bf16.vlgmr.msra.gmra.mrb[20].mxu0 %v2739_v38  ;;  %v6649_v38 = vld [vmem:[#allocation7 + $0x294] ss:$8 sps:$4 sm:$0xff]  }
 0x3a8   :  { %v2475_v51 = vrot.slane %v2474_v42, 4  ;;  %v2481_v54 = vsel %vm215_vm0, %v7714_v48, 0.0  ;;  %v2499_v55 = vmul.f32 %v7714_v48, %v7714_v48  ;;  %v2443_v47 = vpop.f32.mrb[18].mxu0  ;;  %3996 = vmatpush1.bf16.msra.mxu0 %v6668_v41  ;;  %v6647_v41 = vld [vmem:[#allocation7 + $0x290] ss:$8 sps:$4 sm:$0xff]  }
 0x3a9   :  { %v2528_v45 = vsel %vm215_vm0, %v2498_v44, 0.0  ;;  %v2482_v53 = vrot.slane %v2481_v54, 4  ;;  %3408 = vmatpush1.bf16.msra.mxu1 %v6629_v4  ;;  %v2444_v2 = vpop.f32.mrb[19].mxu0  ;;  %3997 = vmatprep.subr.bf16.mxu0 %v6676_v50  ;;  %v6644_v4 = vld [vmem:[#allocation7 + $0x280] ss:$8 sps:$4 sm:$0xff]  }
 0x3aa   :  { %v2476_v56 = vadd.f32 %v2475_v51, %v2474_v42  ;;  %v2529_v7 = vrot.slane %v2528_v45, 4  ;;  %v2535_v60 = vsel %vm215_vm0, %v2499_v55, 0.0  ;;  %3409 = vmatprep.subr.bf16.mxu1 %v6634_v40  ;;  %v6652_v42 = vld [vmem:[#allocation7 + $0x2a4] ss:$8 sps:$4 sm:$0xff]   ;;  %v6650_v44 = vld [vmem:[#allocation7 + $0x2a0] ss:$8 sps:$4 sm:$0xff]  }
 0x3ab   :  { %v2483_v1 = vadd.f32 %v2482_v53, %v2481_v54  ;;  %v2536_v3 = vrot.slane %v2535_v60, 4  ;;  %v6655_v50 = vld [vmem:[#allocation7 + $0x2b4] ss:$8 sps:$4 sm:$0xff]   ;;  %v6653_v51 = vld [vmem:[#allocation7 + $0x2b0] ss:$8 sps:$4 sm:$0xff]  }
 0x3ac   :  { %v2477_v8 = vrot.slane %v2476_v56, 2  ;;  %v2530_v9 = vadd.f32 %v2529_v7, %v2528_v45  ;;  %3998 = vmatpush1.bf16.msra.mxu0 %v6674_v63  ;;  %v6658_v55 = vld [vmem:[#allocation7 + $0x2c4] ss:$8 sps:$4 sm:$0xff]   ;;  %v6656_v53 = vld [vmem:[#allocation7 + $0x2c0] ss:$8 sps:$4 sm:$0xff]  }
 0x3ad   :  { %v2484_v10 = vrot.slane %v2483_v1, 2  ;;  %v2537_v12 = vadd.f32 %v2536_v3, %v2535_v60  ;;  %3410 = vmatpush1.bf16.msra.mxu1 %v6632_v62  ;;  %3999 = vmatprep.subr.bf16.mxu0 %v6682_v5  ;;  %v6661_v2 = vld [vmem:[#allocation7 + $0x2d4] ss:$8 sps:$4 sm:$0xff]   ;;  %v2679_v60 = vld [vmem:[%s8221_s11 + $0x4] sm:$0x3]  ;;  %s7113_s11 = smov 5  }
 0x3ae   :  { %v2478_v18 = vadd.f32 %v2477_v8, %v2476_v56  ;;  %v2531_v21 = vrot.slane %v2530_v9, 2  ;;  %3411 = vmatprep.subr.bf16.mxu1 %v6637_v32  ;;  %v2550_v56 = vld [vmem:[%s8220_s10 + $0x4] sm:$0x3]  ;;  %v6659_v32 = vld [vmem:[#allocation7 + $0x2d0] ss:$8 sps:$4 sm:$0xff]   ;;  %s7092_s10 = smov 125  }
 0x3af   :  { %v2485_v19 = vadd.f32 %v2484_v10, %v2483_v1  ;;  %v2538_v20 = vrot.slane %v2537_v12, 2  ;;  %v6664_v5 = vld [vmem:[#allocation7 + $0x2e4] ss:$8 sps:$4 sm:$0xff]   ;;  %v2702_v10 = vrot.slane %v2679_v60, %v7501_v16 }
 0x3b0   :  { %v2479_v22 = vrot.slane %v2478_v18, 1  ;;  %v2532_v24 = vadd.f32 %v2531_v21, %v2530_v9  ;;  %4000 = vmatpush1.bf16.msra.mxu0 %v6680_v58 }
 0x3b1   :  { %v2486_v25 = vrot.slane %v2485_v19, 1  ;;  %v2539_v14 = vadd.f32 %v2538_v20, %v2537_v12  ;;  %3412 = vmatpush1.bf16.msra.mxu1 %v6635_v13  ;;  %v2706_v12 = vrot.slane %v2679_v60, %v7503_v17  ;;  %v6662_v13 = vld [vmem:[#allocation7 + $0x2e0] ss:$8 sps:$4 sm:$0xff]   ;;  %v6733_v60 = vld [vmem:[#allocation8 + $0x1a4] ss:$8 sps:$4 sm:$0xff]  }
 0x3b2   :  { %v2480_v27 = vadd.f32 %v2479_v22, %v2478_v18  ;;  %v2533_v28 = vrot.slane %v2532_v24, 1  ;;  %3413 = vmatprep.subr.bf16.mxu1 %v6640_v59  ;;  %v6667_v59 = vld [vmem:[#allocation7 + $0x2f4] ss:$8 sps:$4 sm:$0xff]  }
 0x3b3   :  { %v2487_v29 = vadd.f32 %v2486_v25, %v2485_v19  ;;  %v2540_v30 = vrot.slane %v2539_v14, 1  ;;  %v6673_v19 = vld [vmem:[#allocation8 + $0x104] ss:$8 sps:$4 sm:$0xff]  }
 0x3b4   :  { %v2492_v46 = vmul.f32 0.25, %v2480_v27  ;;  %v2534_v11 = vadd.f32 %v2533_v28, %v2532_v24  ;;  %v6671_v27 = vld [vmem:[#allocation8 + $0x100] ss:$8 sps:$4 sm:$0xff]   ;;  %v6679_v28 = vld [vmem:[#allocation8 + $0x114] ss:$8 sps:$4 sm:$0xff]  }
 0x3b5   :  { %v2493_v61 = vmul.f32 0.25, %v2487_v29  ;;  %v2541_v52 = vadd.f32 %v2540_v30, %v2539_v14  ;;  %3414 = vmatpush1.bf16.msra.mxu1 %v6638_v15  ;;  %v6685_v29 = vld [vmem:[#allocation8 + $0x124] ss:$8 sps:$4 sm:$0xff]   ;;  %v6683_v30 = vld [vmem:[#allocation8 + $0x120] ss:$8 sps:$4 sm:$0xff]  }
 0x3b6   :  { %v2546_v33 = vmul.f32 0.25, %v2534_v11  ;;  %v2555_v35 = vmul.f32 %v2492_v46, %v2492_v46  ;;  %3415 = vmatprep.subr.bf16.mxu1 %v6643_v23  ;;  %v2636_v63 = vsub.f32 %v7708_v39, %v2492_v46  ;;  %v6677_v23 = vld [vmem:[#allocation8 + $0x110] ss:$8 sps:$4 sm:$0xff]   ;;  %v6688_v46 = vld [vmem:[#allocation8 + $0x34] ss:$8 sps:$4 sm:$0xff]  }
 0x3b7   :  { %v2547_v34 = vmul.f32 0.25, %v2541_v52  ;;  %v2556_v37 = vmul.f32 %v2493_v61, %v2493_v61  ;;  %v2637_v3 = vsub.f32 %v7714_v48, %v2493_v61  ;;  %v6665_v48 = vld [vmem:[#allocation7 + $0x2f0] ss:$8 sps:$4 sm:$0xff]   ;;  %v6691_v61 = vld [vmem:[#allocation8 + $0x134] ss:$8 sps:$4 sm:$0xff]   ;;  %4001 = vmatprep.subr.bf16.mxu0 %v6688_v46 }
 0x3b8   :  { %v2561_v43 = vsub.f32 %v2546_v33, %v2555_v35  ;;  %v6686_v11 = vld [vmem:[#allocation8 + $0x30] ss:$8 sps:$4 sm:$0xff]   ;;  %v6692_v33 = vld [vmem:[#allocation8 + $0x40] ss:$8 sps:$4 sm:$0xff]   ;;  %v6697_v35 = vld [vmem:[#allocation8 + $0x144] ss:$8 sps:$4 sm:$0xff]  }
 0x3b9   :  { %v2562_v31 = vsub.f32 %v2547_v34, %v2556_v37  ;;  %3416 = vmatpush1.bf16.msra.mxu1 %v6641_v49  ;;  %v6689_v52 = vld [vmem:[#allocation8 + $0x130] ss:$8 sps:$4 sm:$0xff]   ;;  %4002 = vmatpush1.bf16.msra.mxu0 %v6686_v11  ;;  %v6694_v49 = vld [vmem:[#allocation8 + $0x44] ss:$8 sps:$4 sm:$0xff]   ;;  %v6700_v34 = vld [vmem:[#allocation8 + $0x54] ss:$8 sps:$4 sm:$0xff]  }
 0x3ba   :  { %v2567_v36 = vadd.f32 1e-05, %v2561_v43  ;;  %3417 = vmatprep.subr.bf16.mxu1 %v6646_v6  ;;  %4003 = vmatprep.subr.bf16.mxu0 %v6694_v49  ;;  %v6695_v6 = vld [vmem:[#allocation8 + $0x140] ss:$8 sps:$4 sm:$0xff]   ;;  %v6698_v37 = vld [vmem:[#allocation8 + $0x50] ss:$8 sps:$4 sm:$0xff]  }
 0x3bb   :  { %v2568_v40 = vadd.f32 1e-05, %v2562_v31  ;;  %v6703_v43 = vld [vmem:[#allocation8 + $0x154] ss:$8 sps:$4 sm:$0xff]   ;;  %v6701_v31 = vld [vmem:[#allocation8 + $0x150] ss:$8 sps:$4 sm:$0xff]  }
 0x3bc   :  { %6876 = vrsqrt.f32 %v2567_v36  ;;  %v6704_v36 = vld [vmem:[#allocation8 + $0x60] ss:$8 sps:$4 sm:$0xff]  }
 0x3bd   :  { %6878 = vrsqrt.f32 %v2568_v40  ;;  %3418 = vmatpush1.bf16.msra.mxu1 %v6644_v4  ;;  %4004 = vmatpush1.bf16.msra.mxu0 %v6692_v33  ;;  %v6706_v4 = vld [vmem:[#allocation8 + $0x64] ss:$8 sps:$4 sm:$0xff]   ;;  %v6707_v40 = vld [vmem:[#allocation8 + $0x160] ss:$8 sps:$4 sm:$0xff]  }
 0x3be   :  { %3419 = vmatprep.subr.bf16.mxu1 %v6649_v38  ;;  %4005 = vmatprep.subr.bf16.mxu0 %v6700_v34  ;;  %v6709_v38 = vld [vmem:[#allocation8 + $0x164] ss:$8 sps:$4 sm:$0xff]  }
 0x3c1   :  { %3420 = vmatpush1.bf16.msra.mxu1 %v6647_v41  ;;  %4006 = vmatpush1.bf16.msra.mxu0 %v6698_v37  ;;  %v6712_v41 = vld [vmem:[#allocation8 + $0x74] ss:$8 sps:$4 sm:$0xff]  }
 0x3c2   :  { %3421 = vmatprep.subr.bf16.mxu1 %v6652_v42  ;;  %4007 = vmatprep.subr.bf16.mxu0 %v6706_v4  ;;  %v6710_v42 = vld [vmem:[#allocation8 + $0x70] ss:$8 sps:$4 sm:$0xff]  }
 0x3c5   :  { %3422 = vmatpush1.bf16.msra.mxu1 %v6650_v44  ;;  %4008 = vmatpush1.bf16.msra.mxu0 %v6704_v36  ;;  %v6715_v44 = vld [vmem:[#allocation8 + $0x174] ss:$8 sps:$4 sm:$0xff]  }
 0x3c6   :  { %v6877_v54 = vpop.eup %6876  ;;  %3423 = vmatprep.subr.bf16.mxu1 %v6655_v50  ;;  %4009 = vmatprep.subr.bf16.mxu0 %v6712_v41  ;;  %v6713_v50 = vld [vmem:[#allocation8 + $0x170] ss:$8 sps:$4 sm:$0xff]  }
 0x3c7   :  { %v6879_v47 = vpop.eup %6878 }
 0x3c8   :  { %v2611_v45 = vcombine.low %v6877_v54, %v6879_v47  ;;  %v6716_v54 = vld [vmem:[#allocation8 + $0x80] ss:$8 sps:$4 sm:$0xff]  }
 0x3c9   :  { %3424 = vmatpush1.bf16.msra.mxu1 %v6653_v51  ;;  %4010 = vmatpush1.bf16.msra.mxu0 %v6710_v42  ;;  %v6718_v51 = vld [vmem:[#allocation8 + $0x84] ss:$8 sps:$4 sm:$0xff]   ;;  %v6719_v47 = vld [vmem:[#allocation8 + $0x180] ss:$8 sps:$4 sm:$0xff]  }
 0x3ca   :  { %v2618_v62 = vrot.slane %v2611_v45, %v7484_v57  ;;  %3425 = vmatprep.subr.bf16.mxu1 %v6658_v55  ;;  %v6721_v55 = vld [vmem:[#allocation8 + $0x184] ss:$8 sps:$4 sm:$0xff]   ;;  %4011 = vmatprep.subr.bf16.mxu0 %v6718_v51  ;;  %v6724_v45 = vld [vmem:[#allocation8 + $0x94] ss:$8 sps:$4 sm:$0xff]  }
 0x3cc   :  { %v2625_v7 = vrot.slane %v2618_v62, %v7484_v57  ;;  %v6727_v62 = vld [vmem:[#allocation8 + $0x194] ss:$8 sps:$4 sm:$0xff]  }
 0x3cd   :  { %3426 = vmatpush1.bf16.msra.mxu1 %v6656_v53  ;;  %4012 = vmatpush1.bf16.msra.mxu0 %v6716_v54  ;;  %v6722_v53 = vld [vmem:[#allocation8 + $0x90] ss:$8 sps:$4 sm:$0xff]  }
 0x3ce   :  { %v2631_v1 = vmul.f32 %v2625_v7, %v2550_v56  ;;  %3427 = vmatprep.subr.bf16.mxu1 %v6661_v2  ;;  %4013 = vmatprep.subr.bf16.mxu0 %v6724_v45  ;;  %v6725_v2 = vld [vmem:[#allocation8 + $0x190] ss:$8 sps:$4 sm:$0xff]   ;;  %v6730_v56 = vld [vmem:[#allocation8 + $0xa4] ss:$8 sps:$4 sm:$0xff]   ;;  %v6728_v7 = vld [vmem:[#allocation8 + $0xa0] ss:$8 sps:$4 sm:$0xff]  }
 0x3d0   :  { %v2660_v8 = vrot.slane %v2631_v1, %v7501_v16  ;;  %v2664_v9 = vrot.slane %v2631_v1, %v7503_v17  ;;  %v6734_v1 = vld [vmem:[#allocation8 + $0xb0] ss:$8 sps:$4 sm:$0xff]  }
 0x3d1   :  { %3428 = vmatpush1.bf16.msra.mxu1 %v6659_v32  ;;  %4014 = vmatpush1.bf16.msra.mxu0 %v6722_v53  ;;  %v6731_v32 = vld [vmem:[#allocation8 + $0x1a0] ss:$8 sps:$4 sm:$0xff]  }
 0x3d2   :  { %v2675_v18 = vmul.f32 %v2660_v8, %v2636_v63  ;;  %v2676_v21 = vmul.f32 %v2664_v9, %v2637_v3  ;;  %3429 = vmatprep.subr.bf16.mxu1 %v6664_v5  ;;  %4015 = vmatprep.subr.bf16.mxu0 %v6730_v56  ;;  %v6736_v63 = vld [vmem:[#allocation8 + $0xb4] ss:$8 sps:$4 sm:$0xff]   ;;  %v6737_v5 = vld [vmem:[#allocation8 + $0x1b0] ss:$8 sps:$4 sm:$0xff]   ;;  %v6742_v8 = vld [vmem:[#allocation8 + $0xc4] ss:$8 sps:$4 sm:$0xff]  }
 0x3d3   :  { %v6739_v3 = vld [vmem:[#allocation8 + $0x1b4] ss:$8 sps:$4 sm:$0xff]   ;;  %v6740_v9 = vld [vmem:[#allocation8 + $0xc0] ss:$8 sps:$4 sm:$0xff]  }
 0x3d4   :  { %v2718_v39 = vadd.f32 %v2706_v12, %v2676_v21  ;;  %v2717_v58 = vadd.f32 %v2702_v10, %v2675_v18  ;;  %v6745_v10 = vld [vmem:[#allocation8 + $0x1c4] ss:$8 sps:$4 sm:$0xff]   ;;  %v6743_v12 = vld [vmem:[#allocation8 + $0x1c0] ss:$8 sps:$4 sm:$0xff]   ;;  %v6746_v18 = vld [vmem:[#allocation8 + $0xd0] ss:$8 sps:$4 sm:$0xff]  }
 0x3d5   :  { %3430 = vmatpush1.bf16.msra.mxu1 %v6662_v13  ;;  %4016 = vmatpush1.bf16.msra.mxu0 %v6728_v7  ;;  %v6748_v13 = vld [vmem:[#allocation8 + $0xd4] ss:$8 sps:$4 sm:$0xff]  }
 0x3d6   :  { %3431 = vmatprep.subr.bf16.mxu1 %v6667_v59  ;;  %vm2724_vm3 = vcmp.ge.f32.partialorder %v2718_v39, 0.0  ;;  %v2730_v20 = vmul.f32 0.01, %v2718_v39  ;;  %vm2723_vm4 = vcmp.ge.f32.partialorder %v2717_v58, 0.0  ;;  %v2729_v22 = vmul.f32 0.01, %v2717_v58  ;;  %4017 = vmatprep.subr.bf16.mxu0 %v6736_v63 }
 0x3d7   :  { %v6751_v21 = vld [vmem:[#allocation8 + $0x1d4] ss:$8 sps:$4 sm:$0xff]   ;;  %v6749_v59 = vld [vmem:[#allocation8 + $0x1d0] ss:$8 sps:$4 sm:$0xff]  }
 0x3d8   :  { %v2736_v24 = vsel %vm2724_vm3, %v2718_v39, %v2730_v20  ;;  %v2735_v25 = vsel %vm2723_vm4, %v2717_v58, %v2729_v22  ;;  %v6754_v39 = vld [vmem:[#allocation8 + $0xe4] ss:$8 sps:$4 sm:$0xff]   ;;  %v6752_v58 = vld [vmem:[#allocation8 + $0xe0] ss:$8 sps:$4 sm:$0xff]   ;;  %v6758_v20 = vld [vmem:[#allocation8 + $0xf0] ss:$8 sps:$4 sm:$0xff]  }
 0x3d9   :  { %3432 = vmatpush1.bf16.msra.mxu1 %v6665_v48  ;;  %v2742_v14 = vpack.c.bf16 %v2736_v24, %v2736_v24  ;;  %v2741_v15 = vpack.c.bf16 %v2735_v25, %v2735_v25  ;;  %4018 = vmatpush1.bf16.msra.mxu0 %v6734_v1  ;;  %v6757_v48 = vld [vmem:[#allocation8 + $0x1e4] ss:$8 sps:$4 sm:$0xff]   ;;  %v6760_v22 = vld [vmem:[#allocation8 + $0xf4] ss:$8 sps:$4 sm:$0xff]   ;;  %v6761_v24 = vld [vmem:[#allocation8 + $0x1f0] ss:$8 sps:$4 sm:$0xff]  }
 0x3da   :  { %4196 = vmatprep.subr.bf16.mxu1 %v6673_v19  ;;  %4019 = vmatprep.subr.bf16.mxu0 %v6742_v8  ;;  %v6755_v19 = vld [vmem:[#allocation8 + $0x1e0] ss:$8 sps:$4 sm:$0xff]   ;;  %v6763_v25 = vld [vmem:[#allocation8 + $0x1f4] ss:$8 sps:$4 sm:$0xff]  }
 0x3db   :  { %3433 = vmatprep.mubr.bf16.mxu1 %v2742_v14  ;;  %v6766_v14 = vld [vmem:[#allocation8 + $0x204] ss:$8 sps:$4 sm:$0xff]  }
 0x3dc   :  { %3434 = vmatmul.mubr.bf16.vlgmr.msra.gmra.mrb[20].mxu1 %v2741_v15  ;;  %v4944_v15 = vld [vmem:[%s8266_s27] sm:$0xf]  ;;  %s7114_s27 = smov 7  }
 0x3dd   :  { %4197 = vmatpush1.bf16.msra.mxu1 %v6671_v27  ;;  %4020 = vmatpush1.bf16.msra.mxu0 %v6740_v9 }
 0x3de   :  { %4198 = vmatprep.subr.bf16.mxu1 %v6679_v28  ;;  %4021 = vmatprep.subr.bf16.mxu0 %v6748_v13 }
 0x3df   :  { %4946 = vrot.lane.b32.xlu0 %v4944_v15, %s7090_s4 }
 0x3e1   :  { %4199 = vmatpush1.bf16.msra.mxu1 %v6677_v23  ;;  %4022 = vmatpush1.bf16.msra.mxu0 %v6746_v18 }
 0x3e2   :  { %4200 = vmatprep.subr.bf16.mxu1 %v6685_v29  ;;  %4023 = vmatprep.subr.bf16.mxu0 %v6754_v39 }
 0x3e5   :  { %4201 = vmatpush1.bf16.msra.mxu1 %v6683_v30  ;;  %4024 = vmatpush1.bf16.msra.mxu0 %v6752_v58 }
 0x3e6   :  { %4202 = vmatprep.subr.bf16.mxu1 %v6691_v61  ;;  %4025 = vmatprep.subr.bf16.mxu0 %v6760_v22 }
 0x3e9   :  { %4203 = vmatpush1.bf16.msra.mxu1 %v6689_v52  ;;  %4026 = vmatpush1.bf16.msra.mxu0 %v6758_v20 }
 0x3ea   :  { %4204 = vmatprep.subr.bf16.mxu1 %v6697_v35  ;;  %4397 = vmatprep.subr.bf16.mxu0 %v6766_v14 }
 0x3ed   :  { %4205 = vmatpush1.bf16.msra.mxu1 %v6695_v6 }
 0x3ee   :  { %4206 = vmatprep.subr.bf16.mxu1 %v6703_v43 }
 0x3f1   :  { %4207 = vmatpush1.bf16.msra.mxu1 %v6701_v31 }
 0x3f2   :  { %4208 = vmatprep.subr.bf16.mxu1 %v6709_v38 }
 0x3f5   :  { %4209 = vmatpush1.bf16.msra.mxu1 %v6707_v40 }
 0x3f6   :  { %4210 = vmatprep.subr.bf16.mxu1 %v6715_v44 }
 0x3f9   :  { %4211 = vmatpush1.bf16.msra.mxu1 %v6713_v50 }
 0x3fa   :  { %4212 = vmatprep.subr.bf16.mxu1 %v6721_v55 }
 0x3fd   :  { %4213 = vmatpush1.bf16.msra.mxu1 %v6719_v47 }
 0x3fe   :  { %4214 = vmatprep.subr.bf16.mxu1 %v6727_v62 }
 0x401   :  { %4215 = vmatpush1.bf16.msra.mxu1 %v6725_v2 }
 0x402   :  { %4216 = vmatprep.subr.bf16.mxu1 %v6733_v60 }
 0x405   :  { %4217 = vmatpush1.bf16.msra.mxu1 %v6731_v32 }
 0x406   :  { %4218 = vmatprep.subr.bf16.mxu1 %v6739_v3 }
 0x409   :  { %4219 = vmatpush1.bf16.msra.mxu1 %v6737_v5 }
 0x40a   :  { %4220 = vmatprep.subr.bf16.mxu1 %v6745_v10 }
 0x40d   :  { %4221 = vmatpush1.bf16.msra.mxu1 %v6743_v12 }
 0x40e   :  { %4222 = vmatprep.subr.bf16.mxu1 %v6751_v21 }
 0x411   :  { %4223 = vmatpush1.bf16.msra.mxu1 %v6749_v59 }
 0x412   :  { %4224 = vmatprep.subr.bf16.mxu1 %v6757_v48 }
 0x415   :  { %4225 = vmatpush1.bf16.msra.mxu1 %v6755_v19 }
 0x416   :  { %4226 = vmatprep.subr.bf16.mxu1 %v6763_v25 }
 0x419   :  { %4227 = vmatpush1.bf16.msra.mxu1 %v6761_v24 }
 0x46f   :  { %v7740_v27 = vpop.f32.mrb[16].mxu1 }
 0x470   :  { %v3442_v28 = vsel %vm215_vm0, %v7740_v27, 0.0  ;;  %v3490_v23 = vmul.f32 %v7740_v27, %v7740_v27  ;;  %v7746_v29 = vpop.f32.mrb[17].mxu1 }
 0x471   :  { %v3443_v30 = vrot.slane %v3442_v28, 4  ;;  %v3449_v46 = vsel %vm215_vm0, %v7746_v29, 0.0  ;;  %v3491_v11 = vmul.f32 %v7746_v29, %v7746_v29  ;;  %v3037_v61 = vpop.f32.mrb[18].mxu1 }
 0x472   :  { %v3496_v52 = vsel %vm215_vm0, %v3490_v23, 0.0  ;;  %v3450_v49 = vrot.slane %v3449_v46, 4  ;;  %v3038_v33 = vpop.f32.mrb[19].mxu1 }
 0x473   :  { %v3444_v35 = vadd.f32 %v3443_v30, %v3442_v28  ;;  %v3497_v6 = vrot.slane %v3496_v52, 4  ;;  %v3503_v34 = vsel %vm215_vm0, %v3491_v11, 0.0 }
 0x474   :  { %v3451_v37 = vadd.f32 %v3450_v49, %v3449_v46  ;;  %v3504_v43 = vrot.slane %v3503_v34, 4 }
 0x475   :  { %v3445_v31 = vrot.slane %v3444_v35, 2  ;;  %v3498_v4 = vadd.f32 %v3497_v6, %v3496_v52 }
 0x476   :  { %v3452_v36 = vrot.slane %v3451_v37, 2  ;;  %v3505_v38 = vadd.f32 %v3504_v43, %v3503_v34 }
 0x477   :  { %v3446_v40 = vadd.f32 %v3445_v31, %v3444_v35  ;;  %v3499_v41 = vrot.slane %v3498_v4, 2 }
 0x478   :  { %v3453_v42 = vadd.f32 %v3452_v36, %v3451_v37  ;;  %v3506_v44 = vrot.slane %v3505_v38, 2 }
 0x479   :  { %v3447_v50 = vrot.slane %v3446_v40, 1  ;;  %v3500_v51 = vadd.f32 %v3499_v41, %v3498_v4 }
 0x47a   :  { %v3454_v54 = vrot.slane %v3453_v42, 1  ;;  %v3507_v55 = vadd.f32 %v3506_v44, %v3505_v38  ;;  %v7754_v53 = vpop.f32.mrb[20].mxu0 }
 0x47b   :  { %v3448_v47 = vadd.f32 %v3447_v50, %v3446_v40  ;;  %v3501_v45 = vrot.slane %v3500_v51, 1  ;;  %v3456_v60 = vsel %vm215_vm0, %v7754_v53, 0.0  ;;  %v3492_v32 = vmul.f32 %v7754_v53, %v7754_v53  ;;  %v7762_v63 = vpop.f32.mrb[21].mxu0 }
 0x47c   :  { %v3455_v62 = vadd.f32 %v3454_v54, %v3453_v42  ;;  %v3508_v2 = vrot.slane %v3507_v55, 1  ;;  %v3457_v1 = vrot.slane %v3456_v60, 4  ;;  %v3463_v8 = vsel %vm215_vm0, %v7762_v63, 0.0  ;;  %v3238_v9 = vpop.f32.mrb[22].mxu0 }
 0x47d   :  { %v7756_v56 = vmul.f32 0.25, %v3448_v47  ;;  %v3502_v7 = vadd.f32 %v3501_v45, %v3500_v51  ;;  %v3510_v13 = vsel %vm215_vm0, %v3492_v32, 0.0  ;;  %v3239_v18 = vpop.f32.mrb[23].mxu0  ;;  %v3464_v19 = vrot.slane %v3463_v8, 4  ;;  %v3544_v32 = vld [vmem:[%s8223_s13] sm:$0x3] }
 0x47e   :  { %v7764_v3 = vmul.f32 0.25, %v3455_v62  ;;  %v3509_v5 = vadd.f32 %v3508_v2, %v3507_v55  ;;  %v3458_v21 = vadd.f32 %v3457_v1, %v3456_v60  ;;  %v3511_v59 = vrot.slane %v3510_v13, 4 }
 0x47f   :  { %v3538_v10 = vmul.f32 0.25, %v3502_v7  ;;  %v3547_v12 = vmul.f32 %v7756_v56, %v7756_v56  ;;  %v3493_v20 = vmul.f32 %v7762_v63, %v7762_v63  ;;  %v3465_v15 = vadd.f32 %v3464_v19, %v3463_v8  ;;  %v3673_v8 = vld [vmem:[%s8224_s14] sm:$0x3] }
 0x480   :  { %v3539_v39 = vmul.f32 0.25, %v3509_v5  ;;  %v3548_v58 = vmul.f32 %v7764_v3, %v7764_v3  ;;  %v3459_v22 = vrot.slane %v3458_v21, 2  ;;  %v3512_v24 = vadd.f32 %v3511_v59, %v3510_v13 }
 0x481   :  { %v3553_v48 = vsub.f32 %v3538_v10, %v3547_v12  ;;  %v3517_v28 = vsel %vm215_vm0, %v3493_v20, 0.0  ;;  %v3466_v61 = vrot.slane %v3465_v15, 2  ;;  %v3682_v10 = vrot.slane %v3673_v8, %v7501_v16 }
 0x482   :  { %v3554_v25 = vsub.f32 %v3539_v39, %v3548_v58  ;;  %v3460_v23 = vadd.f32 %v3459_v22, %v3458_v21  ;;  %v3513_v30 = vrot.slane %v3512_v24, 2  ;;  %v3518_v11 = vrot.slane %v3517_v28, 4 }
 0x483   :  { %v3559_v14 = vadd.f32 1e-05, %v3553_v48  ;;  %v3467_v35 = vadd.f32 %v3466_v61, %v3465_v15  ;;  %v3686_v12 = vrot.slane %v3673_v8, %v7503_v17  ;;  %v3628_v13 = vsub.f32 %v7740_v27, %v7756_v56  ;;  %v6767_v61 = vld [vmem:[#allocation8 + $0x210] ss:$8 sps:$4 sm:$0xff]  }
 0x484   :  { %v3560_v46 = vadd.f32 1e-05, %v3554_v25  ;;  %v3461_v52 = vrot.slane %v3460_v23, 1  ;;  %v3514_v49 = vadd.f32 %v3513_v30, %v3512_v24  ;;  %v3519_v33 = vadd.f32 %v3518_v11, %v3517_v28  ;;  %v6764_v28 = vld [vmem:[#allocation8 + $0x200] ss:$8 sps:$4 sm:$0xff]  }
 0x485   :  { %6880 = vrsqrt.f32 %v3559_v14  ;;  %v3468_v43 = vrot.slane %v3467_v35, 1  ;;  %v3629_v18 = vsub.f32 %v7746_v29, %v7764_v3  ;;  %v3545_v30 = vld [vmem:[%s8223_s13 + $0x2] sm:$0x3] }
 0x486   :  { %6882 = vrsqrt.f32 %v3560_v46  ;;  %v3462_v6 = vadd.f32 %v3461_v52, %v3460_v23  ;;  %v3515_v34 = vrot.slane %v3514_v49, 1  ;;  %v3520_v37 = vrot.slane %v3519_v33, 2  ;;  %v6769_v23 = vld [vmem:[#allocation8 + $0x214] ss:$8 sps:$4 sm:$0xff]   ;;  %v3674_v11 = vld [vmem:[%s8224_s14 + $0x2] sm:$0x3] }
 0x487   :  { %v3469_v38 = vadd.f32 %v3468_v43, %v3467_v35  ;;  %v3694_v35 = vrot.slane %v3674_v11, %v7503_v17 }
 0x488   :  { %v7776_v31 = vmul.f32 0.25, %v3462_v6  ;;  %v3516_v4 = vadd.f32 %v3515_v34, %v3514_v49  ;;  %v3521_v36 = vadd.f32 %v3520_v37, %v3519_v33  ;;  %v6772_v49 = vld [vmem:[#allocation8 + $0x224] ss:$8 sps:$4 sm:$0xff]   ;;  %v3690_v33 = vrot.slane %v3674_v11, %v7501_v16 }
 0x489   :  { %v3487_v44 = vmul.f32 0.25, %v3469_v38 }
 0x48a   :  { %v3540_v40 = vmul.f32 0.25, %v3516_v4  ;;  %v3549_v41 = vmul.f32 %v7776_v31, %v7776_v31  ;;  %v3522_v42 = vrot.slane %v3521_v36, 1  ;;  %v3630_v6 = vsub.f32 %v7754_v53, %v7776_v31  ;;  %v6770_v4 = vld [vmem:[#allocation8 + $0x220] ss:$8 sps:$4 sm:$0xff]  }
 0x48b   :  { %v3550_v55 = vmul.f32 %v3487_v44, %v3487_v44  ;;  %v3631_v34 = vsub.f32 %v7762_v63, %v3487_v44 }
 0x48c   :  { %v3555_v50 = vsub.f32 %v3540_v40, %v3549_v41  ;;  %v3523_v51 = vadd.f32 %v3522_v42, %v3521_v36  ;;  %v6775_v40 = vld [vmem:[#allocation8 + $0x234] ss:$8 sps:$4 sm:$0xff]  }
 0x48e   :  { %v3561_v45 = vadd.f32 1e-05, %v3555_v50  ;;  %v3541_v62 = vmul.f32 0.25, %v3523_v51  ;;  %v6773_v50 = vld [vmem:[#allocation8 + $0x230] ss:$8 sps:$4 sm:$0xff]  }
 0x48f   :  { %v6881_v54 = vpop.eup %6880  ;;  %v6778_v51 = vld [vmem:[#allocation8 + $0x244] ss:$8 sps:$4 sm:$0xff]  }
 0x490   :  { %v6883_v47 = vpop.eup %6882  ;;  %v3556_v7 = vsub.f32 %v3541_v62, %v3550_v55  ;;  %6884 = vrsqrt.f32 %v3561_v45 }
 0x491   :  { %v3577_v2 = vcombine.low %v6881_v54, %v6883_v47 }
 0x492   :  { %v3562_v1 = vadd.f32 1e-05, %v3556_v7 }
 0x493   :  { %v3584_v60 = vrot.slane %v3577_v2, %v7484_v57 }
 0x494   :  { %6886 = vrsqrt.f32 %v3562_v1  ;;  %v6776_v1 = vld [vmem:[#allocation8 + $0x240] ss:$8 sps:$4 sm:$0xff]  }
 0x495   :  { %v3591_v5 = vrot.slane %v3584_v60, %v7484_v57 }
 0x497   :  { %v3625_v9 = vmul.f32 %v3591_v5, %v3544_v32 }
 0x499   :  { %v3640_v21 = vrot.slane %v3625_v9, %v7501_v16  ;;  %v3644_v59 = vrot.slane %v3625_v9, %v7503_v17 }
 0x49a   :  { %v6885_v20 = vpop.eup %6884 }
 0x49b   :  { %v3667_v39 = vmul.f32 %v3640_v21, %v3628_v13  ;;  %v3668_v58 = vmul.f32 %v3644_v59, %v3629_v18 }
 0x49d   :  { %v3710_v48 = vadd.f32 %v3686_v12, %v3668_v58  ;;  %v3709_v19 = vadd.f32 %v3682_v10, %v3667_v39  ;;  %v6781_v12 = vld [vmem:[#allocation8 + $0x254] ss:$8 sps:$4 sm:$0xff]  }
 0x49e   :  { %v6887_v25 = vpop.eup %6886 }
 0x49f   :  { %vm3716_vm5 = vcmp.ge.f32.partialorder %v3710_v48, 0.0  ;;  %v3722_v22 = vmul.f32 0.01, %v3710_v48  ;;  %vm3715_vm6 = vcmp.ge.f32.partialorder %v3709_v19, 0.0  ;;  %v3721_v24 = vmul.f32 0.01, %v3709_v19 }
 0x4a0   :  { %v3592_v14 = vcombine.low %v6885_v20, %v6887_v25 }
 0x4a1   :  { %v3728_v15 = vsel %vm3716_vm5, %v3710_v48, %v3722_v22  ;;  %v3727_v27 = vsel %vm3715_vm6, %v3709_v19, %v3721_v24  ;;  %v6779_v19 = vld [vmem:[#allocation8 + $0x250] ss:$8 sps:$4 sm:$0xff]   ;;  %v6784_v22 = vld [vmem:[#allocation8 + $0x264] ss:$8 sps:$4 sm:$0xff]  }
 0x4a2   :  { %v3734_v56 = vpack.c.bf16 %v3728_v15, %v3728_v15  ;;  %v3733_v29 = vpack.c.bf16 %v3727_v27, %v3727_v27  ;;  %v3599_v3 = vrot.slane %v3592_v14, %v7484_v57 }
 0x4a4   :  { %4027 = vmatprep.mubr.bf16.mxu0 %v3734_v56  ;;  %v3606_v46 = vrot.slane %v3599_v3, %v7484_v57 }
 0x4a5   :  { %4028 = vmatmul.mubr.bf16.vlgmr.msra.gmra.mrb[24].mxu0 %v3733_v29  ;;  %v6782_v29 = vld [vmem:[#allocation8 + $0x260] ss:$8 sps:$4 sm:$0xff]  }
 0x4a6   :  { %4398 = vmatpush1.bf16.msra.mxu0 %v6764_v28  ;;  %v3626_v52 = vmul.f32 %v3606_v46, %v3545_v30 }
 0x4a7   :  { %4399 = vmatprep.subr.bf16.mxu0 %v6769_v23  ;;  %v6787_v23 = vld [vmem:[#allocation8 + $0x274] ss:$8 sps:$4 sm:$0xff]  }
 0x4a8   :  { %v3648_v37 = vrot.slane %v3626_v52, %v7501_v16  ;;  %v3652_v43 = vrot.slane %v3626_v52, %v7503_v17 }
 0x4aa   :  { %4400 = vmatpush1.bf16.msra.mxu0 %v6767_v61  ;;  %v3669_v36 = vmul.f32 %v3648_v37, %v3630_v6  ;;  %v3670_v38 = vmul.f32 %v3652_v43, %v3631_v34  ;;  %v6790_v34 = vld [vmem:[#allocation8 + $0x284] ss:$8 sps:$4 sm:$0xff]  }
 0x4ab   :  { %4401 = vmatprep.subr.bf16.mxu0 %v6772_v49 }
 0x4ac   :  { %v3712_v41 = vadd.f32 %v3694_v35, %v3670_v38  ;;  %v3711_v42 = vadd.f32 %v3690_v33, %v3669_v36  ;;  %v6785_v35 = vld [vmem:[#allocation8 + $0x270] ss:$8 sps:$4 sm:$0xff]  }
 0x4ae   :  { %4402 = vmatpush1.bf16.msra.mxu0 %v6770_v4  ;;  %vm3718_vm7 = vcmp.ge.f32.partialorder %v3712_v41, 0.0  ;;  %v3724_v54 = vmul.f32 0.01, %v3712_v41  ;;  %vm3717_vm8 = vcmp.ge.f32.partialorder %v3711_v42, 0.0  ;;  %v3723_v53 = vmul.f32 0.01, %v3711_v42 }
 0x4af   :  { %4403 = vmatprep.subr.bf16.mxu0 %v6775_v40  ;;  %v7811_v63 = vpop.f32.mrb[20].mxu1 }
 0x4b0   :  { %v3730_v31 = vsel %vm3718_vm7, %v3712_v41, %v3724_v54  ;;  %v3729_v44 = vsel %vm3717_vm8, %v3711_v42, %v3723_v53  ;;  %v3470_v55 = vsel %vm215_vm0, %v7811_v63, 0.0  ;;  %v3494_v47 = vmul.f32 %v7811_v63, %v7811_v63  ;;  %v7817_v45 = vpop.f32.mrb[21].mxu1  ;;  %v6788_v41 = vld [vmem:[#allocation8 + $0x280] ss:$8 sps:$4 sm:$0xff]   ;;  %v6793_v42 = vld [vmem:[#allocation8 + $0x294] ss:$8 sps:$4 sm:$0xff]  }
 0x4b1   :  { %v3736_v62 = vpack.c.bf16 %v3730_v31, %v3730_v31  ;;  %v3735_v2 = vpack.c.bf16 %v3729_v44, %v3729_v44  ;;  %v3471_v7 = vrot.slane %v3470_v55, 4  ;;  %v3477_v60 = vsel %vm215_vm0, %v7817_v45, 0.0  ;;  %v3439_v32 = vpop.f32.mrb[22].mxu1  ;;  %v6791_v53 = vld [vmem:[#allocation8 + $0x290] ss:$8 sps:$4 sm:$0xff]  }
 0x4b2   :  { %4404 = vmatpush1.bf16.msra.mxu0 %v6773_v50  ;;  %v3524_v5 = vsel %vm215_vm0, %v3494_v47, 0.0  ;;  %v3478_v8 = vrot.slane %v3477_v60, 4  ;;  %v3495_v9 = vmul.f32 %v7817_v45, %v7817_v45  ;;  %v3440_v10 = vpop.f32.mrb[23].mxu1  ;;  %v6796_v31 = vld [vmem:[#allocation8 + $0x2a4] ss:$8 sps:$4 sm:$0xff]  }
 0x4b3   :  { %4405 = vmatprep.subr.bf16.mxu0 %v6778_v51  ;;  %4228 = vmatprep.mubr.bf16.mxu1 %v3736_v62  ;;  %v3472_v13 = vadd.f32 %v3471_v7, %v3470_v55  ;;  %v3525_v18 = vrot.slane %v3524_v5, 4  ;;  %v6794_v44 = vld [vmem:[#allocation8 + $0x2a0] ss:$8 sps:$4 sm:$0xff]   ;;  %v6799_v55 = vld [vmem:[#allocation8 + $0x2b4] ss:$8 sps:$4 sm:$0xff]  }
 0x4b4   :  { %4229 = vmatmul.mubr.bf16.vlgmr.msra.gmra.mrb[24].mxu1 %v3735_v2  ;;  %v3479_v21 = vadd.f32 %v3478_v8, %v3477_v60  ;;  %v3531_v59 = vsel %vm215_vm0, %v3495_v9, 0.0  ;;  %v6797_v47 = vld [vmem:[#allocation8 + $0x2b0] ss:$8 sps:$4 sm:$0xff]   ;;  %v6802_v62 = vld [vmem:[#allocation8 + $0x2c4] ss:$8 sps:$4 sm:$0xff]  }
 0x4b5   :  { %v3473_v39 = vrot.slane %v3472_v13, 2  ;;  %v3526_v58 = vadd.f32 %v3525_v18, %v3524_v5  ;;  %v3532_v48 = vrot.slane %v3531_v59, 4  ;;  %v6800_v60 = vld [vmem:[#allocation8 + $0x2c0] ss:$8 sps:$4 sm:$0xff]   ;;  %v3546_v8 = vld [vmem:[%s8223_s13 + $0x4] sm:$0x3] }
 0x4b6   :  { %4406 = vmatpush1.bf16.msra.mxu0 %v6776_v1  ;;  %v3480_v20 = vrot.slane %v3479_v21, 2  ;;  %v6805_v1 = vld [vmem:[#allocation8 + $0x2d4] ss:$8 sps:$4 sm:$0xff]   ;;  %v6803_v9 = vld [vmem:[#allocation8 + $0x2d0] ss:$8 sps:$4 sm:$0xff]  }
 0x4b7   :  { %4407 = vmatprep.subr.bf16.mxu0 %v6781_v12  ;;  %v3474_v24 = vadd.f32 %v3473_v39, %v3472_v13  ;;  %v3527_v25 = vrot.slane %v3526_v58, 2  ;;  %v3533_v14 = vadd.f32 %v3532_v48, %v3531_v59  ;;  %v3675_v12 = vld [vmem:[%s8224_s14 + $0x4] sm:$0x3]  ;;  %v6806_v39 = vld [vmem:[#allocation8 + $0x2e0] ss:$8 sps:$4 sm:$0xff]  }
 0x4b8   :  { %v3481_v15 = vadd.f32 %v3480_v20, %v3479_v21  ;;  %v6808_v13 = vld [vmem:[#allocation8 + $0x2e4] ss:$8 sps:$4 sm:$0xff]   ;;  %v3698_v21 = vrot.slane %v3675_v12, %v7501_v16  ;;  %v3702_v59 = vrot.slane %v3675_v12, %v7503_v17 }
 0x4b9   :  { %v3475_v27 = vrot.slane %v3474_v24, 1  ;;  %v3528_v56 = vadd.f32 %v3527_v25, %v3526_v58  ;;  %v3534_v28 = vrot.slane %v3533_v14, 2 }
 0x4ba   :  { %4408 = vmatpush1.bf16.msra.mxu0 %v6779_v19  ;;  %v3482_v3 = vrot.slane %v3481_v15, 1 }
 0x4bb   :  { %4409 = vmatprep.subr.bf16.mxu0 %v6784_v22  ;;  %v3476_v30 = vadd.f32 %v3475_v27, %v3474_v24  ;;  %v3529_v46 = vrot.slane %v3528_v56, 1  ;;  %v3535_v11 = vadd.f32 %v3534_v28, %v3533_v14  ;;  %v6811_v22 = vld [vmem:[#allocation8 + $0x2f4] ss:$8 sps:$4 sm:$0xff]   ;;  %v6809_v14 = vld [vmem:[#allocation8 + $0x2f0] ss:$8 sps:$4 sm:$0xff]  }
 0x4bc   :  { %v3483_v61 = vadd.f32 %v3482_v3, %v3481_v15 }
 0x4bd   :  { %v3488_v52 = vmul.f32 0.25, %v3476_v30  ;;  %v3530_v49 = vadd.f32 %v3529_v46, %v3528_v56  ;;  %v3536_v33 = vrot.slane %v3535_v11, 1  ;;  %v6813_v30 = vld [vmem:[%s8228_s18] sm:$0xff]   ;;  %v6814_v46 = vld [vmem:[%s8228_s18 + $0x48] sm:$0xff]  }
 0x4be   :  { %4410 = vmatpush1.bf16.msra.mxu0 %v6782_v29  ;;  %v3489_v6 = vmul.f32 0.25, %v3483_v61  ;;  %v6816_v61 = vld [vmem:[%s8228_s18 + $0x50] sm:$0xff]  }
 0x4bf   :  { %4411 = vmatprep.subr.bf16.mxu0 %v6787_v23  ;;  %v3542_v37 = vmul.f32 0.25, %v3530_v49  ;;  %v3551_v43 = vmul.f32 %v3488_v52, %v3488_v52  ;;  %v3537_v4 = vadd.f32 %v3536_v33, %v3535_v11  ;;  %v3632_v58 = vsub.f32 %v7811_v63, %v3488_v52  ;;  %v6812_v23 = vld [vmem:[%s8228_s18 + $0x40] sm:$0xff]   ;;  %v6815_v11 = vld [vmem:[%s8228_s18 + $0x8] sm:$0xff]   ;;  %v6817_v52 = vld [vmem:[%s8228_s18 + $0x10] sm:$0xff]  }
 0x4c0   :  { %v3552_v36 = vmul.f32 %v3489_v6, %v3489_v6  ;;  %v3633_v48 = vsub.f32 %v7817_v45, %v3489_v6  ;;  %6102 = vmatprep.subr.bf16.mxu1 %v6812_v23  ;;  %v6818_v49 = vld [vmem:[%s8228_s18 + $0x58] sm:$0xff]   ;;  %v6821_v6 = vld [vmem:[%s8228_s18 + $0x20] sm:$0xff]  }
 0x4c1   :  { %v3557_v38 = vsub.f32 %v3542_v37, %v3551_v43  ;;  %v3543_v40 = vmul.f32 0.25, %v3537_v4  ;;  %6103 = vmatpush3.bf16.msra.mxu1 %v6813_v30  ;;  %v6819_v33 = vld [vmem:[%s8228_s18 + $0x18] sm:$0xff]   ;;  %v6823_v37 = vld [vmem:[%s8228_s18 + $0x28] sm:$0xff]   ;;  %v6824_v43 = vld [vmem:[%s8228_s18 + $0x70] sm:$0xff]  }
 0x4c2   :  { %4412 = vmatpush1.bf16.msra.mxu0 %v6785_v35  ;;  %6104 = vmatprep.subr.bf16.mxu1 %v6814_v46  ;;  %v6820_v35 = vld [vmem:[%s8228_s18 + $0x60] sm:$0xff]   ;;  %v6825_v4 = vld [vmem:[%s8228_s18 + $0x30] sm:$0xff]  }
 0x4c3   :  { %4413 = vmatprep.subr.bf16.mxu0 %v6790_v34  ;;  %v3563_v50 = vadd.f32 1e-05, %v3557_v38  ;;  %v3558_v51 = vsub.f32 %v3543_v40, %v3552_v36  ;;  %v6822_v34 = vld [vmem:[%s8228_s18 + $0x68] sm:$0xff]   ;;  %v6826_v36 = vld [vmem:[%s8228_s18 + $0x78] sm:$0xff]   ;;  %v6828_v40 = vld [vmem:[%s8230_s20 + $0x40] sm:$0xff]  }
 0x4c4   :  { %v6827_v38 = vld [vmem:[%s8228_s18 + $0x38] sm:$0xff]   ;;  %s7108_s18 = smov 24  }
 0x4c5   :  { %6888 = vrsqrt.f32 %v3563_v50  ;;  %v3564_v54 = vadd.f32 1e-05, %v3558_v51  ;;  %6105 = vmatpush3.bf16.msra.mxu1 %v6815_v11  ;;  %v6831_v50 = vld [vmem:[%s8230_s20 + $0x8] sm:$0xff]   ;;  %v6832_v51 = vld [vmem:[%s8230_s20 + $0x50] sm:$0xff]  }
 0x4c6   :  { %4414 = vmatpush1.bf16.msra.mxu0 %v6788_v41  ;;  %6106 = vmatprep.subr.bf16.mxu1 %v6816_v61  ;;  %v6829_v41 = vld [vmem:[%s8230_s20] sm:$0xff]  }
 0x4c7   :  { %4415 = vmatprep.subr.bf16.mxu0 %v6793_v42  ;;  %6890 = vrsqrt.f32 %v3564_v54  ;;  %v6830_v42 = vld [vmem:[%s8230_s20 + $0x48] sm:$0xff]   ;;  %v6833_v54 = vld [vmem:[%s8230_s20 + $0x10] sm:$0xff]  }
 0x4c9   :  { %6107 = vmatpush3.bf16.msra.mxu1 %v6817_v52 }
 0x4ca   :  { %4416 = vmatpush1.bf16.msra.mxu0 %v6791_v53  ;;  %6108 = vmatprep.subr.bf16.mxu1 %v6818_v49  ;;  %v6834_v53 = vld [vmem:[%s8230_s20 + $0x58] sm:$0xff]  }
 0x4cb   :  { %4417 = vmatprep.subr.bf16.mxu0 %v6796_v31  ;;  %v6835_v31 = vld [vmem:[%s8230_s20 + $0x18] sm:$0xff]  }
 0x4cd   :  { %6109 = vmatpush3.bf16.msra.mxu1 %v6819_v33 }
 0x4ce   :  { %4418 = vmatpush1.bf16.msra.mxu0 %v6794_v44  ;;  %6110 = vmatprep.subr.bf16.mxu1 %v6820_v35  ;;  %v6836_v44 = vld [vmem:[%s8230_s20 + $0x60] sm:$0xff]  }
 0x4cf   :  { %4419 = vmatprep.subr.bf16.mxu0 %v6799_v55  ;;  %v6889_v2 = vpop.eup %6888  ;;  %v6837_v55 = vld [vmem:[%s8230_s20 + $0x20] sm:$0xff]  }
 0x4d1   :  { %v6891_v7 = vpop.eup %6890  ;;  %6111 = vmatpush3.bf16.msra.mxu1 %v6821_v6 }
 0x4d2   :  { %4420 = vmatpush1.bf16.msra.mxu0 %v6797_v47  ;;  %v3607_v32 = vcombine.low %v6889_v2, %v6891_v7  ;;  %6112 = vmatprep.subr.bf16.mxu1 %v6822_v34  ;;  %v6838_v47 = vld [vmem:[%s8230_s20 + $0x68] sm:$0xff]   ;;  %v6840_v2 = vld [vmem:[%s8230_s20 + $0x70] sm:$0xff]  }
 0x4d3   :  { %4421 = vmatprep.subr.bf16.mxu0 %v6802_v62  ;;  %v6839_v62 = vld [vmem:[%s8230_s20 + $0x28] sm:$0xff]   ;;  %v6841_v7 = vld [vmem:[%s8230_s20 + $0x30] sm:$0xff]  }
 0x4d4   :  { %v3614_v5 = vrot.slane %v3607_v32, %v7484_v57  ;;  %v6843_v32 = vld [vmem:[%s8230_s20 + $0x38] sm:$0xff]  }
 0x4d5   :  { %6113 = vmatpush3.bf16.msra.mxu1 %v6823_v37 }
 0x4d6   :  { %4422 = vmatpush1.bf16.msra.mxu0 %v6800_v60  ;;  %v3621_v10 = vrot.slane %v3614_v5, %v7484_v57  ;;  %6114 = vmatprep.subr.bf16.mxu1 %v6824_v43  ;;  %v6842_v60 = vld [vmem:[%s8230_s20 + $0x78] sm:$0xff]  }
 0x4d7   :  { %4423 = vmatprep.subr.bf16.mxu0 %v6805_v1 }
 0x4d8   :  { %v3627_v18 = vmul.f32 %v3621_v10, %v3546_v8 }
 0x4d9   :  { %6115 = vmatpush3.bf16.msra.mxu1 %v6825_v4 }
 0x4da   :  { %4424 = vmatpush1.bf16.msra.mxu0 %v6803_v9  ;;  %v3656_v19 = vrot.slane %v3627_v18, %v7501_v16  ;;  %v3660_v20 = vrot.slane %v3627_v18, %v7503_v17  ;;  %6116 = vmatprep.subr.bf16.mxu1 %v6826_v36 }
 0x4db   :  { %4425 = vmatprep.subr.bf16.mxu0 %v6808_v13 }
 0x4dc   :  { %v3671_v24 = vmul.f32 %v3656_v19, %v3632_v58  ;;  %v3672_v25 = vmul.f32 %v3660_v20, %v3633_v48 }
 0x4dd   :  { %6117 = vmatpush3.bf16.msra.mxu1 %v6827_v38 }
 0x4de   :  { %4426 = vmatpush1.bf16.msra.mxu0 %v6806_v39  ;;  %v3714_v15 = vadd.f32 %v3702_v59, %v3672_v25  ;;  %v3713_v27 = vadd.f32 %v3698_v21, %v3671_v24 }
 0x4df   :  { %4427 = vmatprep.subr.bf16.mxu0 %v6811_v22 }
 0x4e0   :  { %vm3720_vm9 = vcmp.ge.f32.partialorder %v3714_v15, 0.0  ;;  %v3726_v56 = vmul.f32 0.01, %v3714_v15  ;;  %vm3719_vm10 = vcmp.ge.f32.partialorder %v3713_v27, 0.0  ;;  %v3725_v28 = vmul.f32 0.01, %v3713_v27 }
 0x4e2   :  { %4428 = vmatpush1.bf16.msra.mxu0 %v6809_v14  ;;  %v3732_v63 = vsel %vm3720_vm9, %v3714_v15, %v3726_v56  ;;  %v3731_v45 = vsel %vm3719_vm10, %v3713_v27, %v3725_v28 }
 0x4e3   :  { %v3738_v29 = vpack.c.bf16 %v3732_v63, %v3732_v63  ;;  %v3737_v3 = vpack.c.bf16 %v3731_v45, %v3731_v45  ;;  %6124 = vmatprep.subr.bf16.mxu0 %v6828_v40 }
 0x4e5   :  { %4429 = vmatprep.mubr.bf16.mxu0 %v3738_v29 }
 0x4e6   :  { %4430 = vmatmul.mubr.bf16.vlgmr.msra.gmra.mrb[28].mxu0 %v3737_v3 }
 0x4e7   :  { %6125 = vmatpush3.bf16.msra.mxu0 %v6829_v41 }
 0x4e8   :  { %6126 = vmatprep.subr.bf16.mxu0 %v6830_v42 }
 0x4eb   :  { %6127 = vmatpush3.bf16.msra.mxu0 %v6831_v50 }
 0x4ec   :  { %6128 = vmatprep.subr.bf16.mxu0 %v6832_v51 }
 0x4ef   :  { %6129 = vmatpush3.bf16.msra.mxu0 %v6833_v54 }
 0x4f0   :  { %6130 = vmatprep.subr.bf16.mxu0 %v6834_v53 }
 0x4f3   :  { %6131 = vmatpush3.bf16.msra.mxu0 %v6835_v31 }
 0x4f4   :  { %6132 = vmatprep.subr.bf16.mxu0 %v6836_v44 }
 0x4f7   :  { %6133 = vmatpush3.bf16.msra.mxu0 %v6837_v55 }
 0x4f8   :  { %6134 = vmatprep.subr.bf16.mxu0 %v6838_v47 }
 0x4fb   :  { %6135 = vmatpush3.bf16.msra.mxu0 %v6839_v62 }
 0x4fc   :  { %6136 = vmatprep.subr.bf16.mxu0 %v6840_v2 }
 0x4ff   :  { %6137 = vmatpush3.bf16.msra.mxu0 %v6841_v7 }
 0x500   :  { %6138 = vmatprep.subr.bf16.mxu0 %v6842_v60 }
 0x503   :  { %6139 = vmatpush3.bf16.msra.mxu0 %v6843_v32 }
 0x578   :  { %v7935_v1 = vpop.f32.mrb[24].mxu0 }
 0x579   :  { %v4438_v5 = vsel %vm215_vm0, %v7935_v1, 0.0  ;;  %v4486_v8 = vmul.f32 %v7935_v1, %v7935_v1  ;;  %v7941_v9 = vpop.f32.mrb[25].mxu0 }
 0x57a   :  { %v4439_v10 = vrot.slane %v4438_v5, 4  ;;  %v4445_v12 = vsel %vm215_vm0, %v7941_v9, 0.0  ;;  %v4487_v13 = vmul.f32 %v7941_v9, %v7941_v9  ;;  %v4033_v18 = vpop.f32.mrb[26].mxu0 }
 0x57b   :  { %v4492_v21 = vsel %vm215_vm0, %v4486_v8, 0.0  ;;  %v4446_v59 = vrot.slane %v4445_v12, 4  ;;  %v4034_v39 = vpop.f32.mrb[27].mxu0 }
 0x57c   :  { %v4440_v58 = vadd.f32 %v4439_v10, %v4438_v5  ;;  %v4493_v48 = vrot.slane %v4492_v21, 4  ;;  %v4499_v19 = vsel %vm215_vm0, %v4487_v13, 0.0 }
 0x57d   :  { %v4447_v20 = vadd.f32 %v4446_v59, %v4445_v12  ;;  %v4500_v22 = vrot.slane %v4499_v19, 4 }
 0x57e   :  { %v4441_v24 = vrot.slane %v4440_v58, 2  ;;  %v4494_v25 = vadd.f32 %v4493_v48, %v4492_v21 }
 0x57f   :  { %v4448_v14 = vrot.slane %v4447_v20, 2  ;;  %v4501_v15 = vadd.f32 %v4500_v22, %v4499_v19 }
 0x580   :  { %v4442_v27 = vadd.f32 %v4441_v24, %v4440_v58  ;;  %v4495_v56 = vrot.slane %v4494_v25, 2 }
 0x581   :  { %v4449_v28 = vadd.f32 %v4448_v14, %v4447_v20  ;;  %v4502_v63 = vrot.slane %v4501_v15, 2 }
 0x582   :  { %v4443_v45 = vrot.slane %v4442_v27, 1  ;;  %v4496_v29 = vadd.f32 %v4495_v56, %v4494_v25 }
 0x583   :  { %v4450_v3 = vrot.slane %v4449_v28, 1  ;;  %v4503_v23 = vadd.f32 %v4502_v63, %v4501_v15 }
 0x584   :  { %v4444_v30 = vadd.f32 %v4443_v45, %v4442_v27  ;;  %v4497_v46 = vrot.slane %v4496_v29, 1 }
 0x585   :  { %v4451_v11 = vadd.f32 %v4450_v3, %v4449_v28  ;;  %v4504_v61 = vrot.slane %v4503_v23, 1 }
 0x586   :  { %v7949_v52 = vmul.f32 0.25, %v4444_v30  ;;  %v4498_v49 = vadd.f32 %v4497_v46, %v4496_v29 }
 0x587   :  { %v7951_v33 = vmul.f32 0.25, %v4451_v11  ;;  %v4505_v35 = vadd.f32 %v4504_v61, %v4503_v23  ;;  %v7955_v37 = vpop.f32.mrb[24].mxu1 }
 0x588   :  { %v4534_v6 = vmul.f32 0.25, %v4498_v49  ;;  %v4543_v34 = vmul.f32 %v7949_v52, %v7949_v52  ;;  %v4452_v43 = vsel %vm215_vm0, %v7955_v37, 0.0  ;;  %v4488_v4 = vmul.f32 %v7955_v37, %v7955_v37  ;;  %v4232_v40 = vpop.f32.mrb[25].mxu1 }
 0x589   :  { %v4535_v36 = vmul.f32 0.25, %v4505_v35  ;;  %v4544_v38 = vmul.f32 %v7951_v33, %v7951_v33  ;;  %v4453_v42 = vrot.slane %v4452_v43, 4  ;;  %v4459_v50 = vsel %vm215_vm0, %v4232_v40, 0.0  ;;  %v4234_v51 = vpop.f32.mrb[26].mxu1 }
 0x58a   :  { %v4549_v41 = vsub.f32 %v4534_v6, %v4543_v34  ;;  %v4506_v54 = vsel %vm215_vm0, %v4488_v4, 0.0  ;;  %v4460_v31 = vrot.slane %v4459_v50, 4  ;;  %v4489_v44 = vmul.f32 %v4232_v40, %v4232_v40  ;;  %v4235_v55 = vpop.f32.mrb[27].mxu1  ;;  %v4540_v6 = vld [vmem:[%s8226_s16] sm:$0x3] }
 0x58b   :  { %v4550_v53 = vsub.f32 %v4535_v36, %v4544_v38  ;;  %v4454_v62 = vadd.f32 %v4453_v42, %v4452_v43  ;;  %v4507_v2 = vrot.slane %v4506_v54, 4  ;;  %v4662_v43 = vld [vmem:[%s8227_s17] sm:$0x3]  ;;  %v4625_v42 = vsub.f32 %v7941_v9, %v7951_v33  ;;  %v4541_v33 = vld [vmem:[%s8226_s16 + $0x2] sm:$0x3] }
 0x58c   :  { %v4555_v47 = vadd.f32 1e-05, %v4549_v41  ;;  %v4461_v60 = vadd.f32 %v4460_v31, %v4459_v50  ;;  %v4513_v32 = vsel %vm215_vm0, %v4489_v44, 0.0  ;;  %v4671_v38 = vrot.slane %v4662_v43, %v7501_v16 }
 0x58d   :  { %v4556_v7 = vadd.f32 1e-05, %v4550_v53  ;;  %v4455_v5 = vrot.slane %v4454_v62, 2  ;;  %v4508_v8 = vadd.f32 %v4507_v2, %v4506_v54  ;;  %v4514_v10 = vrot.slane %v4513_v32, 4 }
 0x58e   :  { %6892 = vrsqrt.f32 %v4555_v47  ;;  %v4462_v12 = vrot.slane %v4461_v60, 2  ;;  %v4675_v40 = vrot.slane %v4662_v43, %v7503_v17  ;;  %v4624_v41 = vsub.f32 %v7935_v1, %v7949_v52 }
 0x58f   :  { %6894 = vrsqrt.f32 %v4556_v7  ;;  %v4456_v13 = vadd.f32 %v4455_v5, %v4454_v62  ;;  %v4509_v18 = vrot.slane %v4508_v8, 2  ;;  %v4515_v21 = vadd.f32 %v4514_v10, %v4513_v32 }
 0x590   :  { %v4463_v59 = vadd.f32 %v4462_v12, %v4461_v60 }
 0x591   :  { %v4457_v39 = vrot.slane %v4456_v13, 1  ;;  %v4510_v58 = vadd.f32 %v4509_v18, %v4508_v8  ;;  %v4516_v48 = vrot.slane %v4515_v21, 2  ;;  %v4663_v8 = vld [vmem:[%s8227_s17 + $0x2] sm:$0x3] }
 0x592   :  { %v4464_v19 = vrot.slane %v4463_v59, 1  ;;  %v4679_v18 = vrot.slane %v4663_v8, %v7501_v16 }
 0x593   :  { %v4458_v20 = vadd.f32 %v4457_v39, %v4456_v13  ;;  %v4511_v22 = vrot.slane %v4510_v58, 1  ;;  %v4517_v24 = vadd.f32 %v4516_v48, %v4515_v21 }
 0x594   :  { %v4465_v25 = vadd.f32 %v4464_v19, %v4463_v59  ;;  %v4947_v19 = vpop.permute.xlu0 %4946 }
 0x595   :  { %v4482_v14 = vmul.f32 0.25, %v4458_v20  ;;  %v4512_v15 = vadd.f32 %v4511_v22, %v4510_v58  ;;  %v4518_v27 = vrot.slane %v4517_v24, 1  ;;  %v7091_v58 = vmov 6  }
 0x596   :  { %v4483_v56 = vmul.f32 0.25, %v4465_v25  ;;  %6187 = vset.pattern.permute.xlu1 %v7091_v58 }
 0x597   :  { %v4536_v63 = vmul.f32 0.25, %v4512_v15  ;;  %v4545_v45 = vmul.f32 %v4482_v14, %v4482_v14  ;;  %v4519_v29 = vadd.f32 %v4518_v27, %v4517_v24  ;;  %v4626_v12 = vsub.f32 %v7955_v37, %v4482_v14 }
 0x598   :  { %v6893_v28 = vpop.eup %6892  ;;  %v4546_v23 = vmul.f32 %v4483_v56, %v4483_v56 }
 0x599   :  { %v6895_v3 = vpop.eup %6894  ;;  %v4551_v30 = vsub.f32 %v4536_v63, %v4545_v45  ;;  %v4537_v11 = vmul.f32 0.25, %v4519_v29 }
 0x59a   :  { %v4573_v46 = vcombine.low %v6893_v28, %v6895_v3 }
 0x59b   :  { %v4557_v61 = vadd.f32 1e-05, %v4551_v30  ;;  %v4552_v35 = vsub.f32 %v4537_v11, %v4546_v23 }
 0x59c   :  { %v4580_v49 = vrot.slane %v4573_v46, %v7484_v57 }
 0x59d   :  { %6896 = vrsqrt.f32 %v4557_v61  ;;  %v4558_v4 = vadd.f32 1e-05, %v4552_v35 }
 0x59e   :  { %v4587_v34 = vrot.slane %v4580_v49, %v7484_v57 }
 0x59f   :  { %6898 = vrsqrt.f32 %v4558_v4 }
 0x5a0   :  { %v4621_v36 = vmul.f32 %v4587_v34, %v4540_v6 }
 0x5a2   :  { %v4635_v50 = vrot.slane %v4621_v36, %v7501_v16  ;;  %v4639_v51 = vrot.slane %v4621_v36, %v7503_v17 }
 0x5a4   :  { %v4657_v54 = vmul.f32 %v4635_v50, %v4624_v41  ;;  %v4658_v53 = vmul.f32 %v4639_v51, %v4625_v42 }
 0x5a6   :  { %v4694_v31 = vadd.f32 %v4675_v40, %v4658_v53  ;;  %v4693_v44 = vadd.f32 %v4671_v38, %v4657_v54 }
 0x5a7   :  { %v6897_v55 = vpop.eup %6896 }
 0x5a8   :  { %vm4699_vm11 = vcmp.ge.f32.partialorder %v4694_v31, 0.0  ;;  %v4704_v47 = vmul.f32 0.01, %v4694_v31  ;;  %vm4698_vm12 = vcmp.ge.f32.partialorder %v4693_v44, 0.0  ;;  %v4703_v62 = vmul.f32 0.01, %v4693_v44 }
 0x5a9   :  { %v6899_v2 = vpop.eup %6898 }
 0x5aa   :  { %v4709_v7 = vsel %vm4699_vm11, %v4694_v31, %v4704_v47  ;;  %v4708_v60 = vsel %vm4698_vm12, %v4693_v44, %v4703_v62  ;;  %v4588_v1 = vcombine.low %v6897_v55, %v6899_v2 }
 0x5ab   :  { %v4714_v52 = vpack.c.bf16 %v4709_v7, %v4709_v7  ;;  %v4713_v32 = vpack.c.bf16 %v4708_v60, %v4708_v60 }
 0x5ac   :  { %v4595_v9 = vrot.slane %v4588_v1, %v7484_v57 }
 0x5ad   :  { %4882 = vmatprep.mubr.bf16.mxu1 %v4714_v52 }
 0x5ae   :  { %4883 = vmatmul.mubr.bf16.vlgmr.msra.gmra.mrb[28].mxu1 %v4713_v32  ;;  %v4602_v5 = vrot.slane %v4595_v9, %v7484_v57 }
 0x5b0   :  { %v4622_v10 = vmul.f32 %v4602_v5, %v4541_v33 }
 0x5b2   :  { %v4643_v13 = vrot.slane %v4622_v10, %v7501_v16 }
 0x5b4   :  { %v4659_v21 = vmul.f32 %v4643_v13, %v4626_v12  ;;  %v4542_v12 = vld [vmem:[%s8226_s16 + $0x4] sm:$0x3]  ;;  %s7006_s16 = scalar_lea.vmem %s5609_s6, 64 }
 0x5b5   :  { %p7007_p4 = scmp.ne.s32.totalorder %s5609_s6, %s7006_s16  ;;  %p7012_p6 = scmp.lt.s32.totalorder %s7006_s16, %s7006_s16 }
 0x5b6   :  { %v4695_v59 = vadd.f32 %v4679_v18, %v4659_v21  ;;  %v4664_v18 = vld [vmem:[%s8227_s17 + $0x4] sm:$0x3] }
 0x5b7   :  { %p7013_p7 = por %p7012_p6, %p7011_p5 }
 0x5b8   :  { %vm4700_vm13 = vcmp.ge.f32.partialorder %v4695_v59, 0.0  ;;  %v4705_v39 = vmul.f32 0.01, %v4695_v59 }
 0x5b9   :  { %v7993_v48 = vpop.f32.mrb[28].mxu0  ;;  %p7014_p8 = pnand %p7013_p7, %p7007_p4 }
 0x5ba   :  { %v7995_v20 = vsel %vm4700_vm13, %v4695_v59, %v4705_v39  ;;  %v4466_v22 = vsel %vm215_vm0, %v7993_v48, 0.0  ;;  %v4490_v37 = vmul.f32 %v7993_v48, %v7993_v48  ;;  %v8001_v24 = vpop.f32.mrb[29].mxu0  ;;  %v4683_v59 = vrot.slane %v4664_v18, %v7501_v16 }
 0x5bb   :  { %v4943_v25 = vmul.f32 %v7995_v20, %v7995_v20  ;;  %v4467_v14 = vrot.slane %v4466_v22, 4  ;;  %v4473_v15 = vsel %vm215_vm0, %v8001_v24, 0.0  ;;  %v4491_v27 = vmul.f32 %v8001_v24, %v8001_v24  ;;  %v4435_v56 = vpop.f32.mrb[30].mxu0 }
 0x5bc   :  { %v4520_v28 = vsel %vm215_vm0, %v4490_v37, 0.0  ;;  %v4474_v63 = vrot.slane %v4473_v15, 4  ;;  %v4436_v45 = vpop.f32.mrb[31].mxu0  ;;  %v4687_v39 = vrot.slane %v4664_v18, %v7503_v17 }
 0x5bd   :  { %v4949_v29 = vmul.f32 %v4947_v19, %v4943_v25  ;;  %v4468_v3 = vadd.f32 %v4467_v14, %v4466_v22  ;;  %v4521_v23 = vrot.slane %v4520_v28, 4  ;;  %v4527_v30 = vsel %vm215_vm0, %v4491_v27, 0.0 }
 0x5be   :  { %v4475_v46 = vadd.f32 %v4474_v63, %v4473_v15  ;;  %v4528_v11 = vrot.slane %v4527_v30, 4 }
 0x5bf   :  { %4951 = vrot.lane.b32.xlu0 %v4949_v29, %s7092_s10  ;;  %v4469_v61 = vrot.slane %v4468_v3, 2  ;;  %v4522_v49 = vadd.f32 %v4521_v23, %v4520_v28  ;;  %v6060_v23 = vld [vmem:[%s8229_s19] ss:$0 sm:$0xff]  ;;  %s7095_s19 = smov 72   ;;  %s7112_s10 = smov 6  }
 0x5c0   :  { %v4476_v35 = vrot.slane %v4475_v46, 2  ;;  %v4529_v6 = vadd.f32 %v4528_v11, %v4527_v30 }
 0x5c1   :  { %v4470_v34 = vadd.f32 %v4469_v61, %v4468_v3  ;;  %v4523_v43 = vrot.slane %v4522_v49, 2 }
 0x5c2   :  { %v4477_v4 = vadd.f32 %v4476_v35, %v4475_v46  ;;  %v4530_v36 = vrot.slane %v4529_v6, 2 }
 0x5c3   :  { %v4471_v38 = vrot.slane %v4470_v34, 1  ;;  %v4524_v40 = vadd.f32 %v4523_v43, %v4522_v49  ;;  %v8042_v43 = vand.u32 127, %v593_v26 }
 0x5c4   :  { %v4478_v41 = vrot.slane %v4477_v4, 1  ;;  %v4531_v42 = vadd.f32 %v4530_v36, %v4529_v6  ;;  %v6085_v6 = vld [vmem:[%s8231_s21] ss:$0 sm:$0xff]  ;;  %s7102_s21 = smov 1  }
 0x5c5   :  { %v4472_v50 = vadd.f32 %v4471_v38, %v4470_v34  ;;  %v4525_v51 = vrot.slane %v4524_v40, 1  ;;  %vm5489_vm1 = vcmp.eq.s32.totalorder %v8042_v43, 2 }
 0x5c6   :  { %v4479_v54 = vadd.f32 %v4478_v41, %v4477_v4  ;;  %v4532_v53 = vrot.slane %v4531_v42, 1 }
 0x5c7   :  { %v4484_v31 = vmul.f32 0.25, %v4472_v50  ;;  %v4526_v44 = vadd.f32 %v4525_v51, %v4524_v40 }
 0x5c8   :  { %v4485_v55 = vmul.f32 0.25, %v4479_v54  ;;  %v4533_v47 = vadd.f32 %v4532_v53, %v4531_v42 }
 0x5c9   :  { %v4538_v62 = vmul.f32 0.25, %v4526_v44  ;;  %v4547_v2 = vmul.f32 %v4484_v31, %v4484_v31  ;;  %v4627_v58 = vsub.f32 %v7993_v48, %v4484_v31 }
 0x5ca   :  { %v4539_v7 = vmul.f32 0.25, %v4533_v47  ;;  %v4548_v60 = vmul.f32 %v4485_v55, %v4485_v55  ;;  %v4628_v19 = vsub.f32 %v8001_v24, %v4485_v55 }
 0x5cb   :  { %v4553_v1 = vsub.f32 %v4538_v62, %v4547_v2 }
 0x5cc   :  { %v4554_v52 = vsub.f32 %v4539_v7, %v4548_v60 }
 0x5cd   :  { %v4559_v32 = vadd.f32 1e-05, %v4553_v1 }
 0x5ce   :  { %v4560_v9 = vadd.f32 1e-05, %v4554_v52 }
 0x5cf   :  { %6900 = vrsqrt.f32 %v4559_v32 }
 0x5d0   :  { %6902 = vrsqrt.f32 %v4560_v9 }
 0x5d9   :  { %v6901_v33 = vpop.eup %6900 }
 0x5da   :  { %v6903_v5 = vpop.eup %6902 }
 0x5db   :  { %v4603_v8 = vcombine.low %v6901_v33, %v6903_v5 }
 0x5dd   :  { %v4610_v10 = vrot.slane %v4603_v8, %v7484_v57 }
 0x5df   :  { %v4617_v13 = vrot.slane %v4610_v10, %v7484_v57 }
 0x5e1   :  { %v4623_v21 = vmul.f32 %v4617_v13, %v4542_v12 }
 0x5e3   :  { %v4647_v22 = vrot.slane %v4623_v21, %v7501_v16  ;;  %v4651_v37 = vrot.slane %v4623_v21, %v7503_v17 }
 0x5e5   :  { %v4660_v25 = vmul.f32 %v4647_v22, %v4627_v58  ;;  %v4661_v14 = vmul.f32 %v4651_v37, %v4628_v19  ;;  %v7096_v22 = vmov 683565275  }
 0x5e7   :  { %v4697_v57 = vadd.f32 %v4687_v39, %v4661_v14  ;;  %v4696_v15 = vadd.f32 %v4683_v59, %v4660_v25  ;;  %v7097_v25 = vmov 2475754826  }
 0x5e9   :  { %vm4702_vm0 = vcmp.ge.f32.partialorder %v4697_v57, 0.0  ;;  %v4707_v27 = vmul.f32 0.01, %v4697_v57  ;;  %vm4701_vm14 = vcmp.ge.f32.partialorder %v4696_v15, 0.0  ;;  %v4706_v56 = vmul.f32 0.01, %v4696_v15 }
 0x5eb   :  { %v4712_v28 = vsel %vm4702_vm0, %v4697_v57, %v4707_v27  ;;  %v4711_v63 = vsel %vm4701_vm14, %v4696_v15, %v4706_v56  ;;  %v7098_v15 = vmov 2131351028  }
 0x5ec   :  { %v5313_v45 = vpack.c.bf16 %v4712_v28, %v4712_v28  ;;  %v5312_v29 = vpack.c.bf16 %v4711_v63, %v4711_v63  ;;  %v7099_v28 = vmov 2102212464  }
 0x5ee   :  { %5481 = vmatprep.mubr.bf16.mxu0 %v5313_v45 }
 0x5ef   :  { %5482 = vmatmul.mubr.bf16.vlgmr.msra.gmra.mrb[32].mxu0 %v5312_v29  ;;  %v7100_v29 = vmov 920167782  }
 0x631   :  { %v4952_v48 = vpop.permute.xlu0 %4951 }
 0x632   :  { %v4954_v24 = vadd.f32 %v4952_v48, %v7995_v20 }
 0x634   :  { %v4955_v16 = vmul.f32 %v4954_v24, %v4954_v24 }
 0x636   :  { %v4957_v17 = vsel %vm4956_vm15, %v4955_v16, 0.0  ;;  %v7101_v16 = vmov 1326507024  }
 0x637   :  { %4958 = vadd.xlane.f32.xlu1 %v4957_v17 }
 0x648   :  { %4964 = vperm.xlu1 %6187, %v7995_v20  }
 0x64c   :  { %6188 = vset.pattern.permute.xlu1 %v7088_v0 }
 0x681   :  { %v6118_v3 = vpop.f32.mrb[28].mxu1 }
 0x682   :  { %v6119_v30 = vpop.f32.mrb[29].mxu1 }
 0x683   :  { %v6120_v46 = vadd.f32 %v6119_v30, %v6118_v3  ;;  %v6121_v11 = vpop.f32.mrb[30].mxu1 }
 0x684   :  { %v6122_v61 = vpop.f32.mrb[31].mxu1 }
 0x685   :  { %v8032_v49 = vadd.f32 %v6120_v46, %v6060_v23 }
 0x687   :  { %v4890_v35 = vmul.f32 %v8032_v49, %v8032_v49 }
 0x689   :  { %4892 = vrot.lane.b32.xlu1 %v4890_v35, %s7093_s28 }
 0x68d   :  { %4896 = vrot.lane.b32.xlu1 %v4890_v35, %s7094_s9 }
 0x6c2   :  { %v6140_v20 = vpop.f32.mrb[32].mxu0 }
 0x6c3   :  { %v6141_v34 = vpop.f32.mrb[33].mxu0 }
 0x6c4   :  { %v4959_v4 = vpop.xlane.xlu1 %4958  ;;  %v6142_v36 = vadd.f32 %v6141_v34, %v6140_v20  ;;  %v6143_v38 = vpop.f32.mrb[34].mxu0 }
 0x6c5   :  { %6904 = vrsqrt.f32 %v4959_v4  ;;  %v6144_v40 = vpop.f32.mrb[35].mxu0 }
 0x6c6   :  { %v5484_v41 = vadd.f32 %v6142_v36, %v6085_v6 }
 0x6c8   :  { %v5490_v42 = vmul.f32 %v5484_v41, %v5484_v41  ;;  %v4965_v53 = vpop.permute.xlu1 %4964 }
 0x6ca   :  { %v8045_v50 = vsel %vm5489_vm1, %v5490_v42, %v5484_v41 }
 0x6cb   :  { %5492 = vst.msk [vmem:[#allocation11] sm:$0xf] %vm4956_vm15, %v8045_v50 }
 0x6cf   :  { %v6905_v51 = vpop.eup %6904 }
 0x6d0   :  { %v4961_v54 = vmul.f32 %v6905_v51, %v4954_v24 }
 0x6d2   :  { %v8049_v31 = vmul.f32 %v4965_v53, %v4961_v54 }
 0x6d4   :  { %v4968_v26 = vmul.f32 %v8049_v31, %v8049_v31 }
 0x6d6   :  { %v4969_v44 = vsel %vm4956_vm15, %v4968_v26, 0.0 }
 0x6d7   :  { %4970 = vadd.xlane.f32.xlu0 %v4969_v44 }
 0x6fb   :  { %v4893_v55 = vpop.permute.xlu1 %4892 }
 0x6fc   :  { %v4895_v47 = vadd.f32 %v4893_v55, %v4890_v35 }
 0x6ff   :  { %v4897_v62 = vpop.permute.xlu1 %4896 }
 0x700   :  { %v4899_v2 = vadd.f32 %v4897_v62, %v4895_v47 }
 0x702   :  { %6906 = vrsqrt.f32 %v4899_v2 }
 0x70c   :  { %v6907_v7 = vpop.eup %6906 }
 0x70d   :  { %4902 = vrot.lane.b32.xlu1 %v6907_v7, %s7095_s19 }
 0x764   :  { %v8054_v60 = vpop.xlane.xlu0 %4970 }
 0x765   :  { %6908 = vrsqrt.f32 %v8054_v60  ;;  %vm4974_vm2 = vcmp.eq.f32.partialorder %v8054_v60, inf  ;;  %v4977_v32 = vand.u32 2147483648, %v8054_v60  ;;  %vm4976_vm3 = vcmp.eq.f32.partialorder %v8054_v60, 0.0 }
 0x76f   :  { %v6909_v1 = vpop.eup %6908 }
 0x770   :  { %v4973_v52 = vmul.f32 %v6909_v1, %v8054_v60 }
 0x772   :  { %v4975_v9 = vsel %vm4974_vm2, %v8054_v60, %v4973_v52 }
 0x773   :  { %v8062_v33 = vsel %vm4976_vm3, %v4977_v32, %v4975_v9 }
 0x774   :  { %v8065_v5 = vmul.f32 0.5, %v8062_v33  ;;  %vm4980_vm13 = vcmp.lt.f32.partialorder %v8062_v33, 1e-06 }
 0x776   :  { %v4987_v8 = vand.u32 2139095040, %v8065_v5  ;;  %v4984_v18 = vand.u32 2147483647, %v8065_v5  ;;  %vm4986_vm11 = vcmp.lt.s32.totalorder %v8065_v5, 0  ;;  %vm5076_vm3 = vweird.f32 %v8065_v5 }
 0x778   :  { %v4988_v10 = vshrl.u32 %v4987_v8, 23  ;;  %v4991_v39 = vand.u32 8388607, %v4984_v18  ;;  %vm4985_vm12 = vcmp.le.f32.partialorder %v4984_v18, 0.7853982 }
 0x77a   :  { %v6077_v12 = vadd.s32 4294967169, %v4988_v10  ;;  %v4992_v3 = vor.u32 8388608, %v4991_v39 }
 0x77c   :  { %v4994_v13 = vadd.s32 1, %v6077_v12  ;;  %v5032_v41 = vshll.u32 %v4992_v3, 8  ;;  %v5088_v3 = vsel %vm4980_vm13, 1.0, %v8062_v33 }
 0x77e   :  { %vm4995_vm4 = vcmp.gt.s32.totalorder %v4994_v13, 0 }
 0x77f   :  { %v4996_v21 = vsel %vm4995_vm4, %v4994_v13, 0 }
 0x780   :  { %v4998_v59 = vand.u32 31, %v4996_v21  ;;  %v4997_v19 = vshrl.u32 %v4996_v21, 5 }
 0x782   :  { %v4999_v58 = vsub.s32 32, %v4998_v59  ;;  %v5001_v37 = vshll.u32 %v7096_v22, %v4998_v59  ;;  %v5004_v14 = vshll.u32 %v7097_v25, %v4998_v59  ;;  %v5007_v56 = vshll.u32 %v7098_v15, %v4998_v59 }
 0x783   :  { %v5010_v45 = vshll.u32 %v7099_v28, %v4998_v59  ;;  %v5013_v24 = vshll.u32 %v7100_v29, %v4998_v59  ;;  %vm5016_vm5 = vcmp.lt.s32.totalorder %v4997_v19, 1  ;;  %vm5019_vm6 = vcmp.lt.s32.totalorder %v4997_v19, 4 }
 0x784   :  { %v5002_v57 = vshrl.u32 %v7097_v25, %v4999_v58  ;;  %v5005_v27 = vshrl.u32 %v7098_v15, %v4999_v58  ;;  %v5008_v63 = vshrl.u32 %v7099_v28, %v4999_v58  ;;  %v5011_v48 = vshrl.u32 %v7100_v29, %v4999_v58 }
 0x785   :  { %v5014_v17 = vshrl.u32 %v7101_v16, %v4999_v58  ;;  %v5000_v34 = vshrl.u32 %v7096_v22, %v4999_v58  ;;  %vm5018_vm7 = vcmp.lt.s32.totalorder %v4997_v19, 3  ;;  %vm5017_vm8 = vcmp.lt.s32.totalorder %v4997_v19, 2 }
 0x786   :  { %v5003_v23 = vor.u32 %v5002_v57, %v5001_v37  ;;  %v5006_v30 = vor.u32 %v5005_v27, %v5004_v14  ;;  %v5009_v46 = vor.u32 %v5008_v63, %v5007_v56  ;;  %v5012_v11 = vor.u32 %v5011_v48, %v5010_v45 }
 0x787   :  { %v5015_v61 = vor.u32 %v5014_v17, %v5013_v24 }
 0x788   :  { %v5021_v35 = vsel %vm5019_vm6, %v5009_v46, 2102212464  ;;  %v5024_v20 = vsel %vm5016_vm5, %v5003_v23, %v5006_v30  ;;  %v5028_v6 = vsel %vm5016_vm5, %v5006_v30, %v5009_v46  ;;  %v5025_v4 = vsel %vm5019_vm6, %v5012_v11, 920167782 }
 0x789   :  { %v5029_v36 = vsel %vm5019_vm6, %v5015_v61, 1326507024  ;;  %v5026_v38 = vsel %vm5018_vm7, %v5009_v46, %v5025_v4  ;;  %v5020_v42 = vsel %vm5016_vm5, %v5000_v34, %v5003_v23  ;;  %v5022_v51 = vsel %vm5018_vm7, %v5006_v30, %v5021_v35 }
 0x78a   :  { %v5030_v40 = vsel %vm5018_vm7, %v5012_v11, %v5029_v36  ;;  %v5027_v54 = vsel %vm5017_vm8, %v5024_v20, %v5026_v38  ;;  %v5023_v62 = vsel %vm5017_vm8, %v5020_v42, %v5022_v51  ;;  %v4982_v20 = vmul.f32 0.020833334, %v8054_v60 }
 0x78b   :  { %v5031_v53 = vsel %vm5017_vm8, %v5028_v6, %v5030_v40  ;;  %v8074_v55 = vmul.u32.u64.low %v5032_v41, %v5027_v54  ;;  %v8075_v47 = vmul.u32.u64.high %v5032_v41, %v5027_v54, %v8074_v55  ;;  %v5039_v7 = vmul.u32 %v5032_v41, %v5023_v62 }
 0x78c   :  { %v8071_v26 = vmul.u32.u64.low %v5032_v41, %v5031_v53  ;;  %v8072_v44 = vmul.u32.u64.high %v5032_v41, %v5031_v53, %v8071_v26  ;;  %v4983_v42 = vsub.f32 0.5, %v4982_v20  ;;  %vm4908_vm5 = vcmp.eq.s32.totalorder %v8042_v43, 0 }
 0x78d   :  { %v5042_v2 = vadd.s32 1, %v8075_v47  ;;  %vm4920_vm6 = vcmask 191488  }
 0x78e   :  { %vm5041_vm9 = vc.u32 %v8072_v44, %v8074_v55  ;;  %v5040_v58 = vadd.s32 %v8074_v55, %v8072_v44  ;;  %v4903_v55 = vpop.permute.xlu1 %4902 }
 0x78f   :  { %v5043_v1 = vsel %vm5041_vm9, %v5042_v2, %v8075_v47  ;;  %v4905_v33 = vmul.f32 %v4903_v55, %v8032_v49 }
 0x790   :  { %v5044_v52 = vadd.s32 %v5043_v1, %v5039_v7 }
 0x791   :  { %v4909_v47 = vmul.f32 6.28, %v4905_v33 }
 0x792   :  { %v5045_v32 = vadd.s32 536870912, %v5044_v52 }
 0x794   :  { %v5046_v9 = vshrl.u32 %v5045_v32, 30 }
 0x796   :  { %v5047_v8 = vshll.u32 %v5046_v9, 30  ;;  %v5070_v45 = vsub.s32 4, %v5046_v9 }
 0x798   :  { %v5048_v10 = vsub.s32 %v5044_v52, %v5047_v8  ;;  %v5071_v24 = vsel %vm4986_vm11, %v5070_v45, %v5046_v9 }
 0x799   :  { %v5073_v17 = vsel %vm4985_vm12, 0, %v5071_v24 }
 0x79a   :  { %v5050_v12 = vsub.s32 0, %v5048_v10  ;;  %v5077_v23 = vadd.s32 3, %v5073_v17  ;;  %v5185_v11 = vand.u32 3, %v5073_v17 }
 0x79c   :  { %v6078_v13 = vmin.u32 %v5050_v12, %v5048_v10  ;;  %v5078_v30 = vand.u32 3, %v5077_v23  ;;  %vm5187_vm1 = vcmp.eq.s32.totalorder %v5185_v11, 0  ;;  %vm5190_vm2 = vcmp.eq.s32.totalorder %v5185_v11, 2 }
 0x79d   :  { %vm5186_vm4 = vcmp.lt.s32.totalorder %v5185_v11, 2 }
 0x79e   :  { %v5052_v21 = vclz %v6078_v13  ;;  %vm5083_vm0 = vcmp.eq.s32.totalorder %v5078_v30, 2  ;;  %vm5080_vm14 = vcmp.eq.s32.totalorder %v5078_v30, 0  ;;  %vm5079_vm15 = vcmp.lt.s32.totalorder %v5078_v30, 2 }
 0x7a0   :  { %v6079_v59 = vadd.s32 4294967294, %v5052_v21 }
 0x7a2   :  { %vm6080_vm10 = vcmp.lt.s32.totalorder %v6079_v59, 0 }
 0x7a3   :  { %v5055_v39 = vsel %vm6080_vm10, 0, %v6079_v59 }
 0x7a4   :  { %v5056_v19 = vsub.s32 32, %v5055_v39  ;;  %v5060_v22 = vsub.s32 4294967266, %v5055_v39  ;;  %v5057_v37 = vshll.u32 %v5048_v10, %v5055_v39 }
 0x7a6   :  { %v5058_v25 = vshrl.u32 %v5040_v58, %v5056_v19  ;;  %v5061_v14 = vadd.s32 127, %v5060_v22  ;;  %v8115_v58 = vld [vmem:[%s8267_s7 + $0x4] sm:$0xf]  ;;  %v8123_v22 = vld [vmem:[%s8267_s7 + $0x8] sm:$0xf] }
 0x7a8   :  { %v5059_v57 = vor.u32 %v5058_v25, %v5057_v37  ;;  %v5062_v15 = vshll.u32 %v5061_v14, 23  ;;  %v8128_v37 = vld [vmem:[%s8267_s7] sm:$0xf] }
 0x7aa   :  { %v5063_v27 = vor.u32 4788187, %v5062_v15  ;;  %v5066_v28 = vcvt.s32.f32 %v5059_v57 }
 0x7ac   :  { %v5064_v56 = vand.u32 2147483647, %v5063_v27  ;;  %v7109_v27 = vmov 2  }
 0x7ae   :  { %v5067_v63 = vmul.f32 %v5066_v28, %v5064_v56 }
 0x7b0   :  { %v5068_v29 = vxor.u32 2147483648, %v5067_v63 }
 0x7b2   :  { %v5069_v48 = vsel %vm4986_vm11, %v5068_v29, %v5067_v63 }
 0x7b3   :  { %v5072_v16 = vsel %vm4985_vm12, %v8065_v5, %v5069_v48 }
 0x7b4   :  { %6910 = vcosq.f32 %v5072_v16 }
 0x7b5   :  { %6912 = vsinq.f32 %v5072_v16 }
 0x7b6   :  { %6914 = vrcp.f32 %v5088_v3 }
 0x7be   :  { %v6911_v46 = vpop.eup %6910 }
 0x7bf   :  { %v6913_v61 = vpop.eup %6912  ;;  %v5084_v18 = vxor.u32 2147483648, %v6911_v46 }
 0x7c0   :  { %v5081_v35 = vxor.u32 2147483648, %v6913_v61  ;;  %v6915_v40 = vpop.eup %6914 }
 0x7c1   :  { %v5085_v6 = vsel %vm5083_vm0, %v5084_v18, %v6913_v61  ;;  %v5192_v38 = vsel %vm5190_vm2, %v5084_v18, %v6913_v61 }
 0x7c2   :  { %v5082_v34 = vsel %vm5080_vm14, %v6911_v46, %v5081_v35  ;;  %v5189_v36 = vsel %vm5187_vm1, %v6911_v46, %v5081_v35 }
 0x7c3   :  { %v5086_v4 = vsel %vm5079_vm15, %v5082_v34, %v5085_v6  ;;  %v5193_v54 = vsel %vm5186_vm4, %v5189_v36, %v5192_v38 }
 0x7c4   :  { %v5087_v41 = vsel %vm5076_vm3, nan, %v5086_v4  ;;  %v5194_v26 = vsel %vm5076_vm3, nan, %v5193_v54 }
 0x7c5   :  { %v5090_v51 = vmul.f32 %v6915_v40, %v5087_v41  ;;  %v5196_v10 = vmul.f32 %v5194_v26, %v5194_v26 }
 0x7c7   :  { %v5091_v60 = vsel %vm4980_vm13, %v4983_v42, %v5090_v51 }
 0x7c8   :  { %v8094_v53 = vmul.f32 %v5091_v60, %v8049_v31  ;;  %v7105_v31 = vmov 1  }
 0x7c9   :  { %6189 = vset.pattern.permute.xlu0 %v7105_v31 }
 0x7ca   :  { %v5222_v44 = vmul.f32 %v8094_v53, %v5194_v26  ;;  %v8099_v5 = vmul.f32 %v8094_v53, %v8094_v53 }
 0x7cc   :  { %5243 = vrot.lane.b32.xlu0 %v5222_v44, %s7102_s21  ;;  %5200 = vrot.lane.b32.xlu1 %v8099_v5, %s7103_s5  ;;  %v5198_v13 = vadd.f32 %v8099_v5, %v5196_v10 }
 0x7d0   :  { %5224 = vrot.lane.b32.xlu0 %v5222_v44, %s7104_s3  ;;  %5218 = vrot.lane.b32.xlu1 %v8094_v53, %s7103_s5 }
 0x7d4   :  { %4911 = vrot.lane.b32.xlu1 %v4909_v47, %s7106_s26 }
 0x7d8   :  { %4915 = vrot.lane.b32.xlu1 %v4905_v33, %s7106_s26 }
 0x7dc   :  { %5204 = vrot.lane.b32.xlu1 %v8099_v5, %s7104_s3 }
 0x7e0   :  { %5229 = vrot.lane.b32.xlu1 %v8094_v53, %s7104_s3 }
 0x7e4   :  { %5233 = vrot.lane.b32.xlu1 %v5222_v44, %s7103_s5 }
 0x83e   :  { %v5201_v62 = vpop.permute.xlu1 %5200  ;;  %v5244_v52 = vpop.permute.xlu0 %5243 }
 0x83f   :  { %v5210_v2 = vadd.f32 %v5201_v62, %v8099_v5  ;;  %v5203_v39 = vadd.f32 %v5201_v62, %v5198_v13 }
 0x841   :  { %5212 = vrot.lane.b32.xlu1 %v5210_v2, %s7103_s5 }
 0x842   :  { %v5219_v7 = vpop.permute.xlu1 %5218  ;;  %v5225_v57 = vpop.permute.xlu0 %5224 }
 0x843   :  { %v5221_v1 = vmul.f32 %v5219_v7, %v8094_v53 }
 0x845   :  { %v5254_v32 = vadd.f32 %v5244_v52, %v5221_v1  ;;  %v5246_v9 = vsub.f32 %v5221_v1, %v5244_v52  ;;  %v5238_v56 = vadd.f32 %v5225_v57, %v5221_v1  ;;  %v5227_v29 = vsub.f32 %v5221_v1, %v5225_v57 }
 0x846   :  { %v4912_v8 = vpop.permute.xlu1 %4911 }
 0x847   :  { %5256 = vrot.lane.b32.xlu0 %v5254_v32, %s7103_s5  ;;  %5248 = vrot.lane.b32.xlu1 %v5246_v9, %s7103_s5 }
 0x84a   :  { %v4916_v12 = vpop.permute.xlu1 %4915 }
 0x84b   :  { %v4918_v21 = vsel %vm4908_vm5, %v4912_v8, %v4916_v12 }
 0x84c   :  { %4933 = vrot.lane.b32.xlu1 %v4918_v21, %s7107_s29  ;;  %v4919_v59 = vmul.f32 %v4918_v21, %v8032_v49  ;;  %4923 = vrot.lane.b32.xlu0 %v4918_v21, %s7108_s18 }
 0x84e   :  { %v5205_v19 = vpop.permute.xlu1 %5204  ;;  %4921 = vst.msk [vmem:[#allocation10] sm:$0xf] %vm4920_vm6, %v4919_v59 }
 0x84f   :  { %v5207_v43 = vadd.f32 %v5205_v19, %v5203_v39  ;;  %v5240_v16 = vadd.f32 %v5205_v19, %v8099_v5 }
 0x850   :  { %5503 = vperm.xlu1 %6188, %v8115_v58   ;;  %5558 = vperm.xlu0 %6189, %v8045_v50  }
 0x851   :  { %6916 = vrcp.f32 %v5207_v43 }
 0x852   :  { %v5230_v25 = vpop.permute.xlu1 %5229 }
 0x853   :  { %v5232_v63 = vmul.f32 %v5230_v25, %v8094_v53 }
 0x854   :  { %5508 = vperm.xlu1 %6188, %v8123_v22   ;;  %6190 = vset.pattern.permute.xlu0 %v7088_v0 }
 0x855   :  { %5498 = vperm.xlu0 %6190, %v8128_v37  }
 0x856   :  { %v5234_v28 = vpop.permute.xlu1 %5233 }
 0x857   :  { %v5252_v48 = vsub.f32 %v5232_v63, %v5234_v28  ;;  %v5236_v23 = vadd.f32 %v5234_v28, %v5232_v63 }
 0x858   :  { %5534 = vperm.xlu1 %6188, %v8045_v50  }
 0x85b   :  { %v6917_v14 = vpop.eup %6916 }
 0x85c   :  { %v5209_v15 = vmul.f32 2.0, %v6917_v14  ;;  %6191 = vset.pattern.permute.xlu1 %v7109_v27 }
 0x85d   :  { %5582 = vperm.xlu1 %6191, %v8045_v50  }
 0x85e   :  { %v5239_v45 = vmul.f32 %v5238_v56, %v5209_v15  ;;  %v5228_v24 = vmul.f32 %v5227_v29, %v5209_v15  ;;  %v5253_v17 = vmul.f32 %v5252_v48, %v5209_v15  ;;  %v5241_v3 = vmul.f32 %v5240_v16, %v5209_v15 }
 0x85f   :  { %v5237_v30 = vmul.f32 %v5236_v23, %v5209_v15  ;;  %v5260_v46 = vmul.f32 %v5210_v2, %v5209_v15 }
 0x860   :  { %5541 = vperm.xlu0 %6190, %v5239_v45   ;;  %v5242_v50 = vsub.f32 1.0, %v5241_v3 }
 0x861   :  { %6192 = vset.pattern.permute.xlu1 %v7088_v0  ;;  %v5261_v11 = vsub.f32 1.0, %v5260_v46 }
 0x862   :  { %5521 = vperm.xlu1 %6192, %v5228_v24  }
 0x864   :  { %5565 = vperm.xlu0 %6190, %v5253_v17  }
 0x866   :  { %5263 = vrot.lane.b32.xlu1 %v5228_v24, %s7102_s21 }
 0x868   :  { %5527 = vperm.xlu0 %6190, %v5237_v30  }
 0x86a   :  { %5546 = vperm.xlu1 %6192, %v5242_v50  }
 0x86c   :  { %5267 = vrot.lane.b32.xlu0 %v5237_v30, %s7110_s8 }
 0x870   :  { %5576 = vperm.xlu0 %6190, %v5261_v11  }
 0x8b3   :  { %v5213_v61 = vpop.permute.xlu1 %5212 }
 0x8b4   :  { %v8139_v6 = vmul.f32 %v5213_v61, %v5209_v15 }
 0x8b6   :  { %v5216_v36 = vsub.f32 1.0, %v8139_v6 }
 0x8b9   :  { %v5257_v0 = vpop.permute.xlu0 %5256  ;;  %v5249_v18 = vpop.permute.xlu1 %5248 }
 0x8ba   :  { %v5259_v38 = vmul.f32 %v5257_v0, %v5209_v15  ;;  %v5251_v40 = vmul.f32 %v5249_v18, %v5209_v15 }
 0x8be   :  { %v4924_v35 = vpop.permute.xlu0 %4923  ;;  %v4934_v20 = vpop.permute.xlu1 %4933 }
 0x8bf   :  { %v4926_v34 = vmul.f32 %v4924_v35, %v8032_v49  ;;  %v4936_v4 = vmul.f32 %v4934_v20, %v8032_v49 }
 0x8c1   :  { %4928 = vrot.lane.b32.xlu0 %v4926_v34, %s7093_s28  ;;  %4938 = vrot.lane.b32.xlu1 %v4936_v4, %s7094_s9 }
 0x8c5   :  { %5516 = vperm.xlu0 %6190, %v5216_v36   ;;  %5570 = vperm.xlu1 %6192, %v5259_v38  }
 0x8c9   :  { %5275 = vrot.lane.b32.xlu0 %v5242_v50, %s7111_s23  ;;  %5552 = vperm.xlu1 %6192, %v5251_v40  }
 0x8ca   :  { %6193 = vset.pattern.permute.xlu0 %v7109_v27 }
 0x8cd   :  { %5283 = vrot.lane.b32.xlu0 %v5253_v17, %s7112_s10  ;;  %5271 = vrot.lane.b32.xlu1 %v5239_v45, %s7090_s4 }
 0x8d1   :  { %5291 = vrot.lane.b32.xlu0 %v5261_v11, %s7085_s0  ;;  %5279 = vrot.lane.b32.xlu1 %v5251_v40, %s7113_s11 }
 0x8d5   :  { %5287 = vrot.lane.b32.xlu1 %v5259_v38, %s7114_s27 }
 0x8d6   :  { %7017 = shalt.err (!%p7014_p8)
}
 0x8d7   :  { %s7018_s4 = scalar_lea.hbm %s8234_s24, 64 }
 0x8d8   :  { %p7019_p9 = scmp.ne.s32.totalorder %s8234_s24, %s7018_s4  ;;  %p7022_p10 = scmp.lt.u32.totalorder %s7018_s4, %s8234_s24 }
 0x8da   :  { %p7024_p11 = pnand %p7022_p10, %p7019_p9 }
 0x8dc   :  { %7027 = shalt.err (!%p7024_p11)
}
 0x8dd   :  { %5611 = dma.vmem_to_hbm [thread:$0]  %s5609_s6, 64, %s8234_s24, [#allocation12]   ;;  %v5504_v49 = vpop.permute.xlu1 %5503  ;;  %v8163_v41 = vpop.permute.xlu0 %5558 }
 0x8de   :  { %s7116_s5 = smov [#allocation10]  }
 0x8df   :  { %s5593_s3 = sshll.u32 %s7116_s5, 4  ;;  %s5594_s3 = int_to_ptr.vmem [resolvable:$true] %s5593_s3 }
 0x8e0   :  { %s7028_s24 = scalar_lea.vmem %s5594_s3, 192  ;;  %p7033_p13 = scmp.lt.s32.totalorder %s5594_s3, %s5594_s3 }
 0x8e1   :  { %v5509_v42 = vpop.permute.xlu1 %5508  ;;  %v5499_v51 = vpop.permute.xlu0 %5498  ;;  %p7029_p12 = scmp.ne.s32.totalorder %s5594_s3, %s7028_s24  ;;  %p7034_p0 = scmp.lt.s32.totalorder %s7028_s24, %s7028_s24 }
 0x8e3   :  { %p7035_p1 = por %p7034_p0, %p7033_p13 }
 0x8e5   :  { %v5535_v54 = vpop.permute.xlu1 %5534  ;;  %v5542_v60 = vpop.permute.xlu0 %5541  ;;  %p7036_p2 = pnand %p7035_p1, %p7029_p12 }
 0x8e9   :  { %v5583_v53 = vpop.permute.xlu1 %5582  ;;  %v5566_v26 = vpop.permute.xlu0 %5565 }
 0x8ed   :  { %v5522_v44 = vpop.permute.xlu1 %5521  ;;  %v5528_v5 = vpop.permute.xlu0 %5527 }
 0x8f1   :  { %v5264_v55 = vpop.permute.xlu1 %5263  ;;  %v5268_v33 = vpop.permute.xlu0 %5267 }
 0x8f5   :  { %v5547_v31 = vpop.permute.xlu1 %5546  ;;  %v5577_v47 = vpop.permute.xlu0 %5576 }
 0x933   :  { %v4929_v62 = vpop.permute.xlu0 %4928  ;;  %v4939_v2 = vpop.permute.xlu1 %4938 }
 0x934   :  { %4932 = vst.msk [vmem:[#allocation10 + $0x4] sm:$0xf] %vm4920_vm6, %v4929_v62  ;;  %4942 = vst.msk [vmem:[#allocation10 + $0x8] sm:$0xf] %vm4920_vm6, %v4939_v2 }
 0x935   :  { %7039 = shalt.err (!%p7036_p2)
}
 0x936   :  { %s7040_s18 = scalar_lea.hbm %s8232_s22, 192 }
 0x937   :  { %p7041_p3 = scmp.ne.s32.totalorder %s8232_s22, %s7040_s18  ;;  %p7044_p4 = scmp.lt.u32.totalorder %s7040_s18, %s8232_s22 }
 0x939   :  { %p7046_p5 = pnand %p7044_p4, %p7041_p3 }
 0x93b   :  { %7049 = shalt.err (!%p7046_p5)
}
 0x93c   :  { %s7117_s14 = smov 64   ;;  %v5512_v7 = vsub.f32 %v8115_v58, %v5504_v49  ;;  %v5511_v1 = vsub.f32 %v8128_v37, %v5499_v51  ;;  %v5513_v52 = vsub.f32 %v8123_v22, %v5509_v42  ;;  %vm5294_vm7 = vcmask 7168  }
 0x93d   :  { %5599 = dma.vmem_to_hbm [thread:$0]  %s5594_s3, 192, %s8232_s22, [#allocation4], %s7117_s14, %s7117_s14, %s7111_s23   ;;  %vm5296_vm8 = vcmask 15360   ;;  %vm5538_vm9 = vcmask 125952   ;;  %vm5298_vm10 = vcmask 23552   ;;  %v5295_v27 = vsel %vm5294_vm7, %v5216_v36, %v5264_v55 }
 0x93e   :  { %v5524_v32 = vmul.f32 %v5522_v44, %v5512_v7  ;;  %v5568_v10 = vmul.f32 %v5566_v26, %v5511_v1  ;;  %v5549_v12 = vmul.f32 %v5547_v31, %v5512_v7  ;;  %v5544_v59 = vmul.f32 %v5542_v60, %v5511_v1  ;;  %s7118_s22 = smov [#allocation13]  }
 0x93f   :  { %v5530_v39 = vmul.f32 %v5528_v5, %v5513_v52  ;;  %v5579_v19 = vmul.f32 %v5577_v47, %v5513_v52  ;;  %s5617_s8 = sshll.u32 %s7118_s22, 4  ;;  %v5297_v45 = vsel %vm5296_vm8, %v5295_v27, %v5268_v33  ;;  %vm5300_vm11 = vcmask 31744   ;;  %s5618_s8 = int_to_ptr.vmem [resolvable:$true] %s5617_s8 }
 0x940   :  { %v5550_v58 = vadd.f32 %v5549_v12, %v5544_v59  ;;  %vm5302_vm12 = vcmask 39936   ;;  %s7050_s10 = scalar_lea.vmem %s5618_s8, 192  ;;  %p7055_p7 = scmp.lt.s32.totalorder %s5618_s8, %s5618_s8 }
 0x941   :  { %p7051_p6 = scmp.ne.s32.totalorder %s5618_s8, %s7050_s10  ;;  %p7056_p8 = scmp.lt.s32.totalorder %s7050_s10, %s7050_s10 }
 0x943   :  { %p7057_p9 = por %p7056_p8, %p7055_p7 }
 0x944   :  { %v5517_v9 = vpop.permute.xlu0 %5516  ;;  %v5571_v8 = vpop.permute.xlu1 %5570 }
 0x945   :  { %v5519_v13 = vmul.f32 %v5517_v9, %v5511_v1  ;;  %v5573_v21 = vmul.f32 %v5571_v8, %v5512_v7  ;;  %p7058_p10 = pnand %p7057_p9, %p7051_p6 }
 0x947   :  { %v5525_v43 = vadd.f32 %v5524_v32, %v5519_v13  ;;  %v5574_v25 = vadd.f32 %v5573_v21, %v5568_v10 }
 0x948   :  { %v5553_v14 = vpop.permute.xlu1 %5552  ;;  %v5276_v15 = vpop.permute.xlu0 %5275 }
 0x949   :  { %v5531_v57 = vadd.f32 %v5530_v39, %v5525_v43  ;;  %v5580_v37 = vadd.f32 %v5579_v19, %v5574_v25  ;;  %v5555_v22 = vmul.f32 %v5553_v14, %v5513_v52 }
 0x94b   :  { %v5537_v56 = vadd.f32 %v5535_v54, %v5531_v57  ;;  %v5585_v28 = vadd.f32 %v5583_v53, %v5580_v37  ;;  %v5556_v63 = vadd.f32 %v5555_v22, %v5550_v58 }
 0x94c   :  { %v5272_v29 = vpop.permute.xlu1 %5271  ;;  %v5284_v16 = vpop.permute.xlu0 %5283 }
 0x94d   :  { %5539 = vst.msk [vmem:[#allocation13] sm:$0xf] %vm5538_vm9, %v5537_v56  ;;  %5587 = vst.msk [vmem:[#allocation13 + $0x8] sm:$0xf] %vm5538_vm9, %v5585_v28  ;;  %v5561_v48 = vadd.f32 %v8163_v41, %v5556_v63  ;;  %v5299_v24 = vsel %vm5298_vm10, %v5297_v45, %v5272_v29 }
 0x94e   :  { %v5301_v17 = vsel %vm5300_vm11, %v5299_v24, %v5276_v15 }
 0x94f   :  { %5563 = vst.msk [vmem:[#allocation13 + $0x4] sm:$0xf] %vm5538_vm9, %v5561_v48 }
 0x950   :  { %v5280_v3 = vpop.permute.xlu1 %5279 }
 0x951   :  { %7061 = shalt.err (!%p7058_p10)
}
 0x952   :  { %s8268_s12 = sld [smem:[#allocation30_spill]] }
 0x958   :  { %s7062_s6 = scalar_lea.hbm %s8268_s12, 192 }
 0x959   :  { %p7063_p11 = scmp.ne.s32.totalorder %s8268_s12, %s7062_s6  ;;  %p7066_p12 = scmp.lt.u32.totalorder %s7062_s6, %s8268_s12 }
 0x95b   :  { %p7068_p13 = pnand %p7066_p12, %p7063_p11 }
 0x95d   :  { %7071 = shalt.err (!%p7068_p13)
}
 0x95e   :  { %5623 = dma.vmem_to_hbm [thread:$0]  %s5618_s8, 192, %s8268_s12, [#allocation12], %s7117_s14, %s7117_s14, %s7111_s23   ;;  %v5303_v23 = vsel %vm5302_vm12, %v5301_v17, %v5280_v3  ;;  %vm5304_vm13 = vcmask 48128   ;;  %vm5306_vm0 = vcmask 56320   ;;  %vm5308_vm14 = vcmask 64512   ;;  %v5288_v50 = vpop.permute.xlu1 %5287  ;;  %v5292_v46 = vpop.permute.xlu0 %5291 }
 0x95f   :  { %v5305_v30 = vsel %vm5304_vm13, %v5303_v23, %v5284_v16  ;;  %vm5310_vm15 = vcmask 68608   ;;  %s8269_s19 = sld [smem:[#allocation29_spill]] }
 0x960   :  { %v5307_v11 = vsel %vm5306_vm0, %v5305_v30, %v5288_v50 }
 0x961   :  { %v5309_v61 = vsel %vm5308_vm14, %v5307_v11, %v5292_v46 }
 0x965   :  { %5311 = vst.msk [vmem:[%s8269_s19] sm:$0xf] %vm5310_vm15, %v5309_v61 }
 0x966   :  { %7078 = dma.done.wait [#allocation4], 192  }
 0x967   :  { %7079 = vsyncadd [#allocation4], 4294967104 }
 0x968   :  { %7080 = dma.done.wait [#allocation12], 256  }
 0x969   :  { %7081 = vsyncadd [#allocation12], 4294967040 }
 0x96a   :  { %5635 = vsyncpa [#allocation3], 1 }
 0x96b   :  { %5636 = vsyncpa [#allocation6], 1 }
 0x96c   :  { %5637 = vsyncpa [#allocation9], 1 }
 0x96d   :  { %5638 = vsyncpa [#allocation4], 1 }
 0x96e   :  { %5639 = vsyncpa [#allocation12], 1 }

</bundles_post_ra>
